<compile_context>
chip_gen: v6e
topology: v6e:2x2x1
jax: 0.10.0
libtpu: 0.0.40
codegen_flags: <defaults>
</compile_context>

<pallas_src>
import functools

import numpy as np
import jax
import jax.numpy as jnp
from jax.experimental import pallas as pl
from jax.experimental.pallas import tpu as pltpu


# ----------------------------------------------------------------- weights prep --

def _phase_weights(w, b):
    """Fold nearest-2x upsample + 3x3/pad-1 conv into two 6-tap banks on the input grid.

    Output pixel (2r+py, 2c+px) only reads input pixels (r+dr, c+dc) where the (dr, dc)
    window depends on the parity (py, px); summing the original 3x3 weights per (dr, dc)
    is an exact reformulation with no upsampled intermediate.  Both column parities are
    packed along the output-channel axis (2*Cout) so each bank produces one contiguous
    output row.
    """
    Cout, Cin = w.shape[0], w.shape[1]
    w3 = jnp.transpose(w, (2, 3, 1, 0)).astype(jnp.float32)     # (ky, kx, Cin, Cout)
    near = {-1: -1, 0: 0, 1: 0}     # source offset of a tap for EVEN output parity
    far = {-1: 0, 0: 0, 1: 1}       # source offset of a tap for ODD  output parity

    def bank(row_map, dr_vals):
        taps = []
        for dr in dr_vals:
            for dc in (-1, 0, 1):
                w_evencol = jnp.zeros((Cin, Cout), jnp.float32)
                w_oddcol = jnp.zeros((Cin, Cout), jnp.float32)
                for dy in (-1, 0, 1):
                    if row_map[dy] != dr:
                        continue
                    for dx in (-1, 0, 1):
                        if near[dx] == dc:
                            w_evencol = w_evencol + w3[dy + 1, dx + 1]
                        if far[dx] == dc:
                            w_oddcol = w_oddcol + w3[dy + 1, dx + 1]
                taps.append(jnp.concatenate([w_evencol, w_oddcol], axis=-1))
        return jnp.stack(taps, axis=0).astype(jnp.bfloat16)      # (6, Cin, 2*Cout)

    we = bank(near, (-1, 0))    # even output rows: dr in {-1, 0}
    wo = bank(far, (0, 1))      # odd  output rows: dr in {0, +1}
    b2 = jnp.concatenate([b, b]).reshape(1, 2 * Cout).astype(jnp.float32)
    return we, wo, b2


# ---------------------------------------------------------------------- kernels --

def _upsample_conv3x3_kernel(x_ref, we_ref, wo_ref, b2_ref, o_ref, *, tile_h):
    """Fused nearest-2x upsample + 3x3 conv (padding=1) for one (batch, row-tile).

    x_ref : (1, H, W, Cin)         f32   full input image of this batch element
    we_ref: (6, Cin, 2*Cout)       bf16  taps for even output rows (dr in {-1,0} x dc in {-1,0,+1})
    wo_ref: (6, Cin, 2*Cout)       bf16  taps for odd  output rows (dr in {0,+1} x dc in {-1,0,+1})
    b2_ref: (1, 2*Cout)            f32   bias duplicated for both column parities
    o_ref : (1, TH, 2, W, 2*Cout)  f32   o[0,r,p,c,px*Cout+ch] == y[2*(r0+r)+p, 2*c+px, ch]
    """
    H, W, Cin = x_ref.shape[1], x_ref.shape[2], x_ref.shape[3]
    C2 = o_ref.shape[4]
    TH = tile_h
    P = W + 2                                    # width incl. the conv's zero-pad columns
    t = pl.program_id(1)
    r0 = pl.multiple_of(t * TH, TH)              # first input row of this tile

    # -- halo'd row window (TH+2, W) with in-kernel zero padding (no HBM jnp.pad) --
    main = x_ref[0, pl.ds(r0, TH)].astype(jnp.bfloat16)                      # (TH, W, Cin)
    top = x_ref[0, pl.ds(jnp.maximum(r0 - 1, 0), 1)].astype(jnp.bfloat16)    # (1, W, Cin)
    bot = x_ref[0, pl.ds(jnp.minimum(r0 + TH, H - 1), 1)].astype(jnp.bfloat16)
    top = jnp.where(r0 > 0, top, 0.0)            # zero halo at the image top
    bot = jnp.where(r0 + TH < H, bot, 0.0)       # zero halo at the image bottom
    zcol = jnp.zeros((TH + 2, 1, Cin), jnp.bfloat16)
    xpad = jnp.concatenate(
        [zcol, jnp.concatenate([top, main, bot], axis=0), zcol], axis=1)     # (TH+2, P, Cin)

    # Flattened per-dr row windows: A[dr][k] = xpad[dr+1 + k//P, k%P]
    # (input row r0 + k//P + dr, input col k%P - 1, pad columns are zero).
    A = {dr: xpad[dr + 1:dr + 1 + TH].reshape(TH * P, Cin) for dr in (-1, 0, 1)}

    def shift(a, dc):
        # o[k] = a[k + dc]; the zero-filled edge rows only ever land in discarded pad slots.
        if dc == 0:
            return a
        z = jnp.zeros((1, a.shape[1]), a.dtype)
        return (jnp.concatenate([a[1:], z], axis=0) if dc > 0
                else jnp.concatenate([z, a[:-1]], axis=0))

    acc_e = None     # even output rows, (TH*P, 2*Cout), accumulated in f32 on the MXU
    acc_o = None     # odd output rows
    for dr in (-1, 0, 1):
        a_dr = A[dr]
        for dc in (-1, 0, 1):
            op = shift(a_dr, dc)
            if dr <= 0:     # even-row bank uses dr in {-1, 0}
                c = jnp.dot(op, we_ref[(dr + 1) * 3 + (dc + 1)],
                            preferred_element_type=jnp.float32)
                acc_e = c if acc_e is None else acc_e + c
            if dr >= 0:     # odd-row bank uses dr in {0, +1}
                c = jnp.dot(op, wo_ref[dr * 3 + (dc + 1)],
                            preferred_element_type=jnp.float32)
                acc_o = c if acc_o is None else acc_o + c

    b2 = b2_ref[...]
    # Drop the pad columns and add the bias once on the valid region; stores are
    # lane-dense ((W, 2*Cout) minor dims) and contiguous in the final output layout.
    o_ref[0, :, 0] = acc_e.reshape(TH, P, C2)[:, 1:W + 1, :] + b2
    o_ref[0, :, 1] = acc_o.reshape(TH, P, C2)[:, 1:W + 1, :] + b2


def _upsample2x_kernel(x_ref, o_ref):
    # with_conv=False path: pure nearest-neighbour duplication, fully tiled (no halo).
    # x_ref: (1, TH, W, C)   o_ref: (1, TH, 2, W, 2C)
    x = x_ref[0]
    xx = jnp.concatenate([x, x], axis=-1)        # column parities packed on the lane axis
    o_ref[0, :, 0] = xx
    o_ref[0, :, 1] = xx


# --------------------------------------------------------------------- wrapper --

def _pick_tile_h(H, W, C):
    """Largest divisor of H whose f32 output tile stays ~<=2 MiB, preferring >=2 row
    tiles so the pipeline has something to double-buffer and v7x megacore can shard."""
    budget = 2 * 1024 * 1024
    divisors = [d for d in range(1, H + 1) if H % d == 0]
    fitting = [d for d in divisors if 16 * d * W * C <= budget]   # TH*2*W*2C*4 bytes
    th = max(fitting) if fitting else 1
    if th == H and len(divisors) > 1:
        th = max(d for d in divisors if d < H)
    return th


def upsample(x, params, *, with_conv=True, tile_h=None):
    """Pallas TPU forward of torch `Upsample`: nearest-2x (+ optional 3x3 conv, pad=1).

    x: (N, C, H, W) float32 (NCHW like the PyTorch module). Returns (N, C, 2H, 2W) float32.
    """
    N, C, H, W = x.shape
    # TODO(synk): in a full NHWC decoder pipeline these boundary layout transposes disappear.
    xh = jnp.transpose(x, (0, 2, 3, 1))          # NHWC: channels on the lane axis
    TH = _pick_tile_h(H, W, C) if tile_h is None else tile_h
    assert H % TH == 0
    grid = (N, H // TH)
    C2 = 2 * C
    out_shape = jax.ShapeDtypeStruct((N, H, 2, W, C2), jnp.float32)
    out_spec = pl.BlockSpec((1, TH, 2, W, C2), lambda b, t: (b, t, 0, 0, 0))
    cparams = pltpu.CompilerParams(
        dimension_semantics=("parallel", "parallel"),   # batch x row-tile, both independent
        vmem_limit_bytes=32 * 1024 * 1024)

    if with_conv:
        we, wo, b2 = _phase_weights(params['w'], params['b'])
        y = pl.pallas_call(
            functools.partial(_upsample_conv3x3_kernel, tile_h=TH),
            out_shape=out_shape,
            grid=grid,
            in_specs=[
                # Full (small, pre-upsample) image stays VMEM-resident per batch element;
                # output rows are tiled, each tile slices its own +/-1 row halo in-kernel.
                pl.BlockSpec((1, H, W, C), lambda b, t: (b, 0, 0, 0)),
                pl.BlockSpec((6, C, C2), lambda b, t: (0, 0, 0)),
                pl.BlockSpec((6, C, C2), lambda b, t: (0, 0, 0)),
                pl.BlockSpec((1, C2), lambda b, t: (0, 0)),
            ],
            out_specs=out_spec,
            compiler_params=cparams,
        )(xh, we, wo, b2)
    else:
        y = pl.pallas_call(
            _upsample2x_kernel,
            out_shape=out_shape,
            grid=grid,
            in_specs=[pl.BlockSpec((1, TH, W, C), lambda b, t: (b, t, 0, 0))],
            out_specs=out_spec,
            compiler_params=cparams,
        )(xh)

    y = y.reshape(N, 2 * H, 2 * W, C)            # contiguous re-label, no data movement
    return jnp.transpose(y, (0, 3, 1, 2))        # back to NCHW to match the module interface


# -------------------------------------------------------------- pure-JAX reference --

def ref_upsample(x, params, *, with_conv=True):
    y = jnp.repeat(jnp.repeat(x, 2, axis=2), 2, axis=3)
    if with_conv:
        y = jax.lax.conv_general_dilated(
            y, params['w'], window_strides=(1, 1), padding=((1, 1), (1, 1)),
            dimension_numbers=('NCHW', 'OIHW', 'NCHW'))
        y = y + params['b'].reshape(1, -1, 1, 1)
    return y


# ------------------------------------------------------------------------- main --

if __name__ == "__main__":
    N, C, Hin, Win = 2, 64, 16, 16                     # Upsample(in_channels=64, with_conv=True)
    key = jax.random.PRNGKey(0)
    kx, kw, kb = jax.random.split(key, 3)
    x = jax.random.normal(kx, (N, C, Hin, Win), jnp.float32)
    params = {
        'w': jax.random.normal(kw, (C, C, 3, 3), jnp.float32) / np.sqrt(9 * C),
        'b': 0.02 * jax.random.normal(kb, (C,), jnp.float32),
    }

    # with_conv=True (the configuration used by the VAE decoder)
    fwd = jax.jit(functools.partial(upsample, with_conv=True))
    y = jax.block_until_ready(fwd(x, params))
    y_ref = ref_upsample(x, params, with_conv=True)
    assert y.shape == (N, C, 2 * Hin, 2 * Win), y.shape
    err = float(jnp.max(jnp.abs(y - y_ref)))
    # bf16 MXU matmuls vs f32 reference -> loose-but-meaningful tolerance.
    assert np.isfinite(err) and err < 3e-2, f"with_conv=True max abs err = {err}"

    # with_conv=False (pure nearest upsample)
    fwd_nc = jax.jit(functools.partial(upsample, with_conv=False))
    y2 = jax.block_until_ready(fwd_nc(x, params))
    y2_ref = ref_upsample(x, params, with_conv=False)
    assert y2.shape == (N, C, 2 * Hin, 2 * Win), y2.shape
    err2 = float(jnp.max(jnp.abs(y2 - y2_ref)))
    assert err2 < 1e-6, f"with_conv=False max abs err = {err2}"

    print("KERNEL_OK")
</pallas_src>

<mosaic_0001>
module attributes {stable_mosaic.version = 11 : i64} {
  func.func @_upsample_conv3x3_kernel(%arg0: i32, %arg1: i32, %arg2: memref<1x16x16x64xf32, #tpu.memory_space<vmem>>, %arg3: memref<6x64x128xbf16, #tpu.memory_space<vmem>>, %arg4: memref<6x64x128xbf16, #tpu.memory_space<vmem>>, %arg5: memref<1x128xf32, #tpu.memory_space<vmem>>, %arg6: memref<1x8x2x16x128xf32, #tpu.memory_space<vmem>>) attributes {dimension_semantics = [#tpu.dimension_semantics<parallel>, #tpu.dimension_semantics<parallel>], iteration_bounds = array<i64: 2, 2>, scalar_prefetch = 0 : i64, scratch_operands = 0 : i64, tpu.core_type = #tpu.core_type<tc>, window_params = [{transform_indices = @transform_0, window_bounds = array<i64: 1, 16, 16, 64>}, {pipeline_mode = #tpu.pipeline_mode<synchronous>, transform_indices = @transform_1, window_bounds = array<i64: 6, 64, 128>}, {pipeline_mode = #tpu.pipeline_mode<synchronous>, transform_indices = @transform_2, window_bounds = array<i64: 6, 64, 128>}, {pipeline_mode = #tpu.pipeline_mode<synchronous>, transform_indices = @transform_3, window_bounds = array<i64: 1, 128>}, {transform_indices = @transform_4, window_bounds = array<i64: 1, 8, 2, 16, 128>}]} {
    %c8_i32 = arith.constant 8 : i32
    %0 = arith.muli %arg1, %c8_i32 : i32
    %1 = tpu.assume_multiple %0, 8 : i32
    %c0 = arith.constant 0 : index
    %2 = arith.index_cast %1 : i32 to index
    %c0_0 = arith.constant 0 : index
    %c0_1 = arith.constant 0 : index
    %3 = vector.load %arg2[%c0, %2, %c0_0, %c0_1] : memref<1x16x16x64xf32, #tpu.memory_space<vmem>>, vector<1x8x16x64xf32>
    %4 = vector.shape_cast %3 : vector<1x8x16x64xf32> to vector<8x16x64xf32>
    %5 = arith.truncf %4 : vector<8x16x64xf32> to vector<8x16x64xbf16>
    %c1_i32 = arith.constant 1 : i32
    %6 = arith.subi %1, %c1_i32 : i32
    %c0_i32 = arith.constant 0 : i32
    %7 = arith.maxsi %6, %c0_i32 : i32
    %c0_2 = arith.constant 0 : index
    %8 = arith.index_cast %7 : i32 to index
    %c0_3 = arith.constant 0 : index
    %c0_4 = arith.constant 0 : index
    %9 = vector.load %arg2[%c0_2, %8, %c0_3, %c0_4] : memref<1x16x16x64xf32, #tpu.memory_space<vmem>>, vector<1x1x16x64xf32>
    %10 = vector.shape_cast %9 : vector<1x1x16x64xf32> to vector<1x16x64xf32>
    %11 = arith.truncf %10 : vector<1x16x64xf32> to vector<1x16x64xbf16>
    %c8_i32_5 = arith.constant 8 : i32
    %12 = arith.addi %1, %c8_i32_5 : i32
    %c15_i32 = arith.constant 15 : i32
    %13 = arith.minsi %12, %c15_i32 : i32
    %c0_6 = arith.constant 0 : index
    %14 = arith.index_cast %13 : i32 to index
    %c0_7 = arith.constant 0 : index
    %c0_8 = arith.constant 0 : index
    %15 = vector.load %arg2[%c0_6, %14, %c0_7, %c0_8] : memref<1x16x16x64xf32, #tpu.memory_space<vmem>>, vector<1x1x16x64xf32>
    %16 = vector.shape_cast %15 : vector<1x1x16x64xf32> to vector<1x16x64xf32>
    %17 = arith.truncf %16 : vector<1x16x64xf32> to vector<1x16x64xbf16>
    %c0_i32_9 = arith.constant 0 : i32
    %18 = arith.cmpi sgt, %1, %c0_i32_9 : i32
    %cst = arith.constant 0.000000e+00 : f32
    %19 = arith.truncf %cst : f32 to bf16
    %20 = vector.broadcast %19 : bf16 to vector<1x16x64xbf16>
    %21 = arith.select %18, %11, %20 : vector<1x16x64xbf16>
    %c8_i32_10 = arith.constant 8 : i32
    %22 = arith.addi %1, %c8_i32_10 : i32
    %c16_i32 = arith.constant 16 : i32
    %23 = arith.cmpi slt, %22, %c16_i32 : i32
    %cst_11 = arith.constant 0.000000e+00 : f32
    %24 = arith.truncf %cst_11 : f32 to bf16
    %25 = vector.broadcast %24 : bf16 to vector<1x16x64xbf16>
    %26 = arith.select %23, %17, %25 : vector<1x16x64xbf16>
    %cst_12 = arith.constant 0.000000e+00 : bf16
    %27 = vector.broadcast %cst_12 : bf16 to vector<10x1x64xbf16>
    %28 = tpu.concatenate %21, %5, %26 in 0 : vector<1x16x64xbf16>, vector<8x16x64xbf16>, vector<1x16x64xbf16> -> vector<10x16x64xbf16>
    %29 = tpu.concatenate %27, %28, %27 in 1 : vector<10x1x64xbf16>, vector<10x16x64xbf16>, vector<10x1x64xbf16> -> vector<10x18x64xbf16>
    %30 = vector.extract_strided_slice %29 {offsets = [0, 0, 0], sizes = [8, 18, 64], strides = [1, 1, 1]} : vector<10x18x64xbf16> to vector<8x18x64xbf16>
    %31 = vector.shape_cast %30 : vector<8x18x64xbf16> to vector<144x64xbf16>
    %32 = vector.extract_strided_slice %29 {offsets = [1, 0, 0], sizes = [8, 18, 64], strides = [1, 1, 1]} : vector<10x18x64xbf16> to vector<8x18x64xbf16>
    %33 = vector.shape_cast %32 : vector<8x18x64xbf16> to vector<144x64xbf16>
    %34 = vector.extract_strided_slice %29 {offsets = [2, 0, 0], sizes = [8, 18, 64], strides = [1, 1, 1]} : vector<10x18x64xbf16> to vector<8x18x64xbf16>
    %35 = vector.shape_cast %34 : vector<8x18x64xbf16> to vector<144x64xbf16>
    %cst_13 = arith.constant 0.000000e+00 : bf16
    %36 = vector.broadcast %cst_13 : bf16 to vector<1x64xbf16>
    %37 = vector.extract_strided_slice %31 {offsets = [0, 0], sizes = [143, 64], strides = [1, 1]} : vector<144x64xbf16> to vector<143x64xbf16>
    %38 = tpu.concatenate %36, %37 in 0 : vector<1x64xbf16>, vector<143x64xbf16> -> vector<144x64xbf16>
    %c0_14 = arith.constant 0 : index
    %c0_15 = arith.constant 0 : index
    %c0_16 = arith.constant 0 : index
    %39 = vector.load %arg3[%c0_14, %c0_15, %c0_16] : memref<6x64x128xbf16, #tpu.memory_space<vmem>>, vector<1x64x128xbf16>
    %40 = vector.shape_cast %39 : vector<1x64x128xbf16> to vector<64x128xbf16>
    %cst_17 = arith.constant dense<0.000000e+00> : vector<144x128xf32>
    %41 = tpu.matmul %38, %40, %cst_17 {dimension_numbers = #tpu.dot_dimension_numbers<[1], [0], [0], [1], [0, 0, 1, 1], [], []>} : vector<144x64xbf16>, vector<64x128xbf16>, vector<144x128xf32> -> vector<144x128xf32>
    %c1 = arith.constant 1 : index
    %c0_18 = arith.constant 0 : index
    %c0_19 = arith.constant 0 : index
    %42 = vector.load %arg3[%c1, %c0_18, %c0_19] : memref<6x64x128xbf16, #tpu.memory_space<vmem>>, vector<1x64x128xbf16>
    %43 = vector.shape_cast %42 : vector<1x64x128xbf16> to vector<64x128xbf16>
    %cst_20 = arith.constant dense<0.000000e+00> : vector<144x128xf32>
    %44 = tpu.matmul %31, %43, %cst_20 {dimension_numbers = #tpu.dot_dimension_numbers<[1], [0], [0], [1], [0, 0, 1, 1], [], []>} : vector<144x64xbf16>, vector<64x128xbf16>, vector<144x128xf32> -> vector<144x128xf32>
    %45 = arith.addf %41, %44 : vector<144x128xf32>
    %cst_21 = arith.constant 0.000000e+00 : bf16
    %46 = vector.broadcast %cst_21 : bf16 to vector<1x64xbf16>
    %47 = vector.extract_strided_slice %31 {offsets = [1, 0], sizes = [143, 64], strides = [1, 1]} : vector<144x64xbf16> to vector<143x64xbf16>
    %48 = tpu.concatenate %47, %46 in 0 : vector<143x64xbf16>, vector<1x64xbf16> -> vector<144x64xbf16>
    %c2 = arith.constant 2 : index
    %c0_22 = arith.constant 0 : index
    %c0_23 = arith.constant 0 : index
    %49 = vector.load %arg3[%c2, %c0_22, %c0_23] : memref<6x64x128xbf16, #tpu.memory_space<vmem>>, vector<1x64x128xbf16>
    %50 = vector.shape_cast %49 : vector<1x64x128xbf16> to vector<64x128xbf16>
    %cst_24 = arith.constant dense<0.000000e+00> : vector<144x128xf32>
    %51 = tpu.matmul %48, %50, %cst_24 {dimension_numbers = #tpu.dot_dimension_numbers<[1], [0], [0], [1], [0, 0, 1, 1], [], []>} : vector<144x64xbf16>, vector<64x128xbf16>, vector<144x128xf32> -> vector<144x128xf32>
    %52 = arith.addf %45, %51 : vector<144x128xf32>
    %cst_25 = arith.constant 0.000000e+00 : bf16
    %53 = vector.broadcast %cst_25 : bf16 to vector<1x64xbf16>
    %54 = vector.extract_strided_slice %33 {offsets = [0, 0], sizes = [143, 64], strides = [1, 1]} : vector<144x64xbf16> to vector<143x64xbf16>
    %55 = tpu.concatenate %53, %54 in 0 : vector<1x64xbf16>, vector<143x64xbf16> -> vector<144x64xbf16>
    %c3 = arith.constant 3 : index
    %c0_26 = arith.constant 0 : index
    %c0_27 = arith.constant 0 : index
    %56 = vector.load %arg3[%c3, %c0_26, %c0_27] : memref<6x64x128xbf16, #tpu.memory_space<vmem>>, vector<1x64x128xbf16>
    %57 = vector.shape_cast %56 : vector<1x64x128xbf16> to vector<64x128xbf16>
    %cst_28 = arith.constant dense<0.000000e+00> : vector<144x128xf32>
    %58 = tpu.matmul %55, %57, %cst_28 {dimension_numbers = #tpu.dot_dimension_numbers<[1], [0], [0], [1], [0, 0, 1, 1], [], []>} : vector<144x64xbf16>, vector<64x128xbf16>, vector<144x128xf32> -> vector<144x128xf32>
    %59 = arith.addf %52, %58 : vector<144x128xf32>
    %c0_29 = arith.constant 0 : index
    %c0_30 = arith.constant 0 : index
    %c0_31 = arith.constant 0 : index
    %60 = vector.load %arg4[%c0_29, %c0_30, %c0_31] : memref<6x64x128xbf16, #tpu.memory_space<vmem>>, vector<1x64x128xbf16>
    %61 = vector.shape_cast %60 : vector<1x64x128xbf16> to vector<64x128xbf16>
    %cst_32 = arith.constant dense<0.000000e+00> : vector<144x128xf32>
    %62 = tpu.matmul %55, %61, %cst_32 {dimension_numbers = #tpu.dot_dimension_numbers<[1], [0], [0], [1], [0, 0, 1, 1], [], []>} : vector<144x64xbf16>, vector<64x128xbf16>, vector<144x128xf32> -> vector<144x128xf32>
    %c4 = arith.constant 4 : index
    %c0_33 = arith.constant 0 : index
    %c0_34 = arith.constant 0 : index
    %63 = vector.load %arg3[%c4, %c0_33, %c0_34] : memref<6x64x128xbf16, #tpu.memory_space<vmem>>, vector<1x64x128xbf16>
    %64 = vector.shape_cast %63 : vector<1x64x128xbf16> to vector<64x128xbf16>
    %cst_35 = arith.constant dense<0.000000e+00> : vector<144x128xf32>
    %65 = tpu.matmul %33, %64, %cst_35 {dimension_numbers = #tpu.dot_dimension_numbers<[1], [0], [0], [1], [0, 0, 1, 1], [], []>} : vector<144x64xbf16>, vector<64x128xbf16>, vector<144x128xf32> -> vector<144x128xf32>
    %66 = arith.addf %59, %65 : vector<144x128xf32>
    %c1_36 = arith.constant 1 : index
    %c0_37 = arith.constant 0 : index
    %c0_38 = arith.constant 0 : index
    %67 = vector.load %arg4[%c1_36, %c0_37, %c0_38] : memref<6x64x128xbf16, #tpu.memory_space<vmem>>, vector<1x64x128xbf16>
    %68 = vector.shape_cast %67 : vector<1x64x128xbf16> to vector<64x128xbf16>
    %cst_39 = arith.constant dense<0.000000e+00> : vector<144x128xf32>
    %69 = tpu.matmul %33, %68, %cst_39 {dimension_numbers = #tpu.dot_dimension_numbers<[1], [0], [0], [1], [0, 0, 1, 1], [], []>} : vector<144x64xbf16>, vector<64x128xbf16>, vector<144x128xf32> -> vector<144x128xf32>
    %70 = arith.addf %62, %69 : vector<144x128xf32>
    %cst_40 = arith.constant 0.000000e+00 : bf16
    %71 = vector.broadcast %cst_40 : bf16 to vector<1x64xbf16>
    %72 = vector.extract_strided_slice %33 {offsets = [1, 0], sizes = [143, 64], strides = [1, 1]} : vector<144x64xbf16> to vector<143x64xbf16>
    %73 = tpu.concatenate %72, %71 in 0 : vector<143x64xbf16>, vector<1x64xbf16> -> vector<144x64xbf16>
    %c5 = arith.constant 5 : index
    %c0_41 = arith.constant 0 : index
    %c0_42 = arith.constant 0 : index
    %74 = vector.load %arg3[%c5, %c0_41, %c0_42] : memref<6x64x128xbf16, #tpu.memory_space<vmem>>, vector<1x64x128xbf16>
    %75 = vector.shape_cast %74 : vector<1x64x128xbf16> to vector<64x128xbf16>
    %cst_43 = arith.constant dense<0.000000e+00> : vector<144x128xf32>
    %76 = tpu.matmul %73, %75, %cst_43 {dimension_numbers = #tpu.dot_dimension_numbers<[1], [0], [0], [1], [0, 0, 1, 1], [], []>} : vector<144x64xbf16>, vector<64x128xbf16>, vector<144x128xf32> -> vector<144x128xf32>
    %77 = arith.addf %66, %76 : vector<144x128xf32>
    %c2_44 = arith.constant 2 : index
    %c0_45 = arith.constant 0 : index
    %c0_46 = arith.constant 0 : index
    %78 = vector.load %arg4[%c2_44, %c0_45, %c0_46] : memref<6x64x128xbf16, #tpu.memory_space<vmem>>, vector<1x64x128xbf16>
    %79 = vector.shape_cast %78 : vector<1x64x128xbf16> to vector<64x128xbf16>
    %cst_47 = arith.constant dense<0.000000e+00> : vector<144x128xf32>
    %80 = tpu.matmul %73, %79, %cst_47 {dimension_numbers = #tpu.dot_dimension_numbers<[1], [0], [0], [1], [0, 0, 1, 1], [], []>} : vector<144x64xbf16>, vector<64x128xbf16>, vector<144x128xf32> -> vector<144x128xf32>
    %81 = arith.addf %70, %80 : vector<144x128xf32>
    %cst_48 = arith.constant 0.000000e+00 : bf16
    %82 = vector.broadcast %cst_48 : bf16 to vector<1x64xbf16>
    %83 = vector.extract_strided_slice %35 {offsets = [0, 0], sizes = [143, 64], strides = [1, 1]} : vector<144x64xbf16> to vector<143x64xbf16>
    %84 = tpu.concatenate %82, %83 in 0 : vector<1x64xbf16>, vector<143x64xbf16> -> vector<144x64xbf16>
    %c3_49 = arith.constant 3 : index
    %c0_50 = arith.constant 0 : index
    %c0_51 = arith.constant 0 : index
    %85 = vector.load %arg4[%c3_49, %c0_50, %c0_51] : memref<6x64x128xbf16, #tpu.memory_space<vmem>>, vector<1x64x128xbf16>
    %86 = vector.shape_cast %85 : vector<1x64x128xbf16> to vector<64x128xbf16>
    %cst_52 = arith.constant dense<0.000000e+00> : vector<144x128xf32>
    %87 = tpu.matmul %84, %86, %cst_52 {dimension_numbers = #tpu.dot_dimension_numbers<[1], [0], [0], [1], [0, 0, 1, 1], [], []>} : vector<144x64xbf16>, vector<64x128xbf16>, vector<144x128xf32> -> vector<144x128xf32>
    %88 = arith.addf %81, %87 : vector<144x128xf32>
    %c4_53 = arith.constant 4 : index
    %c0_54 = arith.constant 0 : index
    %c0_55 = arith.constant 0 : index
    %89 = vector.load %arg4[%c4_53, %c0_54, %c0_55] : memref<6x64x128xbf16, #tpu.memory_space<vmem>>, vector<1x64x128xbf16>
    %90 = vector.shape_cast %89 : vector<1x64x128xbf16> to vector<64x128xbf16>
    %cst_56 = arith.constant dense<0.000000e+00> : vector<144x128xf32>
    %91 = tpu.matmul %35, %90, %cst_56 {dimension_numbers = #tpu.dot_dimension_numbers<[1], [0], [0], [1], [0, 0, 1, 1], [], []>} : vector<144x64xbf16>, vector<64x128xbf16>, vector<144x128xf32> -> vector<144x128xf32>
    %92 = arith.addf %88, %91 : vector<144x128xf32>
    %cst_57 = arith.constant 0.000000e+00 : bf16
    %93 = vector.broadcast %cst_57 : bf16 to vector<1x64xbf16>
    %94 = vector.extract_strided_slice %35 {offsets = [1, 0], sizes = [143, 64], strides = [1, 1]} : vector<144x64xbf16> to vector<143x64xbf16>
    %95 = tpu.concatenate %94, %93 in 0 : vector<143x64xbf16>, vector<1x64xbf16> -> vector<144x64xbf16>
    %c5_58 = arith.constant 5 : index
    %c0_59 = arith.constant 0 : index
    %c0_60 = arith.constant 0 : index
    %96 = vector.load %arg4[%c5_58, %c0_59, %c0_60] : memref<6x64x128xbf16, #tpu.memory_space<vmem>>, vector<1x64x128xbf16>
    %97 = vector.shape_cast %96 : vector<1x64x128xbf16> to vector<64x128xbf16>
    %cst_61 = arith.constant dense<0.000000e+00> : vector<144x128xf32>
    %98 = tpu.matmul %95, %97, %cst_61 {dimension_numbers = #tpu.dot_dimension_numbers<[1], [0], [0], [1], [0, 0, 1, 1], [], []>} : vector<144x64xbf16>, vector<64x128xbf16>, vector<144x128xf32> -> vector<144x128xf32>
    %99 = arith.addf %92, %98 : vector<144x128xf32>
    %c0_62 = arith.constant 0 : index
    %c0_63 = arith.constant 0 : index
    %100 = vector.load %arg5[%c0_62, %c0_63] : memref<1x128xf32, #tpu.memory_space<vmem>>, vector<1x128xf32>
    %101 = vector.shape_cast %77 : vector<144x128xf32> to vector<8x18x128xf32>
    %102 = vector.extract_strided_slice %101 {offsets = [0, 1, 0], sizes = [8, 16, 128], strides = [1, 1, 1]} : vector<8x18x128xf32> to vector<8x16x128xf32>
    %103 = vector.shape_cast %100 : vector<1x128xf32> to vector<1x1x128xf32>
    %104 = vector.broadcast %103 : vector<1x1x128xf32> to vector<8x16x128xf32>
    %105 = arith.addf %102, %104 : vector<8x16x128xf32>
    %c0_64 = arith.constant 0 : index
    %c0_65 = arith.constant 0 : index
    %c0_66 = arith.constant 0 : index
    %c0_67 = arith.constant 0 : index
    %c0_68 = arith.constant 0 : index
    %106 = vector.load %arg6[%c0_64, %c0_65, %c0_66, %c0_67, %c0_68] : memref<1x8x2x16x128xf32, #tpu.memory_space<vmem>>, vector<1x8x1x16x128xf32>
    %107 = vector.shape_cast %106 : vector<1x8x1x16x128xf32> to vector<8x16x128xf32>
    %108 = vector.shape_cast %105 : vector<8x16x128xf32> to vector<1x8x1x16x128xf32>
    tpu.vector_store %arg6[%c0_64, %c0_65, %c0_66, %c0_67, %c0_68], %108 {strides = array<i32>} : memref<1x8x2x16x128xf32, #tpu.memory_space<vmem>>, vector<1x8x1x16x128xf32>,
    %109 = vector.shape_cast %99 : vector<144x128xf32> to vector<8x18x128xf32>
    %110 = vector.extract_strided_slice %109 {offsets = [0, 1, 0], sizes = [8, 16, 128], strides = [1, 1, 1]} : vector<8x18x128xf32> to vector<8x16x128xf32>
    %111 = vector.shape_cast %100 : vector<1x128xf32> to vector<1x1x128xf32>
    %112 = vector.broadcast %111 : vector<1x1x128xf32> to vector<8x16x128xf32>
    %113 = arith.addf %110, %112 : vector<8x16x128xf32>
    %c0_69 = arith.constant 0 : index
    %c0_70 = arith.constant 0 : index
    %c1_71 = arith.constant 1 : index
    %c0_72 = arith.constant 0 : index
    %c0_73 = arith.constant 0 : index
    %114 = vector.load %arg6[%c0_69, %c0_70, %c1_71, %c0_72, %c0_73] : memref<1x8x2x16x128xf32, #tpu.memory_space<vmem>>, vector<1x8x1x16x128xf32>
    %115 = vector.shape_cast %114 : vector<1x8x1x16x128xf32> to vector<8x16x128xf32>
    %116 = vector.shape_cast %113 : vector<8x16x128xf32> to vector<1x8x1x16x128xf32>
    tpu.vector_store %arg6[%c0_69, %c0_70, %c1_71, %c0_72, %c0_73], %116 {strides = array<i32>} : memref<1x8x2x16x128xf32, #tpu.memory_space<vmem>>, vector<1x8x1x16x128xf32>,
    return
  }
  func.func @transform_0(%arg0: i32, %arg1: i32) -> (i32, i32, i32, i32) {
    %c0_i32 = arith.constant 0 : i32
    %c0_i32_0 = arith.constant 0 : i32
    %c0_i32_1 = arith.constant 0 : i32
    %c0_i32_2 = arith.constant 0 : i32
    return %arg0, %c0_i32, %c0_i32_0, %c0_i32_1 : i32, i32, i32, i32
  }
  func.func @transform_1(%arg0: i32, %arg1: i32) -> (i32, i32, i32) {
    %c0_i32 = arith.constant 0 : i32
    %c0_i32_0 = arith.constant 0 : i32
    %c0_i32_1 = arith.constant 0 : i32
    %c0_i32_2 = arith.constant 0 : i32
    return %c0_i32, %c0_i32_0, %c0_i32_1 : i32, i32, i32
  }
  func.func @transform_2(%arg0: i32, %arg1: i32) -> (i32, i32, i32) {
    %c0_i32 = arith.constant 0 : i32
    %c0_i32_0 = arith.constant 0 : i32
    %c0_i32_1 = arith.constant 0 : i32
    %c0_i32_2 = arith.constant 0 : i32
    return %c0_i32, %c0_i32_0, %c0_i32_1 : i32, i32, i32
  }
  func.func @transform_3(%arg0: i32, %arg1: i32) -> (i32, i32) {
    %c0_i32 = arith.constant 0 : i32
    %c0_i32_0 = arith.constant 0 : i32
    %c0_i32_1 = arith.constant 0 : i32
    return %c0_i32, %c0_i32_0 : i32, i32
  }
  func.func @transform_4(%arg0: i32, %arg1: i32) -> (i32, i32, i32, i32, i32) {
    %c0_i32 = arith.constant 0 : i32
    %c0_i32_0 = arith.constant 0 : i32
    %c0_i32_1 = arith.constant 0 : i32
    %c0_i32_2 = arith.constant 0 : i32
    return %arg0, %arg1, %c0_i32, %c0_i32_0, %c0_i32_1 : i32, i32, i32, i32, i32
  }
}

</mosaic_0001>

<bundles_post_ra>
// kernel: upsample.1
= control target key start
LH: loop header
LB: loop body
LE: loop exit
PB: predicated region body
PF: predicated region fallthrough
CT: control target
= control target key end

     0   :  { %s7605_s15 = smov 0   ;;  %s7607_s16 = smov 0   ;;  %s10174_s0 = inlined_call_operand.vmem [shape: f32[2,16,16,64], index: 0, kind: input, shape index: {}]   ;;  %s10175_s1 = inlined_call_operand.vmem [shape: bf16[6,64,128], index: 1, kind: input, shape index: {}]   ;;  %s10176_s2 = inlined_call_operand.vmem [shape: bf16[6,64,128], index: 2, kind: input, shape index: {}]   ;;  %s10177_s3 = inlined_call_operand.vmem [shape: f32[1,128], index: 3, kind: input, shape index: {}]   ;;  %s10178_s4 = inlined_call_operand.vmem [shape: f32[2,16,2,16,128], index: 4, kind: output, shape index: {}]  }
   0x1   :  { %s7609_s17 = smov 0   ;;  %s7611_s18 = smov 0  }
   0x2   :  { %s7613_s19 = smov 0  }
   0x3 LB: > { %s23_s20 = sadd.s32 1, %s7566_s17  ;;  %s26_s21 = sadd.s32 1, %s7570_s18  ;;  %s7574_s19 = sphi %s7613_s19, %s14_s19   ;;  %s7570_s18 = sphi %s7611_s18, %s10339_s18   ;;  %s7566_s17 = sphi %s7609_s17, %s10338_s17   ;;  %s7562_s16 = sphi %s7607_s16, %s10337_s16   ;;  %s7558_s15 = sphi %s7605_s15, %s10336_s15  }
   0x4   : > { %p24_p0 = scmp.ge.s32.totalorder %s23_s20, 2  ;;  %p6449_p1 = scmp.ge.s32.totalorder %s7574_s19, 1 }
   0x5   : > { %p176_p2 = scmp.lt.s32.totalorder %s7574_s19, 5 }
   0x6   : > { %s10341_s20 = smov (%p24_p0, %s23_s20), 0  ;;  %s10343_s21 = smov (!%p24_p0, %s26_s21), %s7570_s18 }
   0x7   : > { %p177_p3 = pnand %p6449_p1, %p176_p2  ;;  %p28_p4 = scmp.ge.s32.totalorder %s10343_s21, 2 }
   0x9   : > { %s10345_s21 = smov (%p28_p4, %s10343_s21), 0  ;;  %180 = sbr.rel (%p177_p3) target bundleno = 703 (0x2bf), region = 36 }
   0xe   : > { %v7488_v0 = vld [vmem:[%s10175_s1 + $0x38] sm:$0xff]   ;;  %v10188_v1 = vmov 0.0   ;;  %v7489_v2 = vld [vmem:[%s10175_s1 + $0x30] sm:$0xff]   ;;  %vm7577_vm0 = vmmov 0   ;;  %p207_p5 = scmp.lt.s32.totalorder %s7562_s16, 1  ;;  %s7655_s28 = sshll.u32 %s7558_s15, 3  ;;  %v410_v10 = vlaneseq }
   0xf   : > { %6916 = vmatprep.subr.bf16.mxu0 %v10188_v1  ;;  %6960 = vmatprep.subr.bf16.mxu1 %v10188_v1  ;;  %v7490_v3 = vld [vmem:[%s10175_s1 + $0x18] sm:$0xff]   ;;  %v7492_v4 = vld [vmem:[%s10175_s1 + $0x10] sm:$0xff]   ;;  %p215_p6 = scmp.lt.s32.totalorder %s7655_s28, 15  ;;  %v7491_v5 = vld [vmem:[%s10175_s1 + $0x28] sm:$0xff]   ;;  %s6751_s22 = sshll.u32 %s7558_s15, 7  ;;  %vm367_vm2 = vcmask 1040384  }
  0x10   : > { %6917 = vmatpush3.bf16.msra.mxu0 %v7488_v0  ;;  %6924 = vmatprep.mubr.msk.bf16.mxu0 %vm7577_vm0, %v10188_v1  ;;  %s10347_s16 = smov (!%p207_p5, %s7562_s16), 1  ;;  %v7494_v6 = vld [vmem:[%s10175_s1 + $0x8] sm:$0xff]   ;;  %s6458_s23 = sadd.s32 4294967295, %s7655_s28  ;;  %v7493_v7 = vld [vmem:[%s10175_s1 + $0x20] sm:$0xff]   ;;  %v7578_v8 = vmov 1966171168  }
  0x11   : > { %6918 = vmatprep.subr.bf16.mxu0 %v10188_v1  ;;  %6968 = vmatprep.mubr.msk.bf16.mxu1 %vm7577_vm0, %v10188_v1  ;;  %s6750_s7 = sshll.u32 %s10347_s16, 8  ;;  %s6454_s11 = sshll.u32 %s10347_s16, 6  ;;  %v408_v9 = vunpack.c.l.s4 %v7578_v8  ;;  %v7495_v11 = vld [vmem:[%s10175_s1] sm:$0xff]   ;;  %vm368_vm1 = vsmask.f32 256  ;;  %v7708_v19 = vshrl.u32 %v410_v10, 7 }
  0x12   : > { %6961 = vmatpush3.bf16.msra.mxu1 %v7490_v3  ;;  %s7672_s10 = scalar_lea.vmem %s10174_s0, %s6750_s7  ;;  %p7690_p7 = scmp.gt.s32.totalorder %s6458_s23, 0  ;;  %vm7718_vm3 = vmand %vm367_vm2, %vm368_vm1  ;;  %vm1595_vm5 = vcmask 523264   ;;  %vm1875_vm6 = vsmask.f32 7424  ;;  %vm1903_vm7 = vcmask 1047552   ;;  %v7532_v27 = vld [vmem:[%s10176_s2 + $0x88] sm:$0xff]  }
  0x13   : > { %6962 = vmatprep.subr.bf16.mxu1 %v10188_v1  ;;  %s216_s14 = scalar_select %p215_p6, %s7655_s28, 15  ;;  %v409_v18 = vunpack.c.0.s8 %v408_v9  ;;  %10228 = vst [vmem:[#allocation2_spill] sm:$0xff] %v7708_v19  ;;  %vm8814_vm8 = vmand %vm1903_vm7, %vm1875_vm6  ;;  %vm4888_vm10 = vcmask 1042434   ;;  %vm4890_vm12 = vcmask 1044484   ;;  %vm4892_vm14 = vcmask 1046534  }
  0x14   : > { %6919 = vmatpush3.bf16.msra.mxu0 %v7489_v2  ;;  %s7685_s27 = scalar_lea.vmem %s7672_s10, %s6751_s22  ;;  %s7699_s5 = sadd.s32 8, %s7655_s28  ;;  %vm4889_vm11 = vmor %vm367_vm2, %vm4888_vm10 }
  0x15   : > { %6920 = vmatprep.subr.bf16.mxu0 %v10188_v1  ;;  %s6453_s26 = sshll.u32 %s216_s14, 2  ;;  %v227_v12 = vld [vmem:[%s7685_s27] sm:$0xff]  ;;  %v228_v13 = vld [vmem:[%s7685_s27 + $0x8] sm:$0xff]  ;;  %v229_v14 = vld [vmem:[%s7685_s27 + $0x10] sm:$0xff]  ;;  %p260_p8 = scmp.lt.s32.totalorder %s7699_s5, 15  ;;  %v7729_v32 = vsub.s32 %v409_v18, %v7708_v19 }
  0x16   : > { %6963 = vmatpush3.bf16.msra.mxu1 %v7492_v4  ;;  %s7688_s16 = sadd.s32 %s6454_s11, %s6453_s26  ;;  %v230_v15 = vld [vmem:[%s7685_s27 + $0x18] sm:$0xff]  ;;  %v243_v16 = vpack.c.bf16 %v228_v13, %v227_v12  ;;  %s10349_s23 = smov (!%p7690_p7, %s6458_s23), 0  ;;  %v231_v20 = vld [vmem:[%s7685_s27 + $0x20] sm:$0xff]  ;;  %v232_v21 = vld [vmem:[%s7685_s27 + $0x28] sm:$0xff] }
  0x17   : > { %6964 = vmatprep.subr.bf16.mxu1 %v10188_v1  ;;  %v244_v17 = vpack.c.bf16 %v230_v15, %v229_v14  ;;  %s261_s6 = scalar_select %p260_p8, %s7699_s5, 15  ;;  %v245_v26 = vpack.c.bf16 %v232_v21, %v231_v20  ;;  %vm4891_vm13 = vmor %vm4889_vm11, %vm4890_vm12 }
  0x18   : > { %6921 = vmatpush3.bf16.msra.mxu0 %v7491_v5  ;;  %v285_v22 = vshrl.u32 %v243_v16, 16  ;;  %v288_v23 = vshll.u32 %v243_v16, 16  ;;  %s6459_s7 = sshll.u32 %s10349_s23, 4  ;;  %p267_p9 = scmp.gt.s32.totalorder %s7655_s28, 0  ;;  %vm9646_vm15 = vmor %vm4891_vm13, %vm4892_vm14 }
  0x19   : > { %6922 = vmatprep.subr.bf16.mxu0 %v10188_v1  ;;  %v292_v24 = vshrl.u32 %v244_v17, 16  ;;  %v295_v25 = vshll.u32 %v244_v17, 16  ;;  %s255_s8 = scalar_lea.vmem %s7672_s10, %s6459_s7  ;;  %s6460_s9 = sshll.u32 %s261_s6, 4  ;;  %v299_v33 = vshrl.u32 %v245_v26, 16  ;;  %v302_v34 = vshll.u32 %v245_v26, 16 }
  0x1a   : > { %6965 = vmatpush3.bf16.msra.mxu1 %v7494_v6  ;;  %v287_v28 = vrot.slane %v285_v22, 7  ;;  %v256_v30 = vld [vmem:[%s255_s8] sm:$0xff]  ;;  %v257_v31 = vld [vmem:[%s255_s8 + $0x8] sm:$0xff]  ;;  %s7726_s11 = scalar_lea.vmem %s7672_s10, %s6460_s9  ;;  %p272_p10 = scmp.lt.s32.totalorder %s7699_s5, 16 }
  0x1b   : > { %6966 = vmatprep.subr.bf16.mxu1 %v10188_v1  ;;  %v7723_v29 = vrot.slane %v292_v24, 7  ;;  %v258_v35 = vpack.c.bf16 %v257_v31, %v256_v30  ;;  %s268_s12 = scalar_select %p267_p9, 1, 0  ;;  %v7737_v40 = vrot.slane %v299_v33, 7 }
  0x1c   : > { %6923 = vmatpush3.bf16.msra.mxu0 %v7493_v7  ;;  %v290_v36 = vor.u32 %v288_v23, %v287_v28  ;;  %v381_v38 = vsel %vm7718_vm3, %v287_v28, 0  ;;  %s273_s6 = scalar_select %p272_p10, 1, 0 }
  0x1d   : > { %7004 = vmatprep.subr.bf16.mxu0 %v10188_v1  ;;  %v297_v37 = vor.u32 %v295_v25, %v7723_v29  ;;  %v524_v39 = vrot.slane %v381_v38, %v7729_v32  ;;  %v269_v41 = vstv %s268_s12  ;;  %v382_v44 = vsel %vm7718_vm3, %v7723_v29, 0  ;;  %s6455_s25 = sshll.u32 %s7688_s16, 3 }
  0x1e   : > { %6967 = vmatpush3.bf16.msra.mxu1 %v7495_v11  ;;  %v371_v42 = vsel %vm7718_vm3, 0, %v290_v36  ;;  %vm270_vm4 = vcmp.eq.s32.totalorder %v269_v41, 1  ;;  %v7752_v51 = vor.u32 %v302_v34, %v7737_v40  ;;  %s9714_s15 = scalar_lea.vmem %s10178_s4, %s6455_s25 }
  0x1f   : > { %7048 = vmatprep.subr.bf16.mxu1 %v10188_v1  ;;  %v372_v43 = vsel %vm7718_vm3, 0, %v297_v37  ;;  %v469_v45 = vcombine.high %v371_v42, %v371_v42  ;;  %v476_v46 = vrot.slane %v371_v42, %v7729_v32  ;;  %v7748_v47 = vrot.slane %v524_v39, %v7729_v32 }
  0x20   : > { %v271_v48 = vsel %vm270_vm4, %v258_v35, 0  ;;  %v532_v49 = vcombine.high %v372_v43, %v372_v43  ;;  %v539_v50 = vrot.slane %v372_v43, %v7729_v32 }
  0x21   : > { %v278_v52 = vshrl.u32 %v271_v48, 16  ;;  %v281_v53 = vshll.u32 %v271_v48, 16  ;;  %v483_v54 = vrot.slane %v469_v45, %v7729_v32  ;;  %v484_v55 = vcombine.high %v476_v46, %v476_v46 }
  0x22   : > { %v7756_v56 = vrot.slane %v476_v46, %v7729_v32  ;;  %v546_v57 = vrot.slane %v532_v49, %v7729_v32  ;;  %v547_v58 = vcombine.high %v539_v50, %v539_v50  ;;  %v7760_v59 = vrot.slane %v539_v50, %v7729_v32 }
  0x23   : > { %v280_v60 = vrot.slane %v278_v52, 7  ;;  %v485_v61 = vcombine.high %v483_v54, %v483_v54  ;;  %v7763_v62 = vrot.slane %v483_v54, %v7729_v32  ;;  %v7766_v63 = vrot.slane %v484_v55, %v7729_v32 }
  0x24   : > { %v514_v0 = vcombine.high %v7756_v56, %v7756_v56  ;;  %v548_v2 = vcombine.high %v546_v57, %v546_v57  ;;  %v7771_v3 = vrot.slane %v546_v57, %v7729_v32  ;;  %v7774_v4 = vrot.slane %v547_v58, %v7729_v32 }
  0x25   : > { %v283_v5 = vor.u32 %v281_v53, %v280_v60  ;;  %v380_v6 = vsel %vm7718_vm3, %v280_v60, 0  ;;  %v7779_v7 = vrot.slane %v485_v61, %v7729_v32  ;;  %v515_v8 = vcombine.high %v7763_v62, %v7763_v62 }
  0x26   : > { %v461_v9 = vrot.slane %v380_v6, %v7729_v32  ;;  %v516_v10 = vcombine.high %v7766_v63, %v7766_v63  ;;  %v1090_v11 = vcombine.low %v7766_v63, %v514_v0  ;;  %v7788_v12 = vrot.slane %v548_v2, %v7729_v32  ;;  %v233_v0 = vld [vmem:[%s7685_s27 + $0x30] sm:$0xff] }
  0x27   : > { %v370_v13 = vsel %vm7718_vm3, 0, %v283_v5  ;;  %v1092_v14 = vcombine.low %v7779_v7, %v515_v8  ;;  %v517_v15 = vcombine.high %v7779_v7, %v7779_v7  ;;  %v1139_v16 = vcombine.low %v7760_v59, %v7774_v4 }
  0x28   : > { %v406_v17 = vcombine.high %v370_v13, %v370_v13  ;;  %v413_v18 = vrot.slane %v370_v13, %v7729_v32  ;;  %v468_v20 = vrot.slane %v461_v9, %v7729_v32  ;;  %v1091_v21 = vcombine.low %v516_v10, %v7763_v62  ;;  %v234_v13 = vld [vmem:[%s7685_s27 + $0x38] sm:$0xff] }
  0x29   : > { %v1106_v22 = vrot.slane %v1090_v11, %v7729_v32  ;;  %v1120_v23 = vrot.slane %v1092_v14, %v7729_v32  ;;  %v1138_v24 = vcombine.low %v517_v15, %v7748_v47  ;;  %v6463_v25 = vcombine.high %v7760_v59, %v7774_v4 }
  0x2a   : > { %v420_v26 = vrot.slane %v406_v17, %v7729_v32  ;;  %v421_v28 = vcombine.high %v413_v18, %v413_v18  ;;  %v429_v30 = vrot.slane %v413_v18, %v7729_v32  ;;  %v1089_v31 = vcombine.low %v468_v20, %v7756_v56 }
  0x2b   : > { %v1113_v33 = vrot.slane %v1091_v21, %v7729_v32  ;;  %v1141_v34 = vcombine.low %v7771_v3, %v7788_v12  ;;  %v1148_v35 = vrot.slane %v1138_v24, %v7729_v32  ;;  %v1155_v36 = vrot.slane %v1139_v16, %v7729_v32 }
  0x2c   : > { %v422_v37 = vcombine.high %v420_v26, %v420_v26  ;;  %v436_v38 = vrot.slane %v420_v26, %v7729_v32  ;;  %v443_v39 = vrot.slane %v421_v28, %v7729_v32  ;;  %v1099_v41 = vrot.slane %v1089_v31, %v7729_v32 }
  0x2d   : > { %v1122_v42 = vcombine.low %v1113_v33, %v1120_v23  ;;  %v1162_v43 = vrot.slane %v6463_v25, %v7729_v32  ;;  %v7818_v45 = vrot.slane %v1141_v34, %v7729_v32  ;;  %v1170_v46 = vcombine.low %v1148_v35, %v1155_v36  ;;  %v236_v23 = vld [vmem:[%s7685_s27 + $0x48] sm:$0xff] }
  0x2e   : > { %v450_v48 = vrot.slane %v422_v37, %v7729_v32  ;;  %v1040_v49 = vcombine.low %v429_v30, %v443_v39  ;;  %v6461_v50 = vcombine.high %v429_v30, %v443_v39  ;;  %v1121_v52 = vcombine.low %v1099_v41, %v1106_v22 }
  0x2f   : > { %v1136_v53 = vrot.slane %v1122_v42, %v7729_v32  ;;  %v1171_v54 = vcombine.low %v1162_v43, %v7818_v45  ;;  %v1178_v55 = vrot.slane %v1170_v46, %v7729_v32  ;;  %v3602_v6 = vcombine.low %v1155_v36, %v1162_v43 }
  0x30   : > { %v1042_v57 = vcombine.low %v436_v38, %v450_v48  ;;  %v6462_v58 = vcombine.high %v436_v38, %v450_v48  ;;  %v1050_v60 = vrot.slane %v1040_v49, %v7729_v32  ;;  %v1057_v61 = vrot.slane %v6461_v50, %v7729_v32  ;;  %v7498_v38 = vld [vmem:[%s10175_s1 + $0x50] sm:$0xff]  }
  0x31   : > { %v1129_v2 = vrot.slane %v1121_v52, %v7729_v32  ;;  %v1185_v5 = vrot.slane %v1171_v54, %v7729_v32  ;;  %v373_v11 = vsel %vm7718_vm3, 0, %v7752_v51  ;;  %v587_v16 = vrot.slane %v382_v44, %v7729_v32  ;;  %v235_v51 = vld [vmem:[%s7685_s27 + $0x40] sm:$0xff]  ;;  %v7496_v44 = vld [vmem:[%s10175_s1 + $0x58] sm:$0xff]  }
  0x32   : > { %v1064_v8 = vrot.slane %v1042_v57, %v7729_v32  ;;  %v1071_v9 = vrot.slane %v6462_v58, %v7729_v32  ;;  %v1072_v10 = vcombine.low %v1050_v60, %v1057_v61  ;;  %v595_v20 = vcombine.high %v373_v11, %v373_v11 }
  0x33   : > { %v7835_v14 = vcombine.low %v1129_v2, %v1136_v53  ;;  %v7837_v15 = vcombine.low %v1178_v55, %v1185_v5  ;;  %v246_v22 = vpack.c.bf16 %v234_v13, %v233_v0  ;;  %v602_v25 = vrot.slane %v373_v11, %v7729_v32 }
  0x34   : > { %v1073_v17 = vcombine.low %v1064_v8, %v1071_v9  ;;  %v1080_v18 = vrot.slane %v1072_v10, %v7729_v32  ;;  %v609_v26 = vrot.slane %v595_v20, %v7729_v32  ;;  %v6464_v29 = vcombine.high %v7771_v3, %v7788_v12 }
  0x35   : > { %v10183_v21 = vshrl.u32 %v7835_v14, 16  ;;  %v10185_v30 = vshll.u32 %v7835_v14, 16  ;;  %v10181_v31 = vshrl.u32 %v7837_v15, 16  ;;  %v7863_v33 = vrot.slane %v587_v16, %v7729_v32 }
  0x36   : > { %v1087_v24 = vrot.slane %v1073_v17, %v7729_v32  ;;  %v610_v35 = vcombine.high %v602_v25, %v602_v25  ;;  %v7866_v36 = vrot.slane %v602_v25, %v7729_v32  ;;  %v3610_v37 = vrot.slane %v3602_v6, %v7729_v32 }
  0x37   : > { %v7858_v28 = vrot.slane %v10183_v21, 7  ;;  %v7873_v39 = vrot.slane %v609_v26, %v7729_v32  ;;  %v1197_v41 = vrot.slane %v6464_v29, %v7729_v32  ;;  %v7876_v42 = vpack.c.bf16 %v236_v23, %v235_v51 }
  0x38   : > { %v1088_v34 = vcombine.low %v1080_v18, %v1087_v24  ;;  %v7880_v48 = vrot.slane %v610_v35, %v7729_v32  ;;  %v640_v49 = vcombine.high %v7866_v36, %v7866_v36  ;;  %v10182_v50 = vshll.u32 %v7837_v15, 16 }
  0x39   : > { %v1188_v52 = vcombine.low %v7863_v33, %v7866_v36  ;;  %v3603_v53 = vcombine.low %v7818_v45, %v1197_v41  ;;  %v306_v54 = vshrl.u32 %v246_v22, 16  ;;  %v309_v5 = vshll.u32 %v246_v22, 16  ;;  %v7497_v45 = vld [vmem:[%s10175_s1 + $0x78] sm:$0xff]  }
  0x3a   : > { %6925 = vmatmul.mubr.msk.bf16.vlgmr.msra.gmra.mxu0 %vm1595_vm5, %v1088_v34  ;;  %v1482_v43 = vshrl.u32 %v1088_v34, 16  ;;  %v1485_v46 = vshll.u32 %v1088_v34, 16  ;;  %v642_v58 = vcombine.high %v7880_v48, %v7880_v48  ;;  %v1189_v60 = vcombine.low %v7880_v48, %v640_v49 }
  0x3b   : > { %7005 = vmatpush3.bf16.msra.mxu0 %v7496_v44  ;;  %6928 = vmatprep.mubr.msk.bf16.mxu0 %vm7577_vm0, %v10188_v1  ;;  %v7895_v61 = vrot.slane %v1188_v52, %v7729_v32  ;;  %v3617_v0 = vrot.slane %v3603_v53, %v7729_v32  ;;  %v308_v2 = vrot.slane %v306_v54, 7  ;;  %v1494_v9 = vor.u32 %v10185_v30, %v7858_v28  ;;  %v7499_v44 = vld [vmem:[%s10175_s1 + $0x70] sm:$0xff]  }
  0x3c   : > { %v1484_v55 = vrot.slane %v1482_v43, 7  ;;  %v1876_v57 = vrot.slane %v1485_v46, 1  ;;  %7006 = vmatprep.subr.bf16.mxu0 %v10188_v1  ;;  %v1190_v10 = vcombine.low %v642_v58, %v7873_v39  ;;  %v7908_v11 = vrot.slane %v1189_v60, %v7729_v32 }
  0x3d   : > { %10231 = vst [vmem:[#allocation3_spill] sm:$0xff] %v7895_v61  ;;  %v1219_v13 = vcombine.low %v1197_v41, %v7895_v61  ;;  %v7911_v16 = vcombine.low %v3610_v37, %v3617_v0  ;;  %v311_v17 = vor.u32 %v309_v5, %v308_v2  ;;  %v383_v22 = vsel %vm7718_vm3, %v7737_v40, 0  ;;  %v7500_v40 = vld [vmem:[%s10175_s1 + $0x48] sm:$0xff]   ;;  %v7502_v0 = vld [vmem:[%s10175_s1 + $0x40] sm:$0xff]  }
  0x3e   : > { %v1487_v6 = vor.u32 %v1485_v46, %v1484_v55  ;;  %v7898_v8 = vor.u32 %v1876_v57, %v1482_v43  ;;  %10232 = vst [vmem:[#allocation4_spill] sm:$0xff] %v7908_v11  ;;  %v7916_v20 = vrot.slane %v1190_v10, %v7729_v32  ;;  %v611_v51 = vcombine.high %v609_v26, %v609_v26 }
  0x3f   : > { %7007 = vmatpush3.bf16.msra.mxu0 %v7498_v38  ;;  %10233 = vst [vmem:[#allocation5_spill] sm:$0xff] %v7911_v16  ;;  %v1227_v23 = vrot.slane %v1219_v13, %v7729_v32  ;;  %v374_v25 = vsel %vm7718_vm3, 0, %v311_v17  ;;  %v641_v29 = vcombine.high %v7873_v39, %v7873_v39  ;;  %v650_v35 = vrot.slane %v383_v22, %v7729_v32 }
  0x40   : > { %v1553_v18 = vsel %vm7718_vm3, 0, %v1487_v6  ;;  %10234 = vst [vmem:[#allocation6_spill] sm:$0xff] %v7916_v20  ;;  %7008 = vmatprep.subr.bf16.mxu0 %v10188_v1  ;;  %v1220_v26 = vcombine.low %v7908_v11, %v7916_v20  ;;  %v7941_v34 = vrot.slane %v611_v51, %v7729_v32  ;;  %v313_v37 = vshrl.u32 %v7876_v42, 16 }
  0x41   : > { %6969 = vmatmul.mubr.msk.bf16.vlgmr.msra.gmra.mxu1 %vm1595_vm5, %v1553_v18  ;;  %v7951_v38 = vrot.slane %v10181_v31, 7  ;;  %v665_v41 = vrot.slane %v374_v25, %v7729_v32  ;;  %v316_v43 = vshll.u32 %v7876_v42, 16  ;;  %v384_v46 = vsel %vm7718_vm3, %v308_v2, 0  ;;  %v240_v31 = vld [vmem:[%s7685_s27 + $0x68] sm:$0xff] }
  0x42   : > { %7049 = vmatpush3.bf16.msra.mxu1 %v7497_v45  ;;  %6929 = vmatmul.mubr.msk.bf16.gmra.mxu0 %vm1595_vm5, %v7835_v14  ;;  %v1234_v49 = vrot.slane %v1220_v26, %v7729_v32  ;;  %v643_v52 = vcombine.high %v7941_v34, %v7941_v34  ;;  %v7962_v53 = vrot.slane %v650_v35, %v7729_v32  ;;  %v7968_v42 = vrot.slane %v313_v37, 7 }
  0x43   : > { %6972 = vmatprep.mubr.msk.bf16.mxu1 %vm7577_vm0, %v10188_v1  ;;  %6932 = vmatprep.mubr.msk.bf16.mxu0 %vm7577_vm0, %v10188_v1  ;;  %v1236_v54 = vcombine.low %v7941_v34, %v641_v29  ;;  %v673_v57 = vcombine.high %v665_v41, %v665_v41  ;;  %v7966_v58 = vrot.slane %v665_v41, %v7729_v32  ;;  %v237_v41 = vld [vmem:[%s7685_s27 + $0x50] sm:$0xff] }
  0x44   : > { %7050 = vmatprep.subr.bf16.mxu1 %v10188_v1  ;;  %v658_v60 = vcombine.high %v374_v25, %v374_v25  ;;  %7009 = vmatpush3.bf16.msra.mxu0 %v7500_v40  ;;  %v1495_v2 = vsel %vm368_vm1, %v1484_v55, %v1494_v9  ;;  %v7974_v5 = vcombine.low %v1227_v23, %v1234_v49  ;;  %v7501_v23 = vld [vmem:[%s10175_s1 + $0x68] sm:$0xff]  }
  0x45   : > { %v1237_v6 = vcombine.low %v643_v52, %v7962_v53  ;;  %v7978_v45 = vrot.slane %v1236_v54, %v7729_v32  ;;  %v7981_v10 = vrot.slane %v673_v57, %v7729_v32  ;;  %v318_v17 = vor.u32 %v316_v43, %v7968_v42  ;;  %7010 = vmatprep.subr.bf16.mxu0 %v10188_v1  ;;  %v238_v43 = vld [vmem:[%s7685_s27 + $0x58] sm:$0xff] }
  0x46   : > { %7051 = vmatpush3.bf16.msra.mxu1 %v7499_v44  ;;  %v672_v18 = vrot.slane %v658_v60, %v7729_v32  ;;  %v10179_v55 = vshrl.u32 %v7974_v5, 16  ;;  %v713_v51 = vrot.slane %v384_v46, %v7729_v32  ;;  %v1502_v26 = vor.u32 %v10182_v50, %v7951_v38 }
  0x47   : > { %10235 = vst [vmem:[#allocation7_spill] sm:$0xff] %v7978_v45  ;;  %7052 = vmatprep.subr.bf16.mxu1 %v10188_v1  ;;  %v7990_v9 = vrot.slane %v1237_v6, %v7729_v32  ;;  %v1238_v25 = vcombine.low %v7966_v58, %v7981_v10  ;;  %v6465_v29 = vcombine.high %v7966_v58, %v7981_v10  ;;  %v8006_v40 = vsel %vm7718_vm3, 0, %v318_v17  ;;  %v7503_v6 = vld [vmem:[%s10175_s1 + $0x60] sm:$0xff]  }
  0x48   : > { %7011 = vmatpush3.bf16.msra.mxu0 %v7502_v0  ;;  %v10180_v44 = vshll.u32 %v7974_v5, 16  ;;  %v674_v37 = vcombine.high %v672_v18, %v672_v18  ;;  %v8024_v46 = vrot.slane %v10179_v55, 7  ;;  %v8033_v54 = vrot.slane %v672_v18, %v7729_v32 }
  0x49   : > { %10236 = vst [vmem:[#allocation8_spill] sm:$0xff] %v7990_v9  ;;  %6973 = vmatmul.mubr.msk.bf16.gmra.mxu1 %vm1595_vm5, %v1495_v2  ;;  %v1268_v35 = vcombine.low %v7978_v45, %v7990_v9  ;;  %v8027_v49 = vrot.slane %v1238_v25, %v7729_v32  ;;  %v8030_v52 = vrot.slane %v6465_v29, %v7729_v32 }
  0x4a   : > { %6933 = vmatmul.mubr.msk.bf16.gmra.mxu0 %vm1595_vm5, %v7837_v15  ;;  %6976 = vmatprep.mubr.msk.bf16.mxu1 %vm7577_vm0, %v10188_v1  ;;  %v8037_v60 = vrot.slane %v674_v37, %v7729_v32  ;;  %v720_v0 = vrot.slane %v713_v51, %v7729_v32  ;;  %v728_v2 = vrot.slane %v8006_v40, %v7729_v32 }
  0x4b   : > { %6936 = vmatprep.mubr.msk.bf16.mxu0 %vm7577_vm0, %v10188_v1  ;;  %10237 = vst [vmem:[#allocation9_spill] sm:$0xff] %v8027_v49  ;;  %10238 = vst [vmem:[#allocation10_spill] sm:$0xff] %v8030_v52  ;;  %v1276_v57 = vrot.slane %v1268_v35, %v7729_v32  ;;  %7053 = vmatpush3.bf16.msra.mxu1 %v7501_v23  ;;  %v1269_v17 = vcombine.low %v8027_v49, %v8030_v52 }
  0x4c   : > { %v248_v25 = vpack.c.bf16 %v238_v43, %v237_v41  ;;  %7054 = vmatprep.subr.bf16.mxu1 %v10188_v1  ;;  %7092 = vmatprep.subr.bf16.mxu0 %v10188_v1  ;;  %v1503_v51 = vsel %vm368_vm1, %v7858_v28, %v1502_v26  ;;  %v706_v23 = vcombine.high %v8037_v60, %v8037_v60 }
  0x4d   : > { %v736_v29 = vcombine.high %v728_v2, %v728_v2  ;;  %v8056_v35 = vrot.slane %v728_v2, %v7729_v32  ;;  %v1510_v37 = vor.u32 %v10180_v44, %v8024_v46  ;;  %v1283_v41 = vrot.slane %v1269_v17, %v7729_v32  ;;  %v239_v44 = vld [vmem:[%s7685_s27 + $0x60] sm:$0xff] }
  0x4e   : > { %v1285_v43 = vcombine.low %v8033_v54, %v8037_v60  ;;  %v6466_v18 = vcombine.high %v8033_v54, %v8037_v60  ;;  %v8072_v22 = vcombine.low %v706_v23, %v720_v0  ;;  %v2138_v45 = vcombine.low %v7748_v47, %v7760_v59 }
  0x4f   : > { %v8067_v28 = vrot.slane %v736_v29, %v7729_v32  ;;  %v766_v26 = vcombine.high %v8056_v35, %v8056_v35  ;;  %v1287_v2 = vcombine.low %v720_v0, %v8056_v35  ;;  %7055 = vmatpush3.bf16.msra.mxu1 %v7503_v6  ;;  %v8075_v17 = vcombine.low %v1276_v57, %v1283_v41 }
  0x50   : > { %v8078_v24 = vrot.slane %v1285_v43, %v7729_v32  ;;  %v8081_v55 = vrot.slane %v6466_v18, %v7729_v32  ;;  %v320_v29 = vshrl.u32 %v248_v25, 16  ;;  %7136 = vmatprep.subr.bf16.mxu1 %v10188_v1  ;;  %v323_v6 = vshll.u32 %v248_v25, 16 }
  0x51   : > { %6977 = vmatmul.mubr.msk.bf16.gmra.mxu1 %vm1595_vm5, %v1503_v51  ;;  %v1288_v57 = vcombine.low %v8067_v28, %v766_v26  ;;  %v8090_v0 = vrot.slane %v1287_v2, %v7729_v32  ;;  %v385_v18 = vsel %vm7718_vm3, %v7968_v42, 0  ;;  %v10184_v51 = vshrl.u32 %v8075_v17, 16 }
  0x52   : > { %10239 = vst [vmem:[#allocation11_spill] sm:$0xff] %v8078_v24  ;;  %10240 = vst [vmem:[#allocation12_spill] sm:$0xff] %v8081_v55  ;;  %6937 = vmatmul.mubr.msk.bf16.gmra.mxu0 %vm1595_vm5, %v7974_v5  ;;  %6980 = vmatprep.mubr.msk.bf16.mxu1 %vm7577_vm0, %v10188_v1  ;;  %v10186_v23 = vshll.u32 %v8075_v17, 16  ;;  %v1317_v41 = vcombine.low %v8078_v24, %v8081_v55  ;;  %v322_v42 = vrot.slane %v320_v29, 7 }
  0x53   : > { %10241 = vst [vmem:[#allocation13_spill] sm:$0xff] %v8090_v0  ;;  %6940 = vmatprep.mubr.msk.bf16.mxu0 %vm7577_vm0, %v10188_v1  ;;  %v8104_v26 = vrot.slane %v1288_v57, %v7729_v32  ;;  %v721_v2 = vcombine.high %v8006_v40, %v8006_v40  ;;  %v1511_v50 = vsel %vm368_vm1, %v7951_v38, %v1510_v37  ;;  %v8116_v21 = vrot.slane %v10184_v51, 7 }
  0x54   : > { %v1325_v43 = vrot.slane %v1317_v41, %v7729_v32  ;;  %v325_v13 = vor.u32 %v323_v6, %v322_v42  ;;  %v768_v40 = vcombine.high %v8067_v28, %v8067_v28  ;;  %v776_v38 = vrot.slane %v385_v18, %v7729_v32 }
  0x55   : > { %10242 = vst [vmem:[#allocation14_spill] sm:$0xff] %v8104_v26  ;;  %v1318_v57 = vcombine.low %v8090_v0, %v8104_v26  ;;  %v735_v29 = vrot.slane %v721_v2, %v7729_v32  ;;  %v1518_v25 = vor.u32 %v10186_v23, %v8116_v21  ;;  %v249_v37 = vpack.c.bf16 %v240_v31, %v239_v44 }
  0x56   : > { %v386_v51 = vsel %vm7718_vm3, %v322_v42, 0  ;;  %v376_v6 = vsel %vm7718_vm3, 0, %v325_v13  ;;  %v8140_v18 = vrot.slane %v776_v38, %v7729_v32 }
  0x57   : > { %v1332_v41 = vrot.slane %v1318_v57, %v7729_v32  ;;  %v737_v30 = vcombine.high %v735_v29, %v735_v29  ;;  %v8134_v2 = vrot.slane %v735_v29, %v7729_v32  ;;  %v1519_v23 = vsel %vm368_vm1, %v8024_v46, %v1518_v25 }
  0x58   : > { %v791_v31 = vrot.slane %v376_v6, %v7729_v32  ;;  %v327_v44 = vshrl.u32 %v249_v37, 16  ;;  %v330_v46 = vshll.u32 %v249_v37, 16 }
  0x59   : > { %6981 = vmatmul.mubr.msk.bf16.gmra.mxu1 %vm1595_vm5, %v1511_v50  ;;  %v8147_v13 = vcombine.low %v1325_v43, %v1332_v41  ;;  %v8150_v42 = vrot.slane %v737_v30, %v7729_v32  ;;  %v767_v50 = vcombine.high %v8134_v2, %v8134_v2  ;;  %v1334_v29 = vcombine.low %v768_v40, %v8134_v2 }
  0x5a   : > { %6941 = vmatmul.mubr.msk.bf16.gmra.mxu0 %vm1595_vm5, %v8075_v17  ;;  %6984 = vmatprep.mubr.msk.bf16.mxu1 %vm7577_vm0, %v10188_v1  ;;  %v799_v25 = vcombine.high %v791_v31, %v791_v31  ;;  %v8157_v57 = vrot.slane %v791_v31, %v7729_v32  ;;  %v8160_v38 = vrot.slane %v327_v44, 7 }
  0x5b   : > { %6944 = vmatprep.mubr.msk.bf16.mxu0 %vm7577_vm0, %v10188_v1  ;;  %v10191_v43 = vshrl.u32 %v8147_v13, 16  ;;  %v769_v41 = vcombine.high %v8150_v42, %v8150_v42  ;;  %v1335_v37 = vcombine.low %v8150_v42, %v767_v50  ;;  %v8171_v1 = vrot.slane %v1334_v29, %v7729_v32 }
  0x5c   : > { %v8168_v19 = vrot.slane %v799_v25, %v7729_v32  ;;  %v332_v31 = vor.u32 %v330_v46, %v8160_v38  ;;  %v784_v50 = vcombine.high %v376_v6, %v376_v6 }
  0x5d   : > { %10243 = vst [vmem:[#allocation15_spill] sm:$0xff] %v8171_v1  ;;  %v8178_v44 = vrot.slane %v10191_v43, 7  ;;  %v1336_v30 = vcombine.low %v769_v41, %v8140_v18  ;;  %v8182_v16 = vrot.slane %v1335_v37, %v7729_v32  ;;  %v839_v37 = vrot.slane %v386_v51, %v7729_v32 }
  0x5e   : > { %v1337_v25 = vcombine.low %v8157_v57, %v8168_v19  ;;  %v377_v40 = vsel %vm7718_vm3, 0, %v332_v31  ;;  %v798_v41 = vrot.slane %v784_v50, %v7729_v32  ;;  %v10247_v31 = vmov 0.0  }
  0x5f   : > { %10244 = vst [vmem:[#allocation16_spill] sm:$0xff] %v8182_v16  ;;  %v8191_v46 = vrot.slane %v1336_v30, %v7729_v32  ;;  %v1366_v43 = vcombine.low %v8171_v1, %v8182_v16  ;;  %v854_v29 = vrot.slane %v377_v40, %v7729_v32  ;;  %v10248_v30 = vshll.u32 %v8147_v13, 16 }
  0x60   : > { %v8198_v6 = vrot.slane %v1337_v25, %v7729_v32  ;;  %v800_v25 = vcombine.high %v798_v41, %v798_v41  ;;  %v8217_v26 = vrot.slane %v798_v41, %v7729_v32  ;;  %v846_v0 = vrot.slane %v839_v37, %v7729_v32 }
  0x61   : > { %10245 = vst [vmem:[#allocation17_spill] sm:$0xff] %v8191_v46  ;;  %6985 = vmatmul.mubr.msk.bf16.gmra.mxu1 %vm1595_vm5, %v1519_v23  ;;  %v1526_v1 = vor.u32 %v10248_v30, %v8178_v44  ;;  %v1374_v50 = vrot.slane %v1366_v43, %v7729_v32  ;;  %v8221_v55 = vrot.slane %v854_v29, %v7729_v32 }
  0x62   : > { %10246 = vst [vmem:[#allocation18_spill] sm:$0xff] %v8198_v6  ;;  %6945 = vmatmul.mubr.msk.bf16.gmra.mxu0 %vm1595_vm5, %v8147_v13  ;;  %6988 = vmatprep.mubr.msk.bf16.mxu1 %vm7577_vm0, %v10247_v31  ;;  %v1367_v51 = vcombine.low %v8191_v46, %v8198_v6  ;;  %v6467_v43 = vcombine.high %v8157_v57, %v8168_v19 }
  0x63   : > { %6948 = vmatprep.mubr.msk.bf16.mxu0 %vm7577_vm0, %v10247_v31  ;;  %v8227_v23 = vrot.slane %v800_v25, %v7729_v32  ;;  %v847_v16 = vcombine.high %v377_v40, %v377_v40  ;;  %v1527_v46 = vsel %vm368_vm1, %v8116_v21, %v1526_v1  ;;  %v1386_v41 = vcombine.low %v846_v0, %v8221_v55 }
  0x64   : > { %v1381_v30 = vrot.slane %v1367_v51, %v7729_v32  ;;  %v8233_v24 = vrot.slane %v6467_v43, %v7729_v32 }
  0x65   : > { %v832_v52 = vcombine.high %v8227_v23, %v8227_v23  ;;  %v1384_v51 = vcombine.low %v8217_v26, %v8227_v23  ;;  %v6468_v25 = vcombine.high %v8217_v26, %v8227_v23  ;;  %v8244_v40 = vrot.slane %v1386_v41, %v7729_v32 }
  0x66   : > { %10249 = vst [vmem:[#allocation19_spill] sm:$0xff] %v8233_v24  ;;  %v8235_v37 = vcombine.low %v1374_v50, %v1381_v30  ;;  %v861_v21 = vrot.slane %v847_v16, %v7729_v32  ;;  %v862_v16 = vcombine.high %v854_v29, %v854_v29 }
  0x67   : > { %v8253_v30 = vrot.slane %v1384_v51, %v7729_v32  ;;  %v8256_v49 = vrot.slane %v6468_v25, %v7729_v32  ;;  %v8262_v41 = vcombine.low %v832_v52, %v846_v0  ;;  %v387_v52 = vsel %vm7718_vm3, %v8160_v38, 0 }
  0x68   : > { %v10201_v50 = vshrl.u32 %v8235_v37, 16  ;;  %v10206_v43 = vshll.u32 %v8235_v37, 16  ;;  %v863_v0 = vcombine.high %v861_v21, %v861_v21  ;;  %v8278_v29 = vrot.slane %v861_v21, %v7729_v32 }
  0x69   : > { %6989 = vmatmul.mubr.msk.bf16.gmra.mxu1 %vm1595_vm5, %v1527_v46  ;;  %10250 = vst [vmem:[#allocation20_spill] sm:$0xff] %v8253_v30  ;;  %10251 = vst [vmem:[#allocation21_spill] sm:$0xff] %v8256_v49  ;;  %v1415_v51 = vcombine.low %v8233_v24, %v8253_v30  ;;  %v1416_v25 = vcombine.low %v8256_v49, %v8244_v40  ;;  %v8285_v9 = vrot.slane %v862_v16, %v7729_v32 }
  0x6a   : > { %6949 = vmatmul.mubr.msk.bf16.gmra.mxu0 %vm1595_vm5, %v8235_v37  ;;  %6992 = vmatprep.mubr.msk.bf16.mxu1 %vm7577_vm0, %v10247_v31  ;;  %v1531_v46 = vrot.slane %v10201_v50, 7  ;;  %v8288_v1 = vrot.slane %v863_v0, %v7729_v32  ;;  %v892_v38 = vcombine.high %v8221_v55, %v8221_v55 }
  0x6b   : > { %6952 = vmatprep.mubr.msk.bf16.mxu0 %vm7577_vm0, %v10247_v31  ;;  %v1423_v6 = vrot.slane %v1415_v51, %v7729_v32  ;;  %v1430_v24 = vrot.slane %v1416_v25, %v7729_v32  ;;  %v893_v51 = vcombine.high %v8278_v29, %v8278_v29  ;;  %v902_v25 = vrot.slane %v387_v52, %v7729_v32 }
  0x6c   : > { %v1534_v50 = vor.u32 %v10206_v43, %v1531_v46  ;;  %v894_v16 = vcombine.high %v8285_v9, %v8285_v9  ;;  %v895_v0 = vcombine.high %v8288_v1, %v8288_v1  ;;  %v1432_v43 = vcombine.low %v8285_v9, %v892_v38 }
  0x6d   : > { %v8294_v49 = vcombine.low %v1423_v6, %v1430_v24  ;;  %v242_v6 = vld [vmem:[%s7685_s27 + $0x78] sm:$0xff] }
  0x6e   : > { %v1535_v21 = vsel %vm368_vm1, %v8178_v44, %v1534_v50  ;;  %v580_v44 = vcombine.high %v7788_v12, %v7788_v12  ;;  %v8310_v50 = vrot.slane %v902_v25, %v7729_v32  ;;  %v1433_v52 = vcombine.low %v894_v16, %v8278_v29 }
  0x6f   : > { %10252 = vst [vmem:[#allocation22_spill] sm:$0xff] %v8294_v49  ;;  %v10211_v24 = vshrl.u32 %v8294_v49, 16  ;;  %v1434_v25 = vcombine.low %v8288_v1, %v893_v51  ;;  %v8330_v20 = vrot.slane %v1432_v43, %v7729_v32 }
  0x70   : > { %v1435_v30 = vcombine.low %v895_v0, %v8310_v50  ;;  %v8333_v16 = vrot.slane %v1433_v52, %v7729_v32  ;;  %v8336_v11 = vcombine.low %v580_v44, %v7863_v33  ;;  %v6524_v52 = vcombine.high %v7756_v56, %v7766_v63 }
  0x71   : > { %6993 = vmatmul.mubr.msk.bf16.gmra.mxu1 %vm1595_vm5, %v1535_v21  ;;  %v8321_v38 = vrot.slane %v10211_v24, 7  ;;  %v241_v21 = vld [vmem:[%s7685_s27 + $0x70] sm:$0xff]  ;;  %v10254_v24 = vshll.u32 %v8294_v49, 16  ;;  %v8342_v51 = vrot.slane %v1434_v25, %v7729_v32  ;;  %v2089_v25 = vcombine.low %v7756_v56, %v7766_v63 }
  0x72   : > { %6953 = vmatmul.mubr.msk.bf16.gmra.mxu0 %vm1595_vm5, %v8294_v49  ;;  %6996 = vmatprep.mubr.msk.bf16.mxu1 %vm7577_vm0, %v10247_v31  ;;  %10253 = vst [vmem:[#allocation23_spill] sm:$0xff] %v8333_v16  ;;  %v8345_v0 = vrot.slane %v1435_v30, %v7729_v32  ;;  %v250_v47 = vpack.c.bf16 %v242_v6, %v241_v21  ;;  %v10256_v30 = vshll.u32 %v7835_v14, 16 }
  0x73   : > { %6956 = vmatprep.mubr.msk.bf16.mxu0 %vm7577_vm0, %v10247_v31  ;;  %v1542_v61 = vor.u32 %v10254_v24, %v8321_v38  ;;  %10255 = vst [vmem:[#allocation24_spill] sm:$0xff] %v8342_v51  ;;  %v1464_v43 = vcombine.low %v8330_v20, %v8333_v16  ;;  %v2148_v21 = vrot.slane %v2138_v45, %v7729_v32 }
  0x74   : > { %v1465_v44 = vcombine.low %v8342_v51, %v8345_v0  ;;  %v1878_v6 = vrot.slane %v10256_v30, 1  ;;  %v2091_v24 = vcombine.low %v7763_v62, %v7779_v7  ;;  %v6525_v30 = vcombine.high %v7763_v62, %v7779_v7 }
  0x75   : > { %v1543_v33 = vsel %vm368_vm1, %v1531_v46, %v1542_v61  ;;  %v1472_v49 = vrot.slane %v1464_v43, %v7729_v32  ;;  %v2197_v61 = vrot.slane %v8336_v11, %v7729_v32  ;;  %v10257_v45 = vcombine.low %v7962_v53, %v7966_v58 }
  0x76   : > { %v1479_v46 = vrot.slane %v1465_v44, %v7729_v32  ;;  %v334_v56 = vshrl.u32 %v250_v47, 16  ;;  %v2099_v63 = vrot.slane %v2089_v25, %v7729_v32  ;;  %v2106_v11 = vrot.slane %v6524_v52, %v7729_v32 }
  0x77   : > { %v8376_v43 = vrot.slane %v10257_v45, %v7729_v32  ;;  %v2113_v44 = vrot.slane %v2091_v24, %v7729_v32  ;;  %v2120_v62 = vrot.slane %v6525_v30, %v7729_v32  ;;  %v577_v7 = vcombine.high %v7760_v59, %v7760_v59 }
  0x78   : > { %v337_v45 = vshll.u32 %v250_v47, 16  ;;  %v2121_v51 = vcombine.low %v2099_v63, %v2106_v11  ;;  %v578_v16 = vcombine.high %v7771_v3, %v7771_v3  ;;  %v579_v25 = vcombine.high %v7774_v4, %v7774_v4 }
  0x79   : > { %6997 = vmatmul.mubr.msk.bf16.gmra.mxu1 %vm1595_vm5, %v1543_v33  ;;  %v8382_v33 = vcombine.low %v1472_v49, %v1479_v46  ;;  %v2122_v24 = vcombine.low %v2113_v44, %v2120_v62  ;;  %v2139_v47 = vcombine.low %v7774_v4, %v577_v7  ;;  %v8403_v30 = vrot.slane %v334_v56, 7  ;;  %v7504_v7 = vld [vmem:[%s10175_s1 + $0x98] sm:$0xff]  }
  0x7a   : > { %7000 = vmatprep.mubr.msk.bf16.mxu1 %vm7577_vm0, %v10247_v31  ;;  %v2129_v59 = vrot.slane %v2121_v51, %v7729_v32  ;;  %v2141_v46 = vcombine.low %v7788_v12, %v578_v16  ;;  %v2140_v44 = vcombine.low %v579_v25, %v7771_v3  ;;  %v2188_v51 = vcombine.low %v7866_v36, %v7880_v48 }
  0x7b   : > { %6957 = vmatmul.mubr.msk.bf16.gmra.mxu0 %vm1595_vm5, %v8382_v33  ;;  %v1545_v49 = vshrl.u32 %v8382_v33, 16  ;;  %v1548_v52 = vshll.u32 %v8382_v33, 16  ;;  %v2136_v11 = vrot.slane %v2122_v24, %v7729_v32  ;;  %v2155_v62 = vrot.slane %v2139_v47, %v7729_v32 }
  0x7c   : > { %7012 = vmatprep.mubr.msk.bf16.mxu0 %vm7577_vm0, %v10247_v31  ;;  %v2169_v53 = vrot.slane %v2141_v46, %v7729_v32  ;;  %v6526_v4 = vcombine.high %v7866_v36, %v7880_v48  ;;  %v1879_v16 = vsel %vm1875_vm6, %v7898_v8, %v1878_v6  ;;  %v2162_v3 = vrot.slane %v2140_v44, %v7729_v32 }
  0x7d   : > { %v1547_v63 = vrot.slane %v1545_v49, 7  ;;  %v8419_v56 = vcombine.low %v2129_v59, %v2136_v11  ;;  %v2170_v24 = vcombine.low %v2148_v21, %v2155_v62  ;;  %v2190_v25 = vcombine.low %v7873_v39, %v7941_v34 }
  0x7e   : > { %v2204_v36 = vrot.slane %v2188_v51, %v7729_v32  ;;  %v2211_v48 = vrot.slane %v6526_v4, %v7729_v32  ;;  %v2171_v46 = vcombine.low %v2162_v3, %v2169_v53  ;;  %v10258_v62 = vcombine.low %v8140_v18, %v8157_v57  ;;  %v7506_v3 = vld [vmem:[%s10175_s1 + $0x90] sm:$0xff]  }
  0x7f   : > { %v1550_v12 = vor.u32 %v1548_v52, %v1547_v63  ;;  %v2531_v8 = vshrl.u32 %v8419_v56, 16  ;;  %v2534_v59 = vshll.u32 %v8419_v56, 16  ;;  %v339_v63 = vor.u32 %v337_v45, %v8403_v30 }
  0x80   : > { %v2178_v21 = vrot.slane %v2170_v24, %v7729_v32  ;;  %v2218_v11 = vrot.slane %v2190_v25, %v7729_v32  ;;  %v2219_v44 = vcombine.low %v2197_v61, %v2204_v36  ;;  %v8441_v51 = vrot.slane %v10258_v62, %v7729_v32 }
  0x81   : > { %v1551_v47 = vsel %vm368_vm1, %v8321_v38, %v1550_v12  ;;  %v8448_v38 = vrot.slane %v2531_v8, 7  ;;  %v10259_v53 = vshrl.u32 %v7835_v14, 16  ;;  %v2185_v61 = vrot.slane %v2171_v46, %v7729_v32 }
  0x82   : > { %7001 = vmatmul.mubr.msk.bf16.gmra.mxu1 %vm1595_vm5, %v1551_v47  ;;  %v10260_v18 = vshll.u32 %v7837_v15, 16  ;;  %v2220_v12 = vcombine.low %v2211_v48, %v2218_v11  ;;  %v703_v14 = vcombine.high %v7966_v58, %v7966_v58  ;;  %v705_v25 = vcombine.high %v7981_v10, %v7981_v10 }
  0x83   : > { %7013 = vmatmul.mubr.msk.bf16.vlgmr.msra.gmra.mxu0 %vm1595_vm5, %v1879_v16  ;;  %7056 = vmatprep.mubr.msk.bf16.mxu1 %vm7577_vm0, %v10247_v31  ;;  %v1880_v45 = vor.u32 %v1878_v6, %v10259_v53  ;;  %v2227_v16 = vrot.slane %v2219_v44, %v7729_v32  ;;  %v2407_v6 = vrot.slane %v8262_v41, %v7729_v32  ;;  %v378_v36 = vsel %vm7718_vm3, 0, %v339_v63 }
  0x84   : > { %7093 = vmatpush3.bf16.msra.mxu0 %v7504_v7  ;;  %7016 = vmatprep.mubr.msk.bf16.mxu0 %vm7577_vm0, %v10247_v31  ;;  %v1881_v4 = vrot.slane %v10260_v18, 1  ;;  %v2536_v7 = vor.u32 %v2534_v59, %v8448_v38  ;;  %v8468_v24 = vcombine.low %v2178_v21, %v2185_v61  ;;  %v2234_v48 = vrot.slane %v2220_v12, %v7729_v32  ;;  %v7505_v21 = vld [vmem:[%s10176_s2 + $0x38] sm:$0xff]  }
  0x85   : > { %7094 = vmatprep.subr.bf16.mxu0 %v10247_v31  ;;  %v6527_v58 = vcombine.high %v7873_v39, %v7941_v34  ;;  %v2238_v47 = vcombine.low %v7981_v10, %v703_v14  ;;  %v2239_v63 = vcombine.low %v705_v25, %v8033_v54  ;;  %v912_v10 = vcombine.high %v378_v36, %v378_v36  ;;  %v7508_v25 = vld [vmem:[%s10175_s1 + $0x88] sm:$0xff]  }
  0x86   : > { %v8481_v46 = vsel %vm7718_vm3, 0, %v2536_v7  ;;  %v2538_v11 = vshrl.u32 %v8468_v24, 16  ;;  %v2541_v44 = vshll.u32 %v8468_v24, 16  ;;  %v1882_v62 = vsel %vm1875_vm6, %v1880_v45, %v1881_v4 }
  0x87   : > { %v8490_v53 = vcombine.low %v2227_v16, %v2234_v48  ;;  %v2246_v39 = vrot.slane %v6527_v58, %v7729_v32  ;;  %v2260_v34 = vrot.slane %v2238_v47, %v7729_v32  ;;  %v2267_v18 = vrot.slane %v2239_v63, %v7729_v32 }
  0x88   : > { %7095 = vmatpush3.bf16.msra.mxu0 %v7506_v3  ;;  %v8496_v61 = vrot.slane %v2538_v11, 7  ;;  %v704_v12 = vcombine.high %v8033_v54, %v8033_v54  ;;  %v10261_v45 = vshrl.u32 %v7837_v15, 16  ;;  %v2287_v7 = vcombine.low %v8056_v35, %v8067_v28  ;;  %v7507_v15 = vld [vmem:[%s10176_s2 + $0x30] sm:$0xff]  }
  0x89   : > { %7096 = vmatprep.subr.bf16.mxu0 %v10247_v31  ;;  %v2546_v3 = vshrl.u32 %v8490_v53, 16  ;;  %v2268_v14 = vcombine.low %v2246_v39, %v8376_v43  ;;  %v10262_v48 = vshll.u32 %v7974_v5, 16  ;;  %v10267_v41 = vshll.u32 %v8147_v13, 16 }
  0x8a   : > { %7057 = vmatmul.mubr.msk.bf16.vlgmr.msra.gmra.mxu1 %vm1595_vm5, %v8481_v46  ;;  %v1883_v16 = vor.u32 %v1881_v4, %v10261_v45  ;;  %v2543_v54 = vor.u32 %v2541_v44, %v8496_v61  ;;  %v2269_v4 = vcombine.low %v2260_v34, %v2267_v18  ;;  %v2285_v43 = vcombine.low %v8037_v60, %v704_v12 }
  0x8b   : > { %7137 = vmatpush3.bf16.msra.mxu1 %v7505_v21  ;;  %7017 = vmatmul.mubr.msk.bf16.gmra.mxu0 %vm1595_vm5, %v1882_v62  ;;  %v1884_v58 = vrot.slane %v10262_v48, 1  ;;  %v2276_v47 = vrot.slane %v2268_v14, %v7729_v32  ;;  %v6528_v21 = vcombine.high %v8056_v35, %v8067_v28  ;;  %v2309_v63 = vrot.slane %v2287_v7, %v7729_v32 }
  0x8c   : > { %7060 = vmatprep.mubr.msk.bf16.mxu1 %vm7577_vm0, %v10247_v31  ;;  %7020 = vmatprep.mubr.msk.bf16.mxu0 %vm7577_vm0, %v10247_v31  ;;  %v8532_v62 = vrot.slane %v378_v36, %v7729_v32  ;;  %v2549_v60 = vshll.u32 %v8490_v53, 16  ;;  %v2283_v39 = vrot.slane %v2269_v4, %v7729_v32  ;;  %v2295_v34 = vrot.slane %v2285_v43, %v7729_v32  ;;  %v7510_v36 = vld [vmem:[%s10175_s1 + $0x80] sm:$0xff]  }
  0x8d   : > { %7138 = vmatprep.subr.bf16.mxu1 %v10247_v31  ;;  %v8540_v18 = vrot.slane %v2546_v3, 7  ;;  %v2316_v12 = vrot.slane %v6528_v21, %v7729_v32  ;;  %7097 = vmatpush3.bf16.msra.mxu0 %v7508_v25  ;;  %v829_v35 = vcombine.high %v8157_v57, %v8157_v57  ;;  %v2334_v28 = vcombine.low %v8134_v2, %v8150_v42 }
  0x8e   : > { %v8552_v45 = vsel %vm368_vm1, %v8448_v38, %v2543_v54  ;;  %v8554_v14 = vcombine.low %v2276_v47, %v2283_v39  ;;  %v10263_v7 = vrot.slane %v8072_v22, %v7729_v32  ;;  %v6529_v57 = vcombine.high %v8134_v2, %v8150_v42  ;;  %v7509_v38 = vld [vmem:[%s10176_s2 + $0x28] sm:$0xff]   ;;  %7098 = vmatprep.subr.bf16.mxu0 %v10247_v31 }
  0x8f   : > { %7139 = vmatpush3.bf16.msra.mxu1 %v7507_v15  ;;  %v1885_v4 = vsel %vm1875_vm6, %v1883_v16, %v1884_v58  ;;  %v2318_v43 = vcombine.low %v2309_v63, %v2316_v12  ;;  %v2337_v54 = vcombine.low %v8168_v19, %v829_v35  ;;  %v2344_v15 = vrot.slane %v2334_v28, %v7729_v32 }
  0x90   : > { %v2317_v25 = vcombine.low %v2295_v34, %v10263_v7  ;;  %7140 = vmatprep.subr.bf16.mxu1 %v10247_v31  ;;  %v8569_v48 = vrot.slane %v912_v10, %v7729_v32  ;;  %v8573_v22 = vrot.slane %v8532_v62, %v7729_v32  ;;  %v2351_v42 = vrot.slane %v6529_v57, %v7729_v32  ;;  %v7511_v57 = vld [vmem:[%s10176_s2 + $0x20] sm:$0xff]  }
  0x91   : > { %v2551_v16 = vor.u32 %v2549_v60, %v8540_v18  ;;  %v2554_v10 = vshrl.u32 %v8554_v14, 16  ;;  %v2332_v47 = vrot.slane %v2318_v43, %v7729_v32  ;;  %v2365_v21 = vrot.slane %v2337_v54, %v7729_v32  ;;  %7099 = vmatpush3.bf16.msra.mxu0 %v7510_v36 }
  0x92   : > { %v2325_v2 = vrot.slane %v2317_v25, %v7729_v32  ;;  %7061 = vmatmul.mubr.msk.bf16.gmra.mxu1 %vm1595_vm5, %v8552_v45  ;;  %v2366_v63 = vcombine.low %v2344_v15, %v2351_v42  ;;  %v830_v39 = vcombine.high %v8217_v26, %v8217_v26  ;;  %v831_v34 = vcombine.high %v8168_v19, %v8168_v19 }
  0x93   : > { %7021 = vmatmul.mubr.msk.bf16.gmra.mxu0 %vm1595_vm5, %v1885_v4  ;;  %7064 = vmatprep.mubr.msk.bf16.mxu1 %vm7577_vm0, %v10247_v31  ;;  %v10264_v12 = vshrl.u32 %v7974_v5, 16  ;;  %v10265_v28 = vshll.u32 %v8075_v17, 16  ;;  %v2367_v25 = vcombine.low %v8441_v51, %v2365_v21  ;;  %v2435_v19 = vcombine.low %v8310_v50, %v8573_v22 }
  0x94   : > { %7024 = vmatprep.mubr.msk.bf16.mxu0 %vm7577_vm0, %v10247_v31  ;;  %v8599_v7 = vcombine.low %v2325_v2, %v2332_v47  ;;  %7141 = vmatpush3.bf16.msra.mxu1 %v7509_v38  ;;  %v2374_v4 = vrot.slane %v2366_v63, %v7729_v32  ;;  %v2383_v5 = vcombine.low %v831_v34, %v8217_v26  ;;  %v8613_v43 = vrot.slane %v2554_v10, 7 }
  0x95   : > { %v1886_v35 = vor.u32 %v1884_v58, %v10264_v12  ;;  %v1887_v36 = vrot.slane %v10265_v28, 1  ;;  %v2384_v58 = vcombine.low %v8227_v23, %v830_v39  ;;  %7142 = vmatprep.subr.bf16.mxu1 %v10247_v31  ;;  %v2557_v51 = vshll.u32 %v8554_v14, 16  ;;  %7180 = vmatprep.subr.bf16.mxu0 %v10247_v31 }
  0x96   : > { %v2381_v38 = vrot.slane %v2367_v25, %v7729_v32  ;;  %v2386_v54 = vcombine.low %v8221_v55, %v8285_v9  ;;  %v927_v26 = vcombine.high %v8532_v62, %v8532_v62  ;;  %v8624_v23 = vsel %vm368_vm1, %v8496_v61, %v2551_v16 }
  0x97   : > { %v2393_v50 = vrot.slane %v2383_v5, %v7729_v32  ;;  %v2400_v15 = vrot.slane %v2384_v58, %v7729_v32  ;;  %v1888_v2 = vsel %vm1875_vm6, %v1886_v35, %v1887_v36  ;;  %v6530_v21 = vcombine.high %v8221_v55, %v8285_v9 }
  0x98   : > { %v8629_v42 = vcombine.low %v2374_v4, %v2381_v38  ;;  %v2414_v47 = vrot.slane %v2386_v54, %v7729_v32  ;;  %7143 = vmatpush3.bf16.msra.mxu1 %v7511_v57  ;;  %v2562_v62 = vshrl.u32 %v8599_v7, 16  ;;  %v2433_v61 = vcombine.low %v8278_v29, %v8288_v1 }
  0x99   : > { %v2415_v63 = vcombine.low %v2393_v50, %v2400_v15  ;;  %v6531_v16 = vcombine.high %v8278_v29, %v8288_v1  ;;  %7224 = vmatprep.subr.bf16.mxu1 %v10247_v31  ;;  %v928_v39 = vcombine.high %v8569_v48, %v8569_v48  ;;  %v2463_v34 = vrot.slane %v2435_v19, %v7729_v32 }
  0x9a   : > { %7065 = vmatmul.mubr.msk.bf16.gmra.mxu1 %vm1595_vm5, %v8624_v23  ;;  %v2559_v55 = vor.u32 %v2557_v51, %v8613_v43  ;;  %v2416_v9 = vcombine.low %v2407_v6, %v2414_v47  ;;  %v2442_v29 = vrot.slane %v6530_v21, %v7729_v32  ;;  %v2449_v12 = vrot.slane %v2433_v61, %v7729_v32 }
  0x9b   : > { %7025 = vmatmul.mubr.msk.bf16.gmra.mxu0 %vm1595_vm5, %v1888_v2  ;;  %7068 = vmatprep.mubr.msk.bf16.mxu1 %vm7577_vm0, %v10247_v31  ;;  %v2423_v1 = vrot.slane %v2415_v63, %v7729_v32  ;;  %v10266_v35 = vshrl.u32 %v8075_v17, 16  ;;  %v1890_v6 = vrot.slane %v10267_v41, 1  ;;  %v2456_v57 = vrot.slane %v6531_v16, %v7729_v32 }
  0x9c   : > { %7028 = vmatprep.mubr.msk.bf16.mxu0 %vm7577_vm0, %v10247_v31  ;;  %v2430_v25 = vrot.slane %v2416_v9, %v7729_v32  ;;  %v3235_v19 = vrot.slane %v2534_v59, 1  ;;  %v2564_v4 = vrot.slane %v2562_v62, 7  ;;  %v2565_v5 = vshll.u32 %v8599_v7, 16 }
  0x9d   : > { %v1889_v28 = vor.u32 %v1887_v36, %v10266_v35  ;;  %v2464_v58 = vcombine.low %v2442_v29, %v2449_v12  ;;  %v2465_v17 = vcombine.low %v2456_v57, %v2463_v34  ;;  %v388_v36 = vsel %vm7718_vm3, %v8403_v30, 0 }
  0x9e   : > { %v8670_v38 = vcombine.low %v2423_v1, %v2430_v25  ;;  %v8677_v54 = vrot.slane %v8569_v48, %v7729_v32  ;;  %v8680_v50 = vrot.slane %v927_v26, %v7729_v32  ;;  %v8684_v59 = vsel %vm368_vm1, %v8540_v18, %v2559_v55 }
  0x9f   : > { %v2472_v15 = vrot.slane %v2464_v58, %v7729_v32  ;;  %v8688_v2 = vrot.slane %v928_v39, %v7729_v32  ;;  %v1891_v47 = vsel %vm1875_vm6, %v1889_v28, %v1890_v6  ;;  %v2479_v30 = vrot.slane %v2465_v17, %v7729_v32 }
  0xa0   : > { %v3237_v48 = vrot.slane %v2541_v44, 1  ;;  %v2567_v21 = vor.u32 %v2565_v5, %v2564_v4  ;;  %v2570_v26 = vshrl.u32 %v8629_v42, 16  ;;  %v967_v63 = vrot.slane %v388_v36, %v7729_v32 }
  0xa1   : > { %v8698_v18 = vcombine.low %v2472_v15, %v2479_v30  ;;  %v957_v61 = vcombine.high %v8573_v22, %v8573_v22  ;;  %v958_v16 = vcombine.high %v8677_v54, %v8677_v54  ;;  %v3236_v39 = vor.u32 %v3235_v19, %v2531_v8 }
  0xa2   : > { %7069 = vmatmul.mubr.msk.bf16.gmra.mxu1 %vm1595_vm5, %v8684_v59  ;;  %v959_v44 = vcombine.high %v8680_v50, %v8680_v50  ;;  %v960_v34 = vcombine.high %v8688_v2, %v8688_v2  ;;  %v8714_v55 = vrot.slane %v967_v63, %v7729_v32  ;;  %v3240_v9 = vrot.slane %v2549_v60, 1 }
  0xa3   : > { %7029 = vmatmul.mubr.msk.bf16.gmra.mxu0 %vm1595_vm5, %v1891_v47  ;;  %7072 = vmatprep.mubr.msk.bf16.mxu1 %vm7577_vm0, %v10247_v31  ;;  %v10268_v8 = vshrl.u32 %v8147_v13, 16  ;;  %v10269_v29 = vshll.u32 %v8235_v37, 16  ;;  %v2573_v35 = vshll.u32 %v8629_v42, 16  ;;  %v8726_v28 = vsel %vm1875_vm6, %v3236_v39, %v3237_v48 }
  0xa4   : > { %7032 = vmatprep.mubr.msk.bf16.mxu0 %vm7577_vm0, %v10247_v31  ;;  %v3239_v41 = vor.u32 %v3237_v48, %v2538_v11  ;;  %v8732_v60 = vsel %vm368_vm1, %v8613_v43, %v2567_v21  ;;  %v2572_v25 = vrot.slane %v2570_v26, 7  ;;  %v2481_v13 = vcombine.low %v8680_v50, %v957_v61  ;;  %v10271_v61 = vld [vmem:[#allocation22_spill] sm:$0xff] }
  0xa5   : > { %v1892_v1 = vor.u32 %v1890_v6, %v10268_v8  ;;  %v1893_v12 = vrot.slane %v10269_v29, 1  ;;  %v2483_v6 = vcombine.low %v8688_v2, %v958_v16  ;;  %v2482_v57 = vcombine.low %v959_v44, %v8677_v54 }
  0xa6   : > { %v2484_v19 = vcombine.low %v960_v34, %v8714_v55  ;;  %v8741_v58 = vsel %vm1875_vm6, %v3239_v41, %v3240_v9  ;;  %v3242_v11 = vor.u32 %v3240_v9, %v2546_v3  ;;  %v3243_v17 = vrot.slane %v2557_v51, 1 }
  0xa7   : > { %v1894_v43 = vsel %vm1875_vm6, %v1892_v1, %v1893_v12  ;;  %v2575_v36 = vor.u32 %v2573_v35, %v2572_v25  ;;  %v2578_v15 = vshrl.u32 %v8670_v38, 16  ;;  %v2491_v47 = vrot.slane %v2481_v13, %v7729_v32 }
  0xa8   : > { %v8753_v30 = vsel %vm1875_vm6, %v3242_v11, %v3243_v17  ;;  %v2498_v3 = vrot.slane %v2482_v57, %v7729_v32  ;;  %v2505_v51 = vrot.slane %v2483_v6, %v7729_v32  ;;  %v2512_v48 = vrot.slane %v2484_v19, %v7729_v32 }
  0xa9   : > { %v10270_v21 = vshrl.u32 %v8235_v37, 16  ;;  %v10272_v16 = vshll.u32 %v10271_v61, 16  ;;  %v8768_v44 = vsel %vm368_vm1, %v2564_v4, %v2575_v36  ;;  %v2580_v34 = vrot.slane %v2578_v15, 7 }
  0xaa   : > { %7073 = vmatmul.mubr.msk.bf16.gmra.mxu1 %vm1595_vm5, %v8732_v60  ;;  %v2581_v9 = vshll.u32 %v8670_v38, 16  ;;  %v2513_v8 = vcombine.low %v2491_v47, %v2498_v3  ;;  %v2514_v1 = vcombine.low %v2505_v51, %v2512_v48  ;;  %v3245_v29 = vor.u32 %v3243_v17, %v2554_v10 }
  0xab   : > { %7033 = vmatmul.mubr.msk.bf16.gmra.mxu0 %vm1595_vm5, %v1894_v43  ;;  %7076 = vmatprep.mubr.msk.bf16.mxu1 %vm7577_vm0, %v10247_v31  ;;  %v1895_v63 = vor.u32 %v1893_v12, %v10270_v21  ;;  %v1896_v39 = vrot.slane %v10272_v16, 1  ;;  %v3246_v41 = vrot.slane %v2565_v5, 1  ;;  %v2586_v4 = vshrl.u32 %v8698_v18, 16 }
  0xac   : > { %7036 = vmatprep.mubr.msk.bf16.mxu0 %vm7577_vm0, %v10247_v31  ;;  %v2583_v12 = vor.u32 %v2581_v9, %v2580_v34  ;;  %v2521_v6 = vrot.slane %v2513_v8, %v7729_v32  ;;  %v2528_v10 = vrot.slane %v2514_v1, %v7729_v32  ;;  %v10273_v5 = vshrl.u32 %v10271_v61, 16  ;;  %v7512_v1 = vld [vmem:[%s10176_s2 + $0x18] sm:$0xff]  }
  0xad   : > { %v1897_v13 = vsel %vm1875_vm6, %v1895_v63, %v1896_v39  ;;  %v8775_v37 = vsel %vm1875_vm6, %v3245_v29, %v3246_v41  ;;  %v1899_v19 = vrot.slane %v1548_v52, 1  ;;  %v2588_v11 = vrot.slane %v2586_v4, 7 }
  0xae   : > { %v1898_v57 = vor.u32 %v1896_v39, %v10273_v5  ;;  %v2589_v43 = vshll.u32 %v8698_v18, 16  ;;  %v8793_v17 = vsel %vm368_vm1, %v2572_v25, %v2583_v12  ;;  %v8795_v36 = vcombine.low %v2521_v6, %v2528_v10  ;;  %v7516_v6 = vld [vmem:[%s10176_s2 + $0x8] sm:$0xff]  }
  0xaf   : > { %v3248_v47 = vor.u32 %v3246_v41, %v2562_v62  ;;  %v3249_v3 = vrot.slane %v2573_v35, 1  ;;  %v1901_v62 = vor.u32 %v1899_v19, %v1545_v49  ;;  %v3252_v39 = vrot.slane %v2581_v9, 1  ;;  %v7513_v41 = vld [vmem:[%s10175_s1 + $0xb8] sm:$0xff]  }
  0xb0   : > { %v1900_v51 = vsel %vm1875_vm6, %v1898_v57, %v1899_v19  ;;  %v2591_v52 = vor.u32 %v2589_v43, %v2588_v11  ;;  %v2594_v25 = vshrl.u32 %v8795_v36, 16  ;;  %v2597_v61 = vshll.u32 %v8795_v36, 16  ;;  %v7517_v57 = vld [vmem:[%s10175_s1 + $0xa8] sm:$0xff]   ;;  %v7519_v19 = vld [vmem:[%s10175_s1 + $0xa0] sm:$0xff]  }
  0xb1   : > { %v8801_v48 = vsel %vm1875_vm6, %v3248_v47, %v3249_v3  ;;  %v3251_v16 = vor.u32 %v3249_v3, %v2570_v26  ;;  %v1905_v8 = vsel %vm8814_vm8, %v1901_v62, 0  ;;  %v3255_v9 = vrot.slane %v2589_v43, 1  ;;  %v10278_v43 = vld [vmem:[#allocation4_spill] sm:$0xff]  ;;  %v10280_v3 = vld [vmem:[#allocation6_spill] sm:$0xff] }
  0xb2   : > { %7077 = vmatmul.mubr.msk.bf16.gmra.mxu1 %vm1595_vm5, %v8768_v44  ;;  %v8819_v21 = vsel %vm368_vm1, %v2580_v34, %v2591_v52  ;;  %v2596_v63 = vrot.slane %v2594_v25, 7  ;;  %v3254_v34 = vor.u32 %v3252_v39, %v2578_v15  ;;  %v7514_v15 = vld [vmem:[%s10176_s2 + $0x10] sm:$0xff]   ;;  %v3258_v12 = vrot.slane %v2597_v61, 1 }
  0xb3   : > { %7037 = vmatmul.mubr.msk.bf16.gmra.mxu0 %vm1595_vm5, %v1897_v13  ;;  %7080 = vmatprep.mubr.msk.bf16.mxu1 %vm7577_vm0, %v10247_v31  ;;  %v8827_v33 = vsel %vm1875_vm6, %v3251_v16, %v3252_v39  ;;  %v3257_v13 = vor.u32 %v3255_v9, %v2586_v4  ;;  %v7515_v4 = vld [vmem:[%s10175_s1 + $0xb0] sm:$0xff]  }
  0xb4   : > { %7040 = vmatprep.mubr.msk.bf16.mxu0 %vm7577_vm0, %v10247_v31  ;;  %10276 = vst [vmem:[#allocation22_spill] sm:$0xff] %v8827_v33  ;;  %v2599_v49 = vor.u32 %v2597_v61, %v2596_v63  ;;  %v8843_v29 = vsel %vm1875_vm6, %v3254_v34, %v3255_v9  ;;  %v8883_v5 = vor.u32 %v3258_v12, %v2594_v25  ;;  %v10283_v63 = vld [vmem:[#allocation8_spill] sm:$0xff]  ;;  %v10284_v61 = vld [vmem:[#allocation9_spill] sm:$0xff] }
  0xb5   : > { %v8865_v10 = vsel %vm1875_vm6, %v3257_v13, %v3258_v12  ;;  %v10285_v16 = vcombine.low %v10283_v63, %v10284_v61  ;;  %v10292_v12 = vld [vmem:[#allocation14_spill] sm:$0xff]  ;;  %v3704_v61 = vcombine.low %v8573_v22, %v8680_v50 }
  0xb6   : > { %v8837_v26 = vsel %vm368_vm1, %v2588_v11, %v2599_v49  ;;  %v10277_v11 = vld [vmem:[#allocation3_spill] sm:$0xff] }
  0xb7   : > { %v3644_v39 = vrot.slane %v10285_v16, %v7729_v32  ;;  %v10287_v49 = vld [vmem:[#allocation11_spill] sm:$0xff] }
  0xba   : > { %7081 = vmatmul.mubr.msk.bf16.gmra.mxu1 %vm1595_vm5, %v8793_v17 }
  0xbb   : > { %7041 = vmatmul.mubr.msk.bf16.gmra.mxu0 %vm1595_vm5, %v1900_v51  ;;  %7084 = vmatprep.mubr.msk.bf16.mxu1 %vm7577_vm0, %v10247_v31  ;;  %v10281_v51 = vld [vmem:[#allocation7_spill] sm:$0xff] }
  0xbc   : > { %7044 = vmatprep.mubr.msk.bf16.mxu0 %vm7577_vm0, %v10247_v31  ;;  %v10282_v52 = vcombine.low %v10280_v3, %v10281_v51 }
  0xbe   : > { %v3634_v25 = vrot.slane %v10282_v52, %v7729_v32  ;;  %v265_v52 = vld [vmem:[%s7726_s11 + $0x8] sm:$0xff] }
  0xc2   : > { %7085 = vmatmul.mubr.msk.bf16.gmra.mxu1 %vm1595_vm5, %v8819_v21 }
  0xc3   : > { %7045 = vmatmul.mubr.msk.bf16.gmra.mxu0 %vm1595_vm5, %v1905_v8  ;;  %7088 = vmatprep.mubr.msk.bf16.mxu1 %vm7577_vm0, %v10247_v31  ;;  %v10286_v8 = vld [vmem:[#allocation10_spill] sm:$0xff] }
  0xc4   : > { %7100 = vmatprep.mubr.msk.bf16.mxu0 %vm7577_vm0, %v10247_v31  ;;  %v10288_v34 = vcombine.low %v10286_v8, %v10287_v49  ;;  %v274_v8 = vstv %s273_s6 }
  0xc5   : > { %vm275_vm9 = vcmp.eq.s32.totalorder %v274_v8, 1 }
  0xca   : > { %7089 = vmatmul.mubr.msk.bf16.gmra.mxu1 %vm1595_vm5, %v8837_v26 }
  0xcb   : > { %7101 = vmatmul.mubr.msk.bf16.vlgmr.msra.gmra.mxu0 %vm1595_vm5, %v8419_v56  ;;  %7144 = vmatprep.mubr.msk.bf16.mxu1 %vm7577_vm0, %v10247_v31 }
  0xcc   : > { %7181 = vmatpush3.bf16.msra.mxu0 %v7512_v1  ;;  %7104 = vmatprep.mubr.msk.bf16.mxu0 %vm7577_vm0, %v10247_v31  ;;  %v10289_v1 = vld [vmem:[#allocation12_spill] sm:$0xff] }
  0xcd   : > { %7182 = vmatprep.subr.bf16.mxu0 %v10247_v31 }
  0xd0   : > { %7183 = vmatpush3.bf16.msra.mxu0 %v7514_v15  ;;  %v10290_v15 = vld [vmem:[#allocation13_spill] sm:$0xff] }
  0xd1   : > { %7184 = vmatprep.subr.bf16.mxu0 %v10247_v31 }
  0xd2   : > { %7145 = vmatmul.mubr.msk.bf16.vlgmr.msra.gmra.mxu1 %vm1595_vm5, %v8419_v56  ;;  %v7518_v56 = vld [vmem:[%s10176_s2] sm:$0xff]  }
  0xd3   : > { %7225 = vmatpush3.bf16.msra.mxu1 %v7513_v41  ;;  %7105 = vmatmul.mubr.msk.bf16.gmra.mxu0 %vm1595_vm5, %v8468_v24  ;;  %v10291_v41 = vcombine.low %v10289_v1, %v10290_v15 }
  0xd4   : > { %7148 = vmatprep.mubr.msk.bf16.mxu1 %vm7577_vm0, %v10247_v31  ;;  %7108 = vmatprep.mubr.msk.bf16.mxu0 %vm7577_vm0, %v10247_v31 }
  0xd5   : > { %7226 = vmatprep.subr.bf16.mxu1 %v10247_v31  ;;  %7185 = vmatpush3.bf16.msra.mxu0 %v7516_v6  ;;  %v3661_v13 = vrot.slane %v10291_v41, %v7729_v32  ;;  %v10293_v6 = vld [vmem:[#allocation15_spill] sm:$0xff] }
  0xd6   : > { %7186 = vmatprep.subr.bf16.mxu0 %v10247_v31 }
  0xd7   : > { %7227 = vmatpush3.bf16.msra.mxu1 %v7515_v4  ;;  %v10294_v4 = vcombine.low %v10292_v12, %v10293_v6 }
  0xd8   : > { %7228 = vmatprep.subr.bf16.mxu1 %v10247_v31 }
  0xd9   : > { %7187 = vmatpush3.bf16.msra.mxu0 %v7518_v56  ;;  %v3668_v56 = vrot.slane %v10294_v4, %v7729_v32 }
  0xda   : > { %7149 = vmatmul.mubr.msk.bf16.gmra.mxu1 %vm1595_vm5, %v8468_v24  ;;  %7268 = vmatprep.subr.bf16.mxu0 %v10247_v31  ;;  %v10279_v24 = vcombine.low %v10277_v11, %v10278_v43 }
  0xdb   : > { %7109 = vmatmul.mubr.msk.bf16.gmra.mxu0 %vm1595_vm5, %v8490_v53  ;;  %7152 = vmatprep.mubr.msk.bf16.mxu1 %vm7577_vm0, %v10247_v31 }
  0xdc   : > { %7112 = vmatprep.mubr.msk.bf16.mxu0 %vm7577_vm0, %v10247_v31  ;;  %7229 = vmatpush3.bf16.msra.mxu1 %v7517_v57  ;;  %v3627_v47 = vrot.slane %v10279_v24, %v7729_v32  ;;  %v10295_v57 = vld [vmem:[#allocation16_spill] sm:$0xff]  ;;  %v10298_v24 = vld [vmem:[#allocation18_spill] sm:$0xff] }
  0xdd   : > { %7230 = vmatprep.subr.bf16.mxu1 %v10247_v31 }
  0xde   : > { %v8911_v62 = vcombine.low %v3627_v47, %v3634_v25  ;;  %v10299_v47 = vld [vmem:[#allocation19_spill] sm:$0xff] }
  0xdf   : > { %v10300_v3 = vcombine.low %v10298_v24, %v10299_v47 }
  0xe0   : > { %7231 = vmatpush3.bf16.msra.mxu1 %v7519_v19  ;;  %v10296_v19 = vld [vmem:[#allocation17_spill] sm:$0xff] }
  0xe1   : > { %7312 = vmatprep.subr.bf16.mxu1 %v10247_v31  ;;  %v10297_v11 = vcombine.low %v10295_v57, %v10296_v19  ;;  %v3685_v51 = vrot.slane %v10300_v3, %v7729_v32  ;;  %v10306_v3 = vld [vmem:[#allocation24_spill] sm:$0xff] }
  0xe2   : > { %7153 = vmatmul.mubr.msk.bf16.gmra.mxu1 %vm1595_vm5, %v8490_v53  ;;  %v3651_v53 = vrot.slane %v10288_v34, %v7729_v32  ;;  %v10301_v34 = vld [vmem:[#allocation20_spill] sm:$0xff] }
  0xe3   : > { %7113 = vmatmul.mubr.msk.bf16.gmra.mxu0 %vm1595_vm5, %v8554_v14  ;;  %7156 = vmatprep.mubr.msk.bf16.mxu1 %vm7577_vm0, %v10247_v31  ;;  %v3678_v43 = vrot.slane %v10297_v11, %v7729_v32 }
  0xe4   : > { %7116 = vmatprep.mubr.msk.bf16.mxu0 %vm7577_vm0, %v10247_v31  ;;  %v8929_v9 = vcombine.low %v3644_v39, %v3651_v53  ;;  %v10302_v53 = vld [vmem:[#allocation21_spill] sm:$0xff] }
  0xe5   : > { %v8970_v16 = vcombine.low %v3678_v43, %v3685_v51  ;;  %v10303_v1 = vcombine.low %v10301_v34, %v10302_v53 }
  0xe7   : > { %v3695_v15 = vrot.slane %v10303_v1, %v7729_v32 }
  0xea   : > { %7157 = vmatmul.mubr.msk.bf16.gmra.mxu1 %vm1595_vm5, %v8554_v14  ;;  %v8947_v14 = vcombine.low %v3661_v13, %v3668_v56  ;;  %v3711_v13 = vrot.slane %v3704_v61, %v7729_v32 }
  0xeb   : > { %7117 = vmatmul.mubr.msk.bf16.gmra.mxu0 %vm1595_vm5, %v8599_v7  ;;  %7160 = vmatprep.mubr.msk.bf16.mxu1 %vm7577_vm0, %v10247_v31 }
  0xec   : > { %7120 = vmatprep.mubr.msk.bf16.mxu0 %vm7577_vm0, %v10247_v31  ;;  %v3713_v19 = vcombine.low %v8345_v0, %v3711_v13  ;;  %v10305_v0 = vld [vmem:[#allocation23_spill] sm:$0xff] }
  0xed   : > { %v10307_v51 = vcombine.low %v10305_v0, %v10306_v3  ;;  %v7521_v3 = vld [vmem:[%s10176_s2 + $0x78] sm:$0xff]  }
  0xf2   : > { %7161 = vmatmul.mubr.msk.bf16.gmra.mxu1 %vm1595_vm5, %v8599_v7  ;;  %v264_v7 = vld [vmem:[%s7726_s11] sm:$0xff] }
  0xf3   : > { %7121 = vmatmul.mubr.msk.bf16.gmra.mxu0 %vm1595_vm5, %v8629_v42  ;;  %7164 = vmatprep.mubr.msk.bf16.mxu1 %vm7577_vm0, %v10247_v31  ;;  %v266_v63 = vpack.c.bf16 %v265_v52, %v264_v7  ;;  %v3720_v7 = vrot.slane %v10307_v51, %v7729_v32 }
  0xf4   : > { %7124 = vmatprep.mubr.msk.bf16.mxu0 %vm7577_vm0, %v10247_v31 }
  0xf5   : > { %v8989_v12 = vsel %vm275_vm9, %v266_v63, 0 }
  0xfa   : > { %v1648_v25 = vpop.f32.mrf.mxu0  ;;  %7165 = vmatmul.mubr.msk.bf16.gmra.mxu1 %vm1595_vm5, %v8629_v42  ;;  %v10304_v42 = vcombine.low %v8244_v40, %v8330_v20 }
  0xfb   : > { %7125 = vmatmul.mubr.msk.bf16.gmra.mxu0 %vm1595_vm5, %v8670_v38  ;;  %7168 = vmatprep.mubr.msk.bf16.mxu1 %vm7577_vm0, %v10247_v31 }
  0xfc   : > { %v6926_v39 = vpop.f32.mrf.mxu0  ;;  %7128 = vmatprep.mubr.msk.bf16.mxu0 %vm7577_vm0, %v10247_v31  ;;  %v3702_v41 = vrot.slane %v10304_v42, %v7729_v32 }
  0xfe   : > { %v1651_v49 = vpop.f32.mrf.mxu0  ;;  %v8994_v43 = vcombine.low %v3695_v15, %v3702_v41 }
 0x100   : > { %v6927_v6 = vpop.f32.mrf.mxu0 }
 0x101   : > { %v1804_v4 = vpop.f32.mrf.mxu1 }
 0x102   : > { %v8991_v56 = vadd.f32 %v1804_v4, %v1648_v25  ;;  %v1656_v57 = vpop.f32.mrf.mxu0  ;;  %7169 = vmatmul.mubr.msk.bf16.gmra.mxu1 %vm1595_vm5, %v8670_v38  ;;  %v3727_v38 = vrot.slane %v3713_v19, %v7729_v32  ;;  %v7520_v4 = vld [vmem:[%s10176_s2 + $0x58] sm:$0xff]  }
 0x103   : > { %v6970_v11 = vpop.f32.mrf.mxu1  ;;  %7129 = vmatmul.mubr.msk.bf16.gmra.mxu0 %vm1595_vm5, %v8698_v18  ;;  %7172 = vmatprep.mubr.msk.bf16.mxu1 %vm7577_vm0, %v10247_v31 }
 0x104   : > { %v6930_v24 = vpop.f32.mrf.mxu0  ;;  %7132 = vmatprep.mubr.msk.bf16.mxu0 %vm7577_vm0, %v10247_v31 }
 0x105   : > { %v1807_v20 = vpop.f32.mrf.mxu1 }
 0x106   : > { %v9002_v40 = vadd.f32 %v1807_v20, %v1651_v49  ;;  %v1659_v47 = vpop.f32.mrf.mxu0  ;;  %v9013_v49 = vcombine.low %v3720_v7, %v3727_v38 }
 0x107   : > { %v6971_v52 = vpop.f32.mrf.mxu1 }
 0x108   : > { %v6931_v25 = vpop.f32.mrf.mxu0  ;;  %v7524_v52 = vld [vmem:[%s10176_s2 + $0x48] sm:$0xff]  }
 0x109   : > { %v1812_v63 = vpop.f32.mrf.mxu1 }
 0x10a   : > { %v9011_v61 = vadd.f32 %v1812_v63, %v1656_v57  ;;  %v1664_v39 = vpop.f32.mrf.mxu0  ;;  %7173 = vmatmul.mubr.msk.bf16.gmra.mxu1 %vm1595_vm5, %v8698_v18 }
 0x10b   : > { %v6974_v8 = vpop.f32.mrf.mxu1  ;;  %7133 = vmatmul.mubr.msk.bf16.gmra.mxu0 %vm1595_vm5, %v8795_v36  ;;  %7176 = vmatprep.mubr.msk.bf16.mxu1 %vm7577_vm0, %v10247_v31 }
 0x10c   : > { %v6934_v34 = vpop.f32.mrf.mxu0  ;;  %7188 = vmatprep.mubr.msk.bf16.mxu0 %vm7577_vm0, %v10247_v31 }
 0x10d   : > { %v1815_v53 = vpop.f32.mrf.mxu1 }
 0x10e   : > { %v9021_v1 = vadd.f32 %v1815_v53, %v1659_v47  ;;  %v1667_v15 = vpop.f32.mrf.mxu0  ;;  %v7522_v47 = vld [vmem:[%s10176_s2 + $0x50] sm:$0xff]  }
 0x10f   : > { %v6975_v42 = vpop.f32.mrf.mxu1 }
 0x110   : > { %v6935_v41 = vpop.f32.mrf.mxu0 }
 0x111   : > { %v1820_v13 = vpop.f32.mrf.mxu1 }
 0x112   : > { %v9025_v6 = vadd.f32 %v1820_v13, %v1664_v39  ;;  %v1672_v18 = vpop.f32.mrf.mxu0  ;;  %7177 = vmatmul.mubr.msk.bf16.gmra.mxu1 %vm1595_vm5, %v8795_v36  ;;  %v7523_v39 = vld [vmem:[%s10176_s2 + $0x70] sm:$0xff]  }
 0x113   : > { %v6978_v57 = vpop.f32.mrf.mxu1  ;;  %7189 = vmatmul.mubr.msk.bf16.vlgmr.msra.gmra.mxu0 %vm1595_vm5, %v8481_v46  ;;  %7232 = vmatprep.mubr.msk.bf16.mxu1 %vm7577_vm0, %v10247_v31 }
 0x114   : > { %v6938_v19 = vpop.f32.mrf.mxu0  ;;  %7269 = vmatpush3.bf16.msra.mxu0 %v7520_v4  ;;  %7192 = vmatprep.mubr.msk.bf16.mxu0 %vm7577_vm0, %v10247_v31  ;;  %v10308_v57 = vld [vmem:[#allocation5_spill] sm:$0xff] }
 0x115   : > { %v1823_v11 = vpop.f32.mrf.mxu1  ;;  %7270 = vmatprep.subr.bf16.mxu0 %v10247_v31  ;;  %v10222_v19 = vshll.u32 %v10308_v57, 16 }
 0x116   : > { %v9036_v24 = vadd.f32 %v1823_v11, %v1667_v15  ;;  %v1675_v20 = vpop.f32.mrf.mxu0 }
 0x117   : > { %v6979_v36 = vpop.f32.mrf.mxu1 }
 0x118   : > { %v6939_v0 = vpop.f32.mrf.mxu0  ;;  %7271 = vmatpush3.bf16.msra.mxu0 %v7522_v47  ;;  %v4257_v47 = vrot.slane %v10222_v19, 1  ;;  %v10218_v36 = vshll.u32 %v8911_v62, 16 }
 0x119   : > { %v1828_v46 = vpop.f32.mrf.mxu1  ;;  %7272 = vmatprep.subr.bf16.mxu0 %v10247_v31 }
 0x11a   : > { %v9047_v51 = vadd.f32 %v1828_v46, %v1672_v18  ;;  %v1680_v7 = vpop.f32.mrf.mxu0  ;;  %7233 = vmatmul.mubr.msk.bf16.vlgmr.msra.gmra.mxu1 %vm1595_vm5, %v8726_v28  ;;  %v7525_v18 = vld [vmem:[%s10176_s2 + $0x68] sm:$0xff]  }
 0x11b   : > { %v6982_v38 = vpop.f32.mrf.mxu1  ;;  %7313 = vmatpush3.bf16.msra.mxu1 %v7521_v3  ;;  %7193 = vmatmul.mubr.msk.bf16.gmra.mxu0 %vm1595_vm5, %v8552_v45  ;;  %v7526_v45 = vld [vmem:[%s10176_s2 + $0x40] sm:$0xff]  }
 0x11c   : > { %v6942_v25 = vpop.f32.mrf.mxu0  ;;  %7236 = vmatprep.mubr.msk.bf16.mxu1 %vm7577_vm0, %v10247_v31  ;;  %7196 = vmatprep.mubr.msk.bf16.mxu0 %vm7577_vm0, %v10247_v31  ;;  %v4259_v38 = vrot.slane %v10218_v36, 1 }
 0x11d   : > { %v1831_v63 = vpop.f32.mrf.mxu1  ;;  %7314 = vmatprep.subr.bf16.mxu1 %v10247_v31  ;;  %7273 = vmatpush3.bf16.msra.mxu0 %v7524_v52 }
 0x11e   : > { %v9060_v8 = vadd.f32 %v1831_v63, %v1675_v20  ;;  %v1683_v34 = vpop.f32.mrf.mxu0  ;;  %7274 = vmatprep.subr.bf16.mxu0 %v10247_v31 }
 0x11f   : > { %v6983_v53 = vpop.f32.mrf.mxu1  ;;  %7315 = vmatpush3.bf16.msra.mxu1 %v7523_v39 }
 0x120   : > { %v6943_v15 = vpop.f32.mrf.mxu0  ;;  %7316 = vmatprep.subr.bf16.mxu1 %v10247_v31 }
 0x121   : > { %v1836_v42 = vpop.f32.mrf.mxu1  ;;  %7275 = vmatpush3.bf16.msra.mxu0 %v7526_v45 }
 0x122   : > { %v9071_v41 = vadd.f32 %v1836_v42, %v1680_v7  ;;  %v1688_v13 = vpop.f32.mrf.mxu0  ;;  %7237 = vmatmul.mubr.msk.bf16.gmra.mxu1 %vm1595_vm5, %v8741_v58  ;;  %7356 = vmatprep.subr.bf16.mxu0 %v10247_v31  ;;  %v10223_v7 = vshrl.u32 %v10308_v57, 16 }
 0x123   : > { %v6986_v4 = vpop.f32.mrf.mxu1  ;;  %7197 = vmatmul.mubr.msk.bf16.gmra.mxu0 %vm1595_vm5, %v8624_v23  ;;  %7240 = vmatprep.mubr.msk.bf16.mxu1 %vm7577_vm0, %v10247_v31  ;;  %v7527_v23 = vld [vmem:[%s10176_s2 + $0x60] sm:$0xff]  }
 0x124   : > { %v6946_v11 = vpop.f32.mrf.mxu0  ;;  %7200 = vmatprep.mubr.msk.bf16.mxu0 %vm7577_vm0, %v10247_v31  ;;  %7317 = vmatpush3.bf16.msra.mxu1 %v7525_v18  ;;  %v4258_v63 = vor.u32 %v4257_v47, %v10223_v7  ;;  %v341_v4 = vshrl.u32 %v8989_v12, 16  ;;  %v10217_v47 = vshll.u32 %v8929_v9, 16 }
 0x125   : > { %v1839_v20 = vpop.f32.mrf.mxu1  ;;  %7318 = vmatprep.subr.bf16.mxu1 %v10247_v31 }
 0x126   : > { %v9088_v0 = vadd.f32 %v1839_v20, %v1683_v34  ;;  %v1691_v46 = vpop.f32.mrf.mxu0  ;;  %v9105_v45 = vsel %vm1875_vm6, %v4258_v63, %v4259_v38  ;;  %v10221_v20 = vshrl.u32 %v8911_v62, 16  ;;  %v9126_v63 = vrot.slane %v341_v4, 7 }
 0x127   : > { %v6987_v3 = vpop.f32.mrf.mxu1  ;;  %10309 = vst [vmem:[#allocation3_spill] sm:$0xff] %v9105_v45 }
 0x128   : > { %v6947_v52 = vpop.f32.mrf.mxu0  ;;  %7319 = vmatpush3.bf16.msra.mxu1 %v7527_v23 }
 0x129   : > { %v1844_v25 = vpop.f32.mrf.mxu1  ;;  %7400 = vmatprep.subr.bf16.mxu1 %v10247_v31 }
 0x12a   : > { %v9101_v39 = vadd.f32 %v1844_v25, %v1688_v13  ;;  %v1696_v34 = vpop.f32.mrf.mxu0  ;;  %7241 = vmatmul.mubr.msk.bf16.gmra.mxu1 %vm1595_vm5, %v8753_v30 }
 0x12b   : > { %v6990_v53 = vpop.f32.mrf.mxu1  ;;  %7201 = vmatmul.mubr.msk.bf16.gmra.mxu0 %vm1595_vm5, %v8684_v59  ;;  %7244 = vmatprep.mubr.msk.bf16.mxu1 %vm7577_vm0, %v10247_v31  ;;  %v4261_v59 = vor.u32 %v4259_v38, %v10221_v20 }
 0x12c   : > { %v6950_v15 = vpop.f32.mrf.mxu0  ;;  %7204 = vmatprep.mubr.msk.bf16.mxu0 %vm7577_vm0, %v10247_v31  ;;  %v344_v53 = vshll.u32 %v8989_v12, 16 }
 0x12d   : > { %v1847_v42 = vpop.f32.mrf.mxu1 }
 0x12e   : > { %v9113_v13 = vadd.f32 %v1847_v42, %v1691_v46  ;;  %v1699_v18 = vpop.f32.mrf.mxu0  ;;  %v4262_v46 = vrot.slane %v10217_v47, 1  ;;  %v346_v12 = vor.u32 %v344_v53, %v9126_v63 }
 0x12f   : > { %v6991_v11 = vpop.f32.mrf.mxu1 }
 0x130   : > { %v6951_v23 = vpop.f32.mrf.mxu0  ;;  %v9130_v42 = vsel %vm1875_vm6, %v4261_v59, %v4262_v46  ;;  %v10219_v59 = vshll.u32 %v8947_v14, 16  ;;  %v379_v47 = vsel %vm7718_vm3, 0, %v346_v12 }
 0x131   : > { %v1852_v3 = vpop.f32.mrf.mxu1  ;;  %10310 = vst [vmem:[#allocation4_spill] sm:$0xff] %v9130_v42  ;;  %v977_v53 = vcombine.high %v379_v47, %v379_v47 }
 0x132   : > { %v9124_v52 = vadd.f32 %v1852_v3, %v1696_v34  ;;  %v1704_v25 = vpop.f32.mrf.mxu0  ;;  %7245 = vmatmul.mubr.msk.bf16.gmra.mxu1 %vm1595_vm5, %v8775_v37  ;;  %v10220_v3 = vshrl.u32 %v8929_v9, 16 }
 0x133   : > { %v6994_v15 = vpop.f32.mrf.mxu1  ;;  %7205 = vmatmul.mubr.msk.bf16.gmra.mxu0 %vm1595_vm5, %v8732_v60  ;;  %7248 = vmatprep.mubr.msk.bf16.mxu1 %vm7577_vm0, %v10247_v31 }
 0x134   : > { %v6954_v11 = vpop.f32.mrf.mxu0  ;;  %7208 = vmatprep.mubr.msk.bf16.mxu0 %vm7577_vm0, %v10247_v31  ;;  %v4264_v60 = vor.u32 %v4262_v46, %v10220_v3  ;;  %v991_v3 = vrot.slane %v977_v53, %v7729_v32  ;;  %v6650_v53 = vcombine.high %v8573_v22, %v8680_v50 }
 0x135   : > { %v1855_v38 = vpop.f32.mrf.mxu1 }
 0x136   : > { %v9138_v34 = vadd.f32 %v1855_v38, %v1699_v18  ;;  %v1707_v4 = vpop.f32.mrf.mxu0  ;;  %v4265_v18 = vrot.slane %v10219_v59, 1  ;;  %v10224_v59 = vshll.u32 %v8970_v16, 16  ;;  %v993_v7 = vcombine.high %v991_v3, %v991_v3 }
 0x137   : > { %v6995_v23 = vpop.f32.mrf.mxu1 }
 0x138   : > { %v6955_v15 = vpop.f32.mrf.mxu0  ;;  %v9154_v23 = vsel %vm1875_vm6, %v4264_v60, %v4265_v18  ;;  %v10225_v60 = vshrl.u32 %v8947_v14, 16 }
 0x139   : > { %v1860_v11 = vpop.f32.mrf.mxu1  ;;  %10311 = vst [vmem:[#allocation6_spill] sm:$0xff] %v9154_v23  ;;  %v3730_v23 = vcombine.low %v8677_v54, %v8688_v2 }
 0x13a   : > { %v9149_v38 = vadd.f32 %v1860_v11, %v1704_v25  ;;  %7249 = vmatmul.mubr.msk.bf16.gmra.mxu1 %vm1595_vm5, %v8801_v48  ;;  %v984_v25 = vrot.slane %v379_v47, %v7729_v32  ;;  %v4267_v19 = vor.u32 %v4265_v18, %v10225_v60  ;;  %v4268_v47 = vrot.slane %v10224_v59, 1 }
 0x13b   : > { %v6998_v36 = vpop.f32.mrf.mxu1  ;;  %v1712_v15 = vpop.f32.mrf.mxu0  ;;  %7209 = vmatmul.mubr.msk.bf16.gmra.mxu0 %vm1595_vm5, %v8768_v44  ;;  %7252 = vmatprep.mubr.msk.bf16.mxu1 %vm7577_vm0, %v10247_v31  ;;  %v6651_v18 = vcombine.high %v8677_v54, %v8688_v2  ;;  %v1007_v2 = vrot.slane %v991_v3, %v7729_v32 }
 0x13c   : > { %7212 = vmatprep.mubr.msk.bf16.mxu0 %vm7577_vm0, %v10247_v31  ;;  %v1000_v20 = vrot.slane %v984_v25, %v7729_v32 }
 0x13d   : > { %v1863_v46 = vpop.f32.mrf.mxu1  ;;  %v6958_v36 = vpop.f32.mrf.mxu0 }
 0x13e   : > { %v9163_v11 = vadd.f32 %v1863_v46, %v1707_v4  ;;  %v992_v46 = vcombine.high %v984_v25, %v984_v25  ;;  %v9176_v36 = vsel %vm1875_vm6, %v4267_v19, %v4268_v47  ;;  %v389_v25 = vsel %vm7718_vm3, %v9126_v63, 0 }
 0x13f   : > { %v6999_v12 = vpop.f32.mrf.mxu1  ;;  %v1715_v44 = vpop.f32.mrf.mxu0  ;;  %10312 = vst [vmem:[#allocation7_spill] sm:$0xff] %v9176_v36  ;;  %v3732_v22 = vcombine.low %v8714_v55, %v1000_v20  ;;  %v1032_v60 = vrot.slane %v389_v25, %v7729_v32  ;;  %v1022_v45 = vcombine.high %v1000_v20, %v1000_v20 }
 0x141   : > { %v6959_v4 = vpop.f32.mrf.mxu0  ;;  %v3760_v3 = vrot.slane %v3732_v22, %v7729_v32 }
 0x142   : > { %v1868_v12 = vpop.f32.mrf.mxu1  ;;  %7253 = vmatmul.mubr.msk.bf16.gmra.mxu1 %vm1595_vm5, %v8827_v33 }
 0x143   : > { %v9189_v4 = vadd.f32 %v1868_v12, %v1712_v15  ;;  %v2000_v19 = vpop.f32.mrf.mxu0  ;;  %7213 = vmatmul.mubr.msk.bf16.gmra.mxu0 %vm1595_vm5, %v8793_v17  ;;  %7256 = vmatprep.mubr.msk.bf16.mxu1 %vm7577_vm0, %v10247_v31  ;;  %v1014_v17 = vrot.slane %v992_v46, %v7729_v32  ;;  %v1021_v12 = vrot.slane %v993_v7, %v7729_v32  ;;  %v10315_v46 = vshll.u32 %v8994_v43, 16 }
 0x144   : > { %v2071_v50 = vadd.f32 %v2000_v19, %v8991_v56  ;;  %v7002_v59 = vpop.f32.mrf.mxu1  ;;  %7216 = vmatprep.mubr.msk.bf16.mxu0 %vm7577_vm0, %v10247_v31  ;;  %v3739_v56 = vrot.slane %v6650_v53, %v7729_v32  ;;  %v3753_v19 = vrot.slane %v6651_v18, %v7729_v32  ;;  %v1023_v53 = vcombine.high %v1007_v2, %v1007_v2 }
 0x145   : > { %10313 = vst [vmem:[#allocation8_spill] sm:$0xff] %v9189_v4  ;;  %v7014_v63 = vpop.f32.mrf.mxu0  ;;  %v3746_v59 = vrot.slane %v3730_v23, %v7729_v32  ;;  %v4271_v7 = vrot.slane %v10315_v46, 1  ;;  %v1024_v23 = vcombine.high %v1014_v17, %v1014_v17  ;;  %v1025_v33 = vcombine.high %v1021_v12, %v1021_v12 }
 0x146   : > { %v1871_v55 = vpop.f32.mrf.mxu1  ;;  %v10314_v63 = vshrl.u32 %v8970_v16, 16 }
 0x147   : > { %v9208_v36 = vadd.f32 %v1871_v55, %v1715_v44  ;;  %v2003_v54 = vpop.f32.mrf.mxu0  ;;  %v1039_v44 = vrot.slane %v1032_v60, %v7729_v32  ;;  %v3867_v60 = vshrl.u32 %v8994_v43, 16 }
 0x148   : > { %v4270_v15 = vor.u32 %v4268_v47, %v10314_v63  ;;  %v2072_v25 = vadd.f32 %v2003_v54, %v9002_v40  ;;  %v7003_v42 = vpop.f32.mrf.mxu1  ;;  %v3761_v47 = vcombine.low %v3739_v56, %v3746_v59  ;;  %v3762_v40 = vcombine.low %v3753_v19, %v3760_v3 }
 0x149   : > { %v7015_v4 = vpop.f32.mrf.mxu0  ;;  %v3780_v56 = vcombine.low %v1021_v12, %v1023_v53  ;;  %v3781_v59 = vcombine.low %v1025_v33, %v1039_v44  ;;  %v4273_v3 = vor.u32 %v4271_v7, %v3867_v60 }
 0x14a   : > { %v9218_v18 = vsel %vm1875_vm6, %v4270_v15, %v4271_v7  ;;  %v2697_v22 = vpop.f32.mrf.mxu1  ;;  %7257 = vmatmul.mubr.msk.bf16.gmra.mxu1 %vm1595_vm5, %v8843_v29  ;;  %v3778_v4 = vcombine.low %v1014_v17, %v1022_v45  ;;  %v3779_v15 = vcombine.low %v1024_v23, %v1007_v2  ;;  %v3769_v46 = vrot.slane %v3761_v47, %v7729_v32 }
 0x14b   : > { %v9222_v55 = vadd.f32 %v2697_v22, %v2071_v50  ;;  %v2008_v63 = vpop.f32.mrf.mxu0  ;;  %7217 = vmatmul.mubr.msk.bf16.gmra.mxu0 %vm1595_vm5, %v8819_v21  ;;  %7260 = vmatprep.mubr.msk.bf16.mxu1 %vm7577_vm0, %v10247_v31  ;;  %v3878_v50 = vshll.u32 %v9013_v49, 16  ;;  %v3809_v53 = vrot.slane %v3781_v59, %v7729_v32 }
 0x14c   : > { %v2073_v20 = vadd.f32 %v2008_v63, %v9011_v61  ;;  %v7058_v42 = vpop.f32.mrf.mxu1  ;;  %7220 = vmatprep.mubr.msk.bf16.mxu0 %vm7577_vm0, %v10247_v31  ;;  %v3776_v61 = vrot.slane %v3762_v40, %v7729_v32  ;;  %v3788_v2 = vrot.slane %v3778_v4, %v7729_v32  ;;  %v3795_v12 = vrot.slane %v3779_v15, %v7729_v32 }
 0x14d   : > { %v7018_v54 = vpop.f32.mrf.mxu0  ;;  %v4274_v45 = vrot.slane %v3878_v50, 1 }
 0x14e   : > { %v2700_v21 = vpop.f32.mrf.mxu1  ;;  %v9257_v47 = vcombine.low %v3769_v46, %v3776_v61  ;;  %v3875_v54 = vshrl.u32 %v9013_v49, 16  ;;  %v3810_v15 = vcombine.low %v3788_v2, %v3795_v12  ;;  %v10316_v46 = vshrl.u32 %v10308_v57, 16 }
 0x14f   : > { %v9234_v22 = vadd.f32 %v2700_v21, %v2072_v25  ;;  %v2011_v19 = vpop.f32.mrf.mxu0  ;;  %v3802_v25 = vrot.slane %v3780_v56, %v7729_v32  ;;  %v9247_v23 = vsel %vm1875_vm6, %v4273_v3, %v4274_v45 }
 0x150   : > { %v2074_v17 = vadd.f32 %v2011_v19, %v9021_v1  ;;  %v7059_v63 = vpop.f32.mrf.mxu1  ;;  %v9273_v19 = vrot.slane %v10316_v46, 7  ;;  %v4276_v61 = vor.u32 %v4274_v45, %v3875_v54  ;;  %v7529_v46 = vld [vmem:[%s10176_s2 + $0xb8] sm:$0xff]  }
 0x151   : > { %v7019_v33 = vpop.f32.mrf.mxu0  ;;  %v3811_v56 = vcombine.low %v3802_v25, %v3809_v53 }
 0x152   : > { %v2705_v44 = vpop.f32.mrf.mxu1  ;;  %7261 = vmatmul.mubr.msk.bf16.gmra.mxu1 %vm1595_vm5, %v8865_v10  ;;  %v3818_v33 = vrot.slane %v3810_v15, %v7729_v32 }
 0x153   : > { %v9251_v7 = vadd.f32 %v2705_v44, %v2073_v20  ;;  %v2016_v1 = vpop.f32.mrf.mxu0  ;;  %7221 = vmatmul.mubr.msk.bf16.gmra.mxu0 %vm1595_vm5, %v8837_v26  ;;  %7264 = vmatprep.mubr.msk.bf16.mxu1 %vm7577_vm0, %v10247_v31  ;;  %v3886_v20 = vshll.u32 %v9257_v47, 16  ;;  %v9267_v26 = vsel %vm8814_vm8, %v8883_v5, 0  ;;  %v7528_v5 = vld [vmem:[%s10176_s2 + $0x98] sm:$0xff]   ;;  %v3825_v12 = vrot.slane %v3811_v56, %v7729_v32 }
 0x154   : > { %v2075_v40 = vadd.f32 %v2016_v1, %v9025_v6  ;;  %v7062_v42 = vpop.f32.mrf.mxu1  ;;  %7276 = vmatprep.mubr.msk.bf16.mxu0 %vm7577_vm0, %v10247_v31  ;;  %v10317_v44 = vshll.u32 %v10308_v57, 16  ;;  %v3883_v56 = vshrl.u32 %v9257_v47, 16 }
 0x155   : > { %v7022_v4 = vpop.f32.mrf.mxu0  ;;  %v4277_v3 = vrot.slane %v3886_v20, 1 }
 0x156   : > { %v2708_v59 = vpop.f32.mrf.mxu1  ;;  %v3833_v32 = vor.u32 %v10317_v44, %v9273_v19 }
 0x157   : > { %v9269_v21 = vadd.f32 %v2708_v59, %v2074_v17  ;;  %v2019_v6 = vpop.f32.mrf.mxu0  ;;  %v9286_v25 = vsel %vm1875_vm6, %v4276_v61, %v4277_v3  ;;  %v10318_v61 = vshrl.u32 %v8911_v62, 16 }
 0x158   : > { %v2076_v63 = vadd.f32 %v2019_v6, %v9036_v24  ;;  %v7063_v2 = vpop.f32.mrf.mxu1  ;;  %v3899_v6 = vsel %vm7718_vm3, 0, %v3833_v32 }
 0x159   : > { %v7023_v17 = vpop.f32.mrf.mxu0  ;;  %v3837_v2 = vrot.slane %v10318_v61, 7  ;;  %v10320_v61 = vshrl.u32 %v8929_v9, 16 }
 0x15a   : > { %v2713_v53 = vpop.f32.mrf.mxu1  ;;  %7265 = vmatmul.mubr.msk.bf16.gmra.mxu1 %vm1595_vm5, %v9267_v26 }
 0x15b   : > { %v9290_v45 = vadd.f32 %v2713_v53, %v2075_v40  ;;  %v2024_v24 = vpop.f32.mrf.mxu0  ;;  %7277 = vmatmul.mubr.msk.bf16.vlgmr.msra.gmra.mxu0 %vm1595_vm5, %v8726_v28  ;;  %7320 = vmatprep.mubr.msk.bf16.mxu1 %vm7577_vm0, %v10247_v31  ;;  %v7530_v40 = vld [vmem:[%s10176_s2 + $0x90] sm:$0xff]   ;;  %v9306_v28 = vcombine.low %v3818_v33, %v3825_v12 }
 0x15c   : > { %v2077_v1 = vadd.f32 %v2024_v24, %v9047_v51  ;;  %v7066_v42 = vpop.f32.mrf.mxu1  ;;  %7357 = vmatpush3.bf16.msra.mxu0 %v7528_v5  ;;  %7280 = vmatprep.mubr.msk.bf16.mxu0 %vm7577_vm0, %v10247_v31 }
 0x15d   : > { %v7026_v4 = vpop.f32.mrf.mxu0  ;;  %7358 = vmatprep.subr.bf16.mxu0 %v10247_v31  ;;  %v3894_v5 = vshll.u32 %v9306_v28, 16  ;;  %v7531_v42 = vld [vmem:[%s10176_s2 + $0xb0] sm:$0xff]  }
 0x15e   : > { %v2716_v15 = vpop.f32.mrf.mxu1 }
 0x15f   : > { %v9309_v59 = vadd.f32 %v2716_v15, %v2076_v63  ;;  %v2027_v51 = vpop.f32.mrf.mxu0  ;;  %v4279_v63 = vor.u32 %v4277_v3, %v3883_v56  ;;  %v9328_v53 = vrot.slane %v3894_v5, 1  ;;  %v10319_v3 = vshll.u32 %v8911_v62, 16  ;;  %v7534_v15 = vld [vmem:[%s10176_s2 + $0x80] sm:$0xff]  }
 0x160   : > { %v2078_v17 = vadd.f32 %v2027_v51, %v9060_v8  ;;  %v7067_v33 = vpop.f32.mrf.mxu1  ;;  %7359 = vmatpush3.bf16.msra.mxu0 %v7530_v40 }
 0x161   : > { %v7027_v12 = vpop.f32.mrf.mxu0  ;;  %7360 = vmatprep.subr.bf16.mxu0 %v10247_v31  ;;  %v3840_v32 = vor.u32 %v10319_v3, %v3837_v2  ;;  %v9342_v40 = vsel %vm1875_vm6, %v4279_v63, %v9328_v53  ;;  %v3845_v33 = vrot.slane %v10320_v61, 7 }
 0x162   : > { %v2721_v24 = vpop.f32.mrf.mxu1  ;;  %7321 = vmatmul.mubr.msk.bf16.vlgmr.msra.gmra.mxu1 %vm1595_vm5, %v3899_v6 }
 0x163   : > { %v9331_v8 = vadd.f32 %v2721_v24, %v2077_v1  ;;  %7401 = vmatpush3.bf16.msra.mxu1 %v7529_v46  ;;  %v2032_v44 = vpop.f32.mrf.mxu0  ;;  %7281 = vmatmul.mubr.msk.bf16.gmra.mxu0 %vm1595_vm5, %v8741_v58  ;;  %v3841_v46 = vsel %vm368_vm1, %v9273_v19, %v3840_v32 }
 0x164   : > { %v2079_v4 = vadd.f32 %v2032_v44, %v9071_v41  ;;  %v7070_v1 = vpop.f32.mrf.mxu1  ;;  %7324 = vmatprep.mubr.msk.bf16.mxu1 %vm7577_vm0, %v10247_v31  ;;  %7284 = vmatprep.mubr.msk.bf16.mxu0 %vm7577_vm0, %v10247_v31 }
 0x165   : > { %v7030_v58 = vpop.f32.mrf.mxu0  ;;  %7402 = vmatprep.subr.bf16.mxu1 %v10247_v31  ;;  %7361 = vmatpush3.bf16.msra.mxu0 %v7532_v27  ;;  %v7533_v27 = vld [vmem:[%s10176_s2 + $0xa8] sm:$0xff]  }
 0x166   : > { %v2724_v51 = vpop.f32.mrf.mxu1  ;;  %7362 = vmatprep.subr.bf16.mxu0 %v10247_v31 }
 0x167   : > { %v9354_v6 = vadd.f32 %v2724_v51, %v2078_v17  ;;  %v2035_v41 = vpop.f32.mrf.mxu0  ;;  %7403 = vmatpush3.bf16.msra.mxu1 %v7531_v42 }
 0x168   : > { %v2080_v63 = vadd.f32 %v2035_v41, %v9088_v0  ;;  %v7071_v12 = vpop.f32.mrf.mxu1  ;;  %7404 = vmatprep.subr.bf16.mxu1 %v10247_v31  ;;  %v10321_v0 = vshll.u32 %v8929_v9, 16 }
 0x169   : > { %v7031_v24 = vpop.f32.mrf.mxu0  ;;  %7363 = vmatpush3.bf16.msra.mxu0 %v7534_v15 }
 0x16a   : > { %v2729_v17 = vpop.f32.mrf.mxu1  ;;  %7325 = vmatmul.mubr.msk.bf16.gmra.mxu1 %vm1595_vm5, %v3841_v46  ;;  %v3848_v3 = vor.u32 %v10321_v0, %v3845_v33 }
 0x16b   : > { %v9366_v44 = vadd.f32 %v2729_v17, %v2079_v4  ;;  %v2040_v19 = vpop.f32.mrf.mxu0  ;;  %7285 = vmatmul.mubr.msk.bf16.gmra.mxu0 %vm1595_vm5, %v8753_v30  ;;  %7328 = vmatprep.mubr.msk.bf16.mxu1 %vm7577_vm0, %v10247_v31  ;;  %v7535_v4 = vld [vmem:[%s10176_s2 + $0xa0] sm:$0xff]  }
 0x16c   : > { %v2081_v32 = vadd.f32 %v2040_v19, %v9101_v39  ;;  %v7074_v42 = vpop.f32.mrf.mxu1  ;;  %7288 = vmatprep.mubr.msk.bf16.mxu0 %vm7577_vm0, %v10247_v31  ;;  %7405 = vmatpush3.bf16.msra.mxu1 %v7533_v27  ;;  %v3849_v51 = vsel %vm368_vm1, %v3837_v2, %v3848_v3  ;;  %v10322_v39 = vshrl.u32 %v8947_v14, 16  ;;  %v10323_v2 = vshll.u32 %v8947_v14, 16 }
 0x16d   : > { %v7034_v1 = vpop.f32.mrf.mxu0  ;;  %7406 = vmatprep.subr.bf16.mxu1 %v10247_v31 }
 0x16e   : > { %v2732_v30 = vpop.f32.mrf.mxu1  ;;  %v3853_v41 = vrot.slane %v10322_v39, 7 }
 0x16f   : > { %v9381_v58 = vadd.f32 %v2732_v30, %v2080_v63  ;;  %v2043_v15 = vpop.f32.mrf.mxu0 }
 0x170   : > { %v2082_v46 = vadd.f32 %v2043_v15, %v9113_v13  ;;  %v7075_v61 = vpop.f32.mrf.mxu1  ;;  %7407 = vmatpush3.bf16.msra.mxu1 %v7535_v4  ;;  %v3856_v63 = vor.u32 %v10323_v2, %v3853_v41 }
 0x171   : > { %v7035_v12 = vpop.f32.mrf.mxu0 }
 0x172   : > { %v2737_v27 = vpop.f32.mrf.mxu1  ;;  %7329 = vmatmul.mubr.msk.bf16.gmra.mxu1 %vm1595_vm5, %v3849_v51  ;;  %v3857_v4 = vsel %vm368_vm1, %v3845_v33, %v3856_v63  ;;  %v10325_v33 = vshll.u32 %v8970_v16, 16 }
 0x173   : > { %v9388_v24 = vadd.f32 %v2737_v27, %v2081_v32  ;;  %v2048_v17 = vpop.f32.mrf.mxu0  ;;  %7289 = vmatmul.mubr.msk.bf16.gmra.mxu0 %vm1595_vm5, %v8775_v37  ;;  %7332 = vmatprep.mubr.msk.bf16.mxu1 %vm7577_vm0, %v10247_v31  ;;  %v10324_v37 = vshrl.u32 %v8970_v16, 16 }
 0x174   : > { %v2083_v13 = vadd.f32 %v2048_v17, %v9124_v52  ;;  %v7078_v19 = vpop.f32.mrf.mxu1  ;;  %7292 = vmatprep.mubr.msk.bf16.mxu0 %vm7577_vm0, %v10247_v31 }
 0x175   : > { %v7038_v0 = vpop.f32.mrf.mxu0  ;;  %v3861_v1 = vrot.slane %v10324_v37, 7  ;;  %v10326_v37 = vld [vmem:[#allocation22_spill] sm:$0xff] }
 0x176   : > { %v2740_v3 = vpop.f32.mrf.mxu1 }
 0x177   : > { %v9399_v32 = vadd.f32 %v2740_v3, %v2082_v46  ;;  %v2051_v42 = vpop.f32.mrf.mxu0  ;;  %v3864_v46 = vor.u32 %v10325_v33, %v3861_v1 }
 0x178   : > { %v2084_v30 = vadd.f32 %v2051_v42, %v9138_v34  ;;  %v7079_v15 = vpop.f32.mrf.mxu1 }
 0x179   : > { %v7039_v51 = vpop.f32.mrf.mxu0 }
 0x17a   : > { %v2745_v39 = vpop.f32.mrf.mxu1  ;;  %7333 = vmatmul.mubr.msk.bf16.gmra.mxu1 %vm1595_vm5, %v3857_v4 }
 0x17b   : > { %v9406_v52 = vadd.f32 %v2745_v39, %v2083_v13  ;;  %v2056_v61 = vpop.f32.mrf.mxu0  ;;  %7293 = vmatmul.mubr.msk.bf16.gmra.mxu0 %vm1595_vm5, %v8801_v48  ;;  %7336 = vmatprep.mubr.msk.bf16.mxu1 %vm7577_vm0, %v10247_v31  ;;  %v3865_v13 = vsel %vm368_vm1, %v3853_v41, %v3864_v46  ;;  %v3869_v48 = vrot.slane %v3867_v60, 7  ;;  %v10327_v41 = vshll.u32 %v8994_v43, 16  ;;  %v10328_v60 = vld [vmem:[#allocation8_spill] sm:$0xff] }
 0x17c   : > { %v2085_v12 = vadd.f32 %v2056_v61, %v9149_v38  ;;  %v7082_v34 = vpop.f32.mrf.mxu1  ;;  %7296 = vmatprep.mubr.msk.bf16.mxu0 %vm7577_vm0, %v10247_v31 }
 0x17d   : > { %v7042_v27 = vpop.f32.mrf.mxu0 }
 0x17e   : > { %v2748_v17 = vpop.f32.mrf.mxu1 }
 0x17f   : > { %v9417_v2 = vadd.f32 %v2748_v17, %v2084_v30  ;;  %v2059_v63 = vpop.f32.mrf.mxu0  ;;  %v3872_v30 = vor.u32 %v10327_v41, %v3869_v48 }
 0x180   : > { %v2086_v19 = vadd.f32 %v2059_v63, %v9163_v11  ;;  %v7083_v0 = vpop.f32.mrf.mxu1 }
 0x181   : > { %v7043_v3 = vpop.f32.mrf.mxu0  ;;  %v3873_v46 = vsel %vm368_vm1, %v3861_v1, %v3872_v30 }
 0x182   : > { %v2753_v42 = vpop.f32.mrf.mxu1  ;;  %7337 = vmatmul.mubr.msk.bf16.gmra.mxu1 %vm1595_vm5, %v3865_v13 }
 0x183   : > { %v9424_v38 = vadd.f32 %v2753_v42, %v2085_v12  ;;  %v2064_v4 = vpop.f32.mrf.mxu0  ;;  %7297 = vmatmul.mubr.msk.bf16.gmra.mxu0 %vm1595_vm5, %v10326_v37  ;;  %7340 = vmatprep.mubr.msk.bf16.mxu1 %vm7577_vm0, %v10247_v31  ;;  %v3877_v12 = vrot.slane %v3875_v54, 7  ;;  %v3885_v37 = vrot.slane %v3883_v56, 7  ;;  %v3891_v56 = vshrl.u32 %v9306_v28, 16 }
 0x184   : > { %v2087_v15 = vadd.f32 %v2064_v4, %v10328_v60  ;;  %v7086_v11 = vpop.f32.mrf.mxu1  ;;  %7300 = vmatprep.mubr.msk.bf16.mxu0 %vm7577_vm0, %v10247_v31 }
 0x185   : > { %v7046_v51 = vpop.f32.mrf.mxu0  ;;  %v3880_v1 = vor.u32 %v3878_v50, %v3877_v12 }
 0x186   : > { %v2756_v39 = vpop.f32.mrf.mxu1 }
 0x187   : > { %v9435_v61 = vadd.f32 %v2756_v39, %v2086_v19  ;;  %v2067_v33 = vpop.f32.mrf.mxu0 }
 0x188   : > { %v2088_v34 = vadd.f32 %v2067_v33, %v9208_v36  ;;  %v7087_v27 = vpop.f32.mrf.mxu1  ;;  %v3893_v33 = vrot.slane %v3891_v56, 7 }
 0x189   : > { %v7047_v17 = vpop.f32.mrf.mxu0 }
 0x18a   : > { %v2761_v63 = vpop.f32.mrf.mxu1  ;;  %7341 = vmatmul.mubr.msk.bf16.gmra.mxu1 %vm1595_vm5, %v3873_v46 }
 0x18b   : > { %v9442_v13 = vadd.f32 %v2761_v63, %v2087_v15  ;;  %v2879_v0 = vpop.f32.mrf.mxu0  ;;  %7301 = vmatmul.mubr.msk.bf16.gmra.mxu0 %vm1595_vm5, %v8843_v29  ;;  %7344 = vmatprep.mubr.msk.bf16.mxu1 %vm7577_vm0, %v10247_v31  ;;  %v3881_v29 = vsel %vm368_vm1, %v3869_v48, %v3880_v1  ;;  %v3888_v48 = vor.u32 %v3886_v20, %v3885_v37 }
 0x18c   : > { %v9451_v54 = vadd.f32 %v2879_v0, %v9222_v55  ;;  %v7090_v36 = vpop.f32.mrf.mxu1  ;;  %7304 = vmatprep.mubr.msk.bf16.mxu0 %vm7577_vm0, %v10247_v31 }
 0x18d   : > { %v7102_v19 = vpop.f32.mrf.mxu0 }
 0x18e   : > { %v2764_v3 = vpop.f32.mrf.mxu1 }
 0x18f   : > { %v9455_v42 = vadd.f32 %v2764_v3, %v2088_v34  ;;  %v2882_v4 = vpop.f32.mrf.mxu0 }
 0x190   : > { %v9461_v41 = vadd.f32 %v2882_v4, %v9234_v22  ;;  %v7091_v50 = vpop.f32.mrf.mxu1 }
 0x191   : > { %v7103_v55 = vpop.f32.mrf.mxu0 }
 0x192   : > { %v9463_v30 = vpop.f32.mrf.mxu1  ;;  %7345 = vmatmul.mubr.msk.bf16.gmra.mxu1 %vm1595_vm5, %v3881_v29 }
 0x193   : > { %v2887_v60 = vpop.f32.mrf.mxu0  ;;  %7305 = vmatmul.mubr.msk.bf16.gmra.mxu0 %vm1595_vm5, %v8865_v10  ;;  %7348 = vmatprep.mubr.msk.bf16.mxu1 %vm7577_vm0, %v10247_v31  ;;  %v3889_v10 = vsel %vm368_vm1, %v3877_v12, %v3888_v48  ;;  %v3896_v12 = vor.u32 %v3894_v5, %v3893_v33 }
 0x194   : > { %v9474_v22 = vadd.f32 %v2887_v60, %v9251_v7  ;;  %v7146_v15 = vpop.f32.mrf.mxu1  ;;  %7308 = vmatprep.mubr.msk.bf16.mxu0 %vm7577_vm0, %v10247_v31 }
 0x195   : > { %v7106_v11 = vpop.f32.mrf.mxu0  ;;  %v3897_v36 = vsel %vm368_vm1, %v3885_v37, %v3896_v12  ;;  %v10329_v15 = vld [vmem:[#allocation3_spill] sm:$0xff]  ;;  %v10330_v12 = vld [vmem:[#allocation4_spill] sm:$0xff] }
 0x196   : > { %v9478_v51 = vpop.f32.mrf.mxu1 }
 0x197   : > { %v2890_v39 = vpop.f32.mrf.mxu0 }
 0x198   : > { %v9484_v20 = vadd.f32 %v2890_v39, %v9269_v21  ;;  %v7147_v46 = vpop.f32.mrf.mxu1 }
 0x199   : > { %v7107_v34 = vpop.f32.mrf.mxu0 }
 0x19a   : > { %v9486_v7 = vpop.f32.mrf.mxu1  ;;  %7349 = vmatmul.mubr.msk.bf16.gmra.mxu1 %vm1595_vm5, %v3889_v10 }
 0x19b   : > { %v2895_v27 = vpop.f32.mrf.mxu0  ;;  %7309 = vmatmul.mubr.msk.bf16.gmra.mxu0 %vm1595_vm5, %v9267_v26  ;;  %7352 = vmatprep.mubr.msk.bf16.mxu1 %vm7577_vm0, %v10247_v31 }
 0x19c   : > { %v9496_v17 = vadd.f32 %v2895_v27, %v9290_v45  ;;  %v7150_v21 = vpop.f32.mrf.mxu1  ;;  %7364 = vmatprep.mubr.msk.bf16.mxu0 %vm7577_vm0, %v10247_v31 }
 0x19d   : > { %v7110_v63 = vpop.f32.mrf.mxu0 }
 0x19e   : > { %v9500_v0 = vpop.f32.mrf.mxu1 }
 0x19f   : > { %v2898_v1 = vpop.f32.mrf.mxu0 }
 0x1a0   : > { %v9504_v26 = vadd.f32 %v2898_v1, %v9309_v59  ;;  %v7151_v19 = vpop.f32.mrf.mxu1 }
 0x1a1   : > { %v7111_v3 = vpop.f32.mrf.mxu0 }
 0x1a2   : > { %v9506_v4 = vpop.f32.mrf.mxu1  ;;  %7353 = vmatmul.mubr.msk.bf16.gmra.mxu1 %vm1595_vm5, %v3897_v36 }
 0x1a3   : > { %v2903_v45 = vpop.f32.mrf.mxu0  ;;  %7365 = vmatmul.mubr.msk.bf16.vlgmr.msra.gmra.mxu0 %vm1595_vm5, %v10308_v57  ;;  %7408 = vmatprep.mubr.msk.bf16.mxu1 %vm7577_vm0, %v10247_v31 }
 0x1a4   : > { %v9514_v5 = vadd.f32 %v2903_v45, %v9331_v8  ;;  %v7154_v29 = vpop.f32.mrf.mxu1  ;;  %7368 = vmatprep.mubr.msk.bf16.mxu0 %vm7577_vm0, %v10247_v31 }
 0x1a5   : > { %v7114_v59 = vpop.f32.mrf.mxu0  ;;  %v10331_v29 = vld [vmem:[#allocation6_spill] sm:$0xff] }
 0x1a6   : > { %v9518_v37 = vpop.f32.mrf.mxu1 }
 0x1a7   : > { %v2906_v50 = vpop.f32.mrf.mxu0 }
 0x1a8   : > { %v9521_v55 = vadd.f32 %v2906_v50, %v9354_v6  ;;  %v7155_v60 = vpop.f32.mrf.mxu1 }
 0x1a9   : > { %v7115_v48 = vpop.f32.mrf.mxu0 }
 0x1aa   : > { %v9523_v57 = vpop.f32.mrf.mxu1  ;;  %7409 = vmatmul.mubr.msk.bf16.vlgmr.msra.gmra.mxu1 %vm1595_vm5, %v10329_v15 }
 0x1ab   : > { %v2911_v8 = vpop.f32.mrf.mxu0  ;;  %7369 = vmatmul.mubr.msk.bf16.gmra.mxu0 %vm1595_vm5, %v8911_v62  ;;  %7412 = vmatprep.mubr.msk.bf16.mxu1 %vm7577_vm0, %v10247_v31 }
 0x1ac   : > { %v9532_v11 = vadd.f32 %v2911_v8, %v9366_v44  ;;  %v7158_v39 = vpop.f32.mrf.mxu1  ;;  %7372 = vmatprep.mubr.msk.bf16.mxu0 %vm7577_vm0, %v10247_v31 }
 0x1ad   : > { %v7118_v6 = vpop.f32.mrf.mxu0 }
 0x1ae   : > { %v9536_v10 = vpop.f32.mrf.mxu1  ;;  %v10332_v6 = vld [vmem:[#allocation7_spill] sm:$0xff] }
 0x1af   : > { %v2914_v33 = vpop.f32.mrf.mxu0 }
 0x1b0   : > { %v9539_v46 = vadd.f32 %v2914_v33, %v9381_v58  ;;  %v7159_v34 = vpop.f32.mrf.mxu1  ;;  %v7579_v33 = vmov 1983009808  }
 0x1b1   : > { %v7119_v27 = vpop.f32.mrf.mxu0  ;;  %v4489_v34 = vunpack.c.l.s4 %v7579_v33 }
 0x1b2   : > { %v9541_v62 = vpop.f32.mrf.mxu1  ;;  %7413 = vmatmul.mubr.msk.bf16.gmra.mxu1 %vm1595_vm5, %v10330_v12 }
 0x1b3   : > { %v2919_v44 = vpop.f32.mrf.mxu0  ;;  %7373 = vmatmul.mubr.msk.bf16.gmra.mxu0 %vm1595_vm5, %v8929_v9  ;;  %7416 = vmatprep.mubr.msk.bf16.mxu1 %vm7577_vm0, %v10247_v31 }
 0x1b4   : > { %v9550_v21 = vadd.f32 %v2919_v44, %v9388_v24  ;;  %v7162_v63 = vpop.f32.mrf.mxu1  ;;  %7376 = vmatprep.mubr.msk.bf16.mxu0 %vm7577_vm0, %v10247_v31 }
 0x1b5   : > { %v7122_v58 = vpop.f32.mrf.mxu0 }
 0x1b6   : > { %v9554_v1 = vpop.f32.mrf.mxu1  ;;  %v4490_v58 = vunpack.c.0.s8 %v4489_v34 }
 0x1b7   : > { %v2922_v36 = vpop.f32.mrf.mxu0 }
 0x1b8   : > { %v9557_v19 = vadd.f32 %v2922_v36, %v9399_v32  ;;  %v7163_v3 = vpop.f32.mrf.mxu1 }
 0x1b9   : > { %v7123_v45 = vpop.f32.mrf.mxu0 }
 0x1ba   : > { %v9559_v9 = vpop.f32.mrf.mxu1  ;;  %7417 = vmatmul.mubr.msk.bf16.gmra.mxu1 %vm1595_vm5, %v10331_v29  ;;  %v6715_v29 = vld [vmem:[%s10177_s3] ss:$0 sm:$0xff] }
 0x1bb   : > { %v2927_v24 = vpop.f32.mrf.mxu0  ;;  %7377 = vmatmul.mubr.msk.bf16.gmra.mxu0 %vm1595_vm5, %v8947_v14  ;;  %7420 = vmatprep.mubr.msk.bf16.mxu1 %vm7577_vm0, %v10247_v31 }
 0x1bc   : > { %v9568_v59 = vadd.f32 %v2927_v24, %v9406_v52  ;;  %v7166_v50 = vpop.f32.mrf.mxu1  ;;  %7380 = vmatprep.mubr.msk.bf16.mxu0 %vm7577_vm0, %v10247_v31 }
 0x1bd   : > { %v7126_v32 = vpop.f32.mrf.mxu0 }
 0x1be   : > { %v9572_v60 = vpop.f32.mrf.mxu1 }
 0x1bf   : > { %v2930_v48 = vpop.f32.mrf.mxu0 }
 0x1c0   : > { %v9575_v15 = vadd.f32 %v2930_v48, %v9417_v2  ;;  %v7167_v8 = vpop.f32.mrf.mxu1 }
 0x1c1   : > { %v7127_v39 = vpop.f32.mrf.mxu0 }
 0x1c2   : > { %v9577_v14 = vpop.f32.mrf.mxu1  ;;  %7421 = vmatmul.mubr.msk.bf16.gmra.mxu1 %vm1595_vm5, %v10332_v6 }
 0x1c3   : > { %v2935_v52 = vpop.f32.mrf.mxu0  ;;  %7381 = vmatmul.mubr.msk.bf16.gmra.mxu0 %vm1595_vm5, %v8970_v16  ;;  %7424 = vmatprep.mubr.msk.bf16.mxu1 %vm7577_vm0, %v10247_v31 }
 0x1c4   : > { %v9586_v27 = vadd.f32 %v2935_v52, %v9424_v38  ;;  %v7170_v2 = vpop.f32.mrf.mxu1  ;;  %7384 = vmatprep.mubr.msk.bf16.mxu0 %vm7577_vm0, %v10247_v31 }
 0x1c5   : > { %v7130_v12 = vpop.f32.mrf.mxu0 }
 0x1c6   : > { %v9590_v44 = vpop.f32.mrf.mxu1 }
 0x1c7   : > { %v2938_v63 = vpop.f32.mrf.mxu0 }
 0x1c8   : > { %v9593_v36 = vadd.f32 %v2938_v63, %v9435_v61  ;;  %v7171_v16 = vpop.f32.mrf.mxu1  ;;  %v10333_v61 = vld [vmem:[#allocation2_spill] sm:$0xff] }
 0x1c9   : > { %v7131_v3 = vpop.f32.mrf.mxu0  ;;  %v9607_v24 = vsub.s32 %v4490_v58, %v10333_v61 }
 0x1ca   : > { %v9595_v45 = vpop.f32.mrf.mxu1  ;;  %7425 = vmatmul.mubr.msk.bf16.gmra.mxu1 %vm1595_vm5, %v9218_v18 }
 0x1cb   : > { %v2943_v38 = vpop.f32.mrf.mxu0  ;;  %7385 = vmatmul.mubr.msk.bf16.gmra.mxu0 %vm1595_vm5, %v8994_v43  ;;  %7428 = vmatprep.mubr.msk.bf16.mxu1 %vm7577_vm0, %v10247_v31  ;;  %v4870_v43 = vcombine.high %v6715_v29, %v6715_v29  ;;  %v4877_v39 = vrot.slane %v6715_v29, %v9607_v24 }
 0x1cc   : > { %v9610_v50 = vadd.f32 %v2943_v38, %v9442_v13  ;;  %v7174_v32 = vpop.f32.mrf.mxu1  ;;  %7388 = vmatprep.mubr.msk.bf16.mxu0 %vm7577_vm0, %v10247_v31 }
 0x1cd   : > { %v7134_v18 = vpop.f32.mrf.mxu0  ;;  %v4884_v13 = vrot.slane %v4870_v43, %v9607_v24  ;;  %v4885_v12 = vcombine.high %v4877_v39, %v4877_v39  ;;  %v9637_v3 = vrot.slane %v4877_v39, 7 }
 0x1ce   : > { %v9614_v48 = vpop.f32.mrf.mxu1 }
 0x1cf   : > { %v2946_v8 = vpop.f32.mrf.mxu0  ;;  %v4886_v16 = vcombine.high %v4884_v13, %v4884_v13  ;;  %v4896_v38 = vrot.slane %v4885_v12, 7  ;;  %v4899_v61 = vrot.slane %v4884_v13, 7  ;;  %v4895_v43 = vrot.slane %v9637_v3, 2 }
 0x1d0   : > { %v9618_v6 = vadd.f32 %v2946_v8, %v9455_v42  ;;  %v7175_v52 = vpop.f32.mrf.mxu1 }
 0x1d1   : > { %v7135_v33 = vpop.f32.mrf.mxu0  ;;  %v4902_v8 = vrot.slane %v4886_v16, 7  ;;  %v4901_v13 = vrot.slane %v4899_v61, 2 }
 0x1d2   : > { %v9620_v34 = vpop.f32.mrf.mxu1  ;;  %7429 = vmatmul.mubr.msk.bf16.gmra.mxu1 %vm1595_vm5, %v9247_v23 }
 0x1d3   : > { %v3164_v2 = vpop.f32.mrf.mxu0  ;;  %7389 = vmatmul.mubr.msk.bf16.gmra.mxu0 %vm1595_vm5, %v9013_v49  ;;  %7432 = vmatprep.mubr.msk.bf16.mxu1 %vm7577_vm0, %v10247_v31  ;;  %v9664_v16 = vrot.slane %v4902_v8, 2 }
 0x1d4   : > { %v9630_v42 = vadd.f32 %v3164_v2, %v9463_v30  ;;  %v7178_v63 = vpop.f32.mrf.mxu1  ;;  %7392 = vmatprep.mubr.msk.bf16.mxu0 %vm7577_vm0, %v10247_v31 }
 0x1d5   : > { %v7190_v58 = vpop.f32.mrf.mxu0 }
 0x1d6   : > { %v9635_v23 = vpop.f32.mrf.mxu1  ;;  %v9662_v58 = vsel %vm9646_vm15, %v4895_v43, %v4896_v38 }
 0x1d7   : > { %v3167_v49 = vpop.f32.mrf.mxu0 }
 0x1d8   : > { %v9640_v29 = vadd.f32 %v3167_v49, %v9478_v51  ;;  %v7179_v30 = vpop.f32.mrf.mxu1  ;;  %v4898_v51 = vrot.slane %v4896_v38, 2 }
 0x1d9   : > { %v7191_v32 = vpop.f32.mrf.mxu0 }
 0x1da   : > { %v3357_v18 = vpop.f32.mrf.mxu1  ;;  %7433 = vmatmul.mubr.msk.bf16.gmra.mxu1 %vm1595_vm5, %v9286_v25 }
 0x1db   : > { %v3428_v39 = vadd.f32 %v3357_v18, %v9451_v54  ;;  %v3172_v33 = vpop.f32.mrf.mxu0  ;;  %7393 = vmatmul.mubr.msk.bf16.gmra.mxu0 %vm1595_vm5, %v9257_v47  ;;  %7436 = vmatprep.mubr.msk.bf16.mxu1 %vm7577_vm0, %v10247_v31 }
 0x1dc   : > { %v9655_v2 = vadd.f32 %v3172_v33, %v9486_v7  ;;  %v7234_v12 = vpop.f32.mrf.mxu1  ;;  %7396 = vmatprep.mubr.msk.bf16.mxu0 %vm7577_vm0, %v10247_v31  ;;  %v9669_v7 = vsel %vm9646_vm15, %v4898_v51, %v4899_v61  ;;  %v4282_v33 = vor.u32 %v9328_v53, %v3891_v56 }
 0x1dd   : > { %v4487_v25 = vcombine.high %v3428_v39, %v3428_v39  ;;  %v4494_v54 = vrot.slane %v3428_v39, %v9607_v24  ;;  %v7194_v63 = vpop.f32.mrf.mxu0  ;;  %v9674_v39 = vsel %vm9646_vm15, %v4901_v13, %v4902_v8 }
 0x1de   : > { %v3360_v47 = vpop.f32.mrf.mxu1 }
 0x1df   : > { %v4501_v49 = vrot.slane %v4487_v25, %v9607_v24  ;;  %v4502_v30 = vcombine.high %v4494_v54, %v4494_v54  ;;  %v3429_v32 = vadd.f32 %v3360_v47, %v9461_v41  ;;  %v3175_v18 = vpop.f32.mrf.mxu0  ;;  %v4912_v61 = vadd.f32 %v9637_v3, %v4494_v54 }
 0x1e0   : > { %v9677_v38 = vadd.f32 %v3175_v18, %v9500_v0  ;;  %v7235_v43 = vpop.f32.mrf.mxu1  ;;  %v9690_v0 = vsel %vm9646_vm15, %v9664_v16, %v9637_v3 }
 0x1e1   : > { %v4503_v12 = vcombine.high %v4501_v49, %v4501_v49  ;;  %v4913_v51 = vadd.f32 %v9662_v58, %v4502_v30  ;;  %v4504_v41 = vcombine.high %v3429_v32, %v3429_v32  ;;  %v7195_v25 = vpop.f32.mrf.mxu0  ;;  %v4914_v63 = vadd.f32 %v9669_v7, %v4501_v49 }
 0x1e2   : > { %v4511_v8 = vrot.slane %v3429_v32, %v9607_v24  ;;  %v3365_v13 = vpop.f32.mrf.mxu1  ;;  %7437 = vmatmul.mubr.msk.bf16.gmra.mxu1 %vm1595_vm5, %v9342_v40 }
 0x1e3   : > { %v4915_v53 = vadd.f32 %v9674_v39, %v4503_v12  ;;  %v5056_v56 = vcombine.low %v4912_v61, %v4913_v51  ;;  %v4518_v54 = vrot.slane %v4504_v41, %v9607_v24  ;;  %v3430_v47 = vadd.f32 %v3365_v13, %v9474_v22  ;;  %v3180_v49 = vpop.f32.mrf.mxu0  ;;  %7397 = vmatmul.mubr.msk.bf16.gmra.mxu0 %vm1595_vm5, %v9306_v28 }
 0x1e4   : > { %v4519_v30 = vcombine.high %v4511_v8, %v4511_v8  ;;  %v9701_v52 = vadd.f32 %v3180_v49, %v9506_v4  ;;  %v7238_v32 = vpop.f32.mrf.mxu1  ;;  %7440 = vmatprep.mubr.msk.bf16.mxu1 %vm7577_vm0, %v10247_v31  ;;  %v4916_v43 = vadd.f32 %v9690_v0, %v4511_v8  ;;  %v4284_v22 = vsel %vm8814_vm8, %v4282_v33, 0 }
 0x1e5   : > { %v5057_v40 = vcombine.low %v4914_v63, %v4915_v53  ;;  %v4520_v18 = vcombine.high %v4518_v54, %v4518_v54  ;;  %v7198_v12 = vpop.f32.mrf.mxu0  ;;  %v5064_v61 = vrot.slane %v5056_v56, %v9607_v24  ;;  %v4521_v51 = vcombine.high %v3430_v47, %v3430_v47 }
 0x1e6   : > { %v4917_v28 = vadd.f32 %v9662_v58, %v4519_v30  ;;  %v4528_v4 = vrot.slane %v3430_v47, %v9607_v24  ;;  %v3368_v41 = vpop.f32.mrf.mxu1  ;;  %v4918_v25 = vadd.f32 %v9669_v7, %v4518_v54 }
 0x1e7   : > { %v5071_v31 = vrot.slane %v5057_v40, %v9607_v24  ;;  %v4919_v35 = vadd.f32 %v9674_v39, %v4520_v18  ;;  %v3431_v33 = vadd.f32 %v3368_v41, %v9484_v20  ;;  %v9720_v63 = vpop.f32.mrf.mxu0  ;;  %v4535_v13 = vrot.slane %v4521_v51, %v9607_v24 }
 0x1e8   : > { %v5073_v8 = vcombine.low %v4916_v43, %v4917_v28  ;;  %v4536_v53 = vcombine.high %v4528_v4, %v4528_v4  ;;  %v4920_v56 = vadd.f32 %v9664_v16, %v4528_v4  ;;  %v7239_v47 = vpop.f32.mrf.mxu1 }
 0x1e9   : > { %v5072_v49 = vcombine.low %v5064_v61, %v5071_v31  ;;  %v5074_v30 = vcombine.low %v4918_v25, %v4919_v35  ;;  %v4538_v32 = vcombine.high %v3431_v33, %v3431_v33  ;;  %v4545_v54 = vrot.slane %v3431_v33, %v9607_v24  ;;  %v7199_v40 = vpop.f32.mrf.mxu0 }
 0x1ea   : > { %v5081_v18 = vrot.slane %v5073_v8, %v9607_v24  ;;  %v4537_v20 = vcombine.high %v4535_v13, %v4535_v13  ;;  %v4921_v12 = vadd.f32 %v9637_v3, %v4536_v53  ;;  %v4922_v43 = vadd.f32 %v9662_v58, %v4535_v13  ;;  %6716 = vst.sshfl [vmem:[%s9714_s15 + $0xf] sm:$0x1 pattern:$0x76325410] %v4920_v56  ;;  %v3373_v28 = vpop.f32.mrf.mxu1 }
 0x1eb   : > { %7441 = vmatmul.mubr.msk.bf16.gmra.mxu1 %vm1595_vm5, %v4284_v22  ;;  %5408 = vst [vmem:[%s9714_s15 - $0x1] sm:$0xfe] %v5072_v49  ;;  %v5088_v51 = vrot.slane %v5074_v30, %v9607_v24  ;;  %v4552_v61 = vrot.slane %v4538_v32, %v9607_v24  ;;  %v4553_v4 = vcombine.high %v4545_v54, %v4545_v54  ;;  %v9734_v31 = vpop.f32.mrf.mxu0 }
 0x1ec   : > { %v4924_v41 = vadd.f32 %v9674_v39, %v4545_v54  ;;  %v5097_v25 = vcombine.low %v4921_v12, %v4922_v43  ;;  %v4923_v35 = vadd.f32 %v9669_v7, %v4537_v20  ;;  %v3432_v33 = vadd.f32 %v3373_v28, %v9496_v17  ;;  %v7242_v8 = vpop.f32.mrf.mxu1 }
 0x1ed   : > { %v5089_v13 = vcombine.low %v5081_v18, %v5088_v51  ;;  %v4554_v53 = vcombine.high %v4552_v61, %v4552_v61  ;;  %v4925_v22 = vadd.f32 %v9690_v0, %v4553_v4  ;;  %v4926_v56 = vadd.f32 %v9662_v58, %v4552_v61  ;;  %v7202_v47 = vpop.f32.mrf.mxu0 }
 0x1ee   : > { %v5098_v49 = vcombine.low %v4923_v35, %v4924_v41  ;;  %v4555_v30 = vcombine.high %v3432_v33, %v3432_v33  ;;  %v4562_v32 = vrot.slane %v3432_v33, %v9607_v24  ;;  %v3376_v54 = vpop.f32.mrf.mxu1  ;;  %v5105_v40 = vrot.slane %v5097_v25, %v9607_v24 }
 0x1ef   : > { %5409 = vst [vmem:[%s9714_s15 + $0x7] sm:$0xff] %v5089_v13  ;;  %v5114_v12 = vcombine.low %v4925_v22, %v4926_v56  ;;  %v4927_v20 = vadd.f32 %v9669_v7, %v4554_v53  ;;  %v3433_v17 = vadd.f32 %v3376_v54, %v9504_v26  ;;  %v9745_v18 = vpop.f32.mrf.mxu0 }
 0x1f0   : > { %v5112_v43 = vrot.slane %v5098_v49, %v9607_v24  ;;  %v4569_v28 = vrot.slane %v4555_v30, %v9607_v24  ;;  %v4570_v51 = vcombine.high %v4562_v32, %v4562_v32  ;;  %v4928_v61 = vadd.f32 %v9674_v39, %v4562_v32  ;;  %v7243_v4 = vpop.f32.mrf.mxu1 }
 0x1f1   : > { %v4572_v41 = vcombine.high %v3433_v17, %v3433_v17  ;;  %v4579_v25 = vrot.slane %v3433_v17, %v9607_v24  ;;  %v7203_v35 = vpop.f32.mrf.mxu0  ;;  %v5122_v53 = vrot.slane %v5114_v12, %v9607_v24 }
 0x1f2   : > { %v5113_v33 = vcombine.low %v5105_v40, %v5112_v43  ;;  %v4571_v8 = vcombine.high %v4569_v28, %v4569_v28  ;;  %v4929_v26 = vadd.f32 %v9664_v16, %v4570_v51  ;;  %v3381_v13 = vpop.f32.mrf.mxu1  ;;  %v5115_v22 = vcombine.low %v4927_v20, %v4928_v61 }
 0x1f3   : > { %v4586_v56 = vrot.slane %v4572_v41, %v9607_v24  ;;  %v4587_v47 = vcombine.high %v4579_v25, %v4579_v25  ;;  %v3196_v49 = vpop.f32.mrf.mxu0  ;;  %v4930_v30 = vadd.f32 %v9637_v3, %v4569_v28  ;;  %v3434_v54 = vadd.f32 %v3381_v13, %v9514_v5 }
 0x1f4   : > { %5411 = vst [vmem:[%s9714_s15 + $0x1f] sm:$0xfe] %v5113_v33  ;;  %v4931_v32 = vadd.f32 %v9662_v58, %v4571_v8  ;;  %6717 = vst.sshfl [vmem:[%s9714_s15 + $0x2f] sm:$0x1 pattern:$0x76325410] %v4929_v26  ;;  %v9760_v40 = vadd.f32 %v3196_v49, %v9541_v62  ;;  %v7246_v17 = vpop.f32.mrf.mxu1  ;;  %v5129_v43 = vrot.slane %v5115_v22, %v9607_v24 }
 0x1f5   : > { %v4588_v12 = vcombine.high %v4586_v56, %v4586_v56  ;;  %v4932_v20 = vadd.f32 %v9669_v7, %v4579_v25  ;;  %v4933_v51 = vadd.f32 %v9674_v39, %v4587_v47  ;;  %v7206_v61 = vpop.f32.mrf.mxu0  ;;  %v4934_v28 = vadd.f32 %v9690_v0, %v4586_v56 }
 0x1f6   : > { %v5138_v4 = vcombine.low %v4930_v30, %v4931_v32  ;;  %v4589_v41 = vcombine.high %v3434_v54, %v3434_v54  ;;  %v4596_v35 = vrot.slane %v3434_v54, %v9607_v24  ;;  %v3384_v5 = vpop.f32.mrf.mxu1  ;;  %v5130_v33 = vcombine.low %v5122_v53, %v5129_v43 }
 0x1f7   : > { %v4935_v62 = vadd.f32 %v9662_v58, %v4588_v12  ;;  %v5139_v8 = vcombine.low %v4932_v20, %v4933_v51  ;;  %v3435_v26 = vadd.f32 %v3384_v5, %v9521_v55  ;;  %v9769_v13 = vpop.f32.mrf.mxu0 }
 0x1f8   : > { %v5146_v25 = vrot.slane %v5138_v4, %v9607_v24  ;;  %v4603_v22 = vrot.slane %v4589_v41, %v9607_v24  ;;  %v4604_v47 = vcombine.high %v4596_v35, %v4596_v35  ;;  %v7247_v49 = vpop.f32.mrf.mxu1  ;;  %5412 = vst [vmem:[%s9714_s15 + $0x27] sm:$0xff] %v5130_v33  ;;  %v4936_v55 = vadd.f32 %v9669_v7, %v4596_v35 }
 0x1f9   : > { %v5153_v56 = vrot.slane %v5139_v8, %v9607_v24  ;;  %v5155_v30 = vcombine.low %v4934_v28, %v4935_v62  ;;  %v4606_v32 = vcombine.high %v3435_v26, %v3435_v26  ;;  %v4613_v53 = vrot.slane %v3435_v26, %v9607_v24  ;;  %v7207_v54 = vpop.f32.mrf.mxu0 }
 0x1fa   : > { %v4605_v17 = vcombine.high %v4603_v22, %v4603_v22  ;;  %v4937_v43 = vadd.f32 %v9674_v39, %v4604_v47  ;;  %v4938_v12 = vadd.f32 %v9664_v16, %v4603_v22  ;;  %v3389_v20 = vpop.f32.mrf.mxu1 }
 0x1fb   : > { %v5154_v51 = vcombine.low %v5146_v25, %v5153_v56  ;;  %v4620_v61 = vrot.slane %v4606_v32, %v9607_v24  ;;  %v4621_v4 = vcombine.high %v4613_v53, %v4613_v53  ;;  %v9780_v41 = vpop.f32.mrf.mxu0  ;;  %v4940_v33 = vadd.f32 %v9662_v58, %v4613_v53 }
 0x1fc   : > { %v5156_v28 = vcombine.low %v4936_v55, %v4937_v43  ;;  %6718 = vst.sshfl [vmem:[%s9714_s15 + $0x4f] sm:$0x1 pattern:$0x76325410] %v4938_v12  ;;  %v4939_v5 = vadd.f32 %v9637_v3, %v4605_v17  ;;  %v3436_v62 = vadd.f32 %v3389_v20, %v9532_v11  ;;  %v7250_v35 = vpop.f32.mrf.mxu1  ;;  %v5163_v8 = vrot.slane %v5155_v30, %v9607_v24 }
 0x1fd   : > { %5414 = vst [vmem:[%s9714_s15 + $0x3f] sm:$0xfe] %v5154_v51  ;;  %v4622_v26 = vcombine.high %v4620_v61, %v4620_v61  ;;  %v4941_v25 = vadd.f32 %v9669_v7, %v4621_v4  ;;  %v4942_v22 = vadd.f32 %v9674_v39, %v4620_v61  ;;  %v7210_v47 = vpop.f32.mrf.mxu0 }
 0x1fe   : > { %v5170_v49 = vrot.slane %v5156_v28, %v9607_v24  ;;  %v5179_v56 = vcombine.low %v4939_v5, %v4940_v33  ;;  %v4623_v32 = vcombine.high %v3436_v62, %v3436_v62  ;;  %v4630_v54 = vrot.slane %v3436_v62, %v9607_v24  ;;  %v3392_v53 = vpop.f32.mrf.mxu1 }
 0x1ff   : > { %v5180_v17 = vcombine.low %v4941_v25, %v4942_v22  ;;  %v4943_v11 = vadd.f32 %v9690_v0, %v4622_v26  ;;  %v3437_v30 = vadd.f32 %v3392_v53, %v9539_v46  ;;  %v9794_v55 = vpop.f32.mrf.mxu0 }
 0x200   : > { %v5171_v43 = vcombine.low %v5163_v8, %v5170_v49  ;;  %v5187_v12 = vrot.slane %v5179_v56, %v9607_v24  ;;  %v4637_v20 = vrot.slane %v4623_v32, %v9607_v24  ;;  %v4638_v51 = vcombine.high %v4630_v54, %v4630_v54  ;;  %v7251_v61 = vpop.f32.mrf.mxu1 }
 0x201   : > { %v5194_v4 = vrot.slane %v5180_v17, %v9607_v24  ;;  %v4944_v28 = vadd.f32 %v9662_v58, %v4630_v54  ;;  %v4640_v5 = vcombine.high %v3437_v30, %v3437_v30  ;;  %v4647_v33 = vrot.slane %v3437_v30, %v9607_v24  ;;  %v7211_v62 = vpop.f32.mrf.mxu0 }
 0x202   : > { %5415 = vst [vmem:[%s9714_s15 + $0x47] sm:$0xff] %v5171_v43  ;;  %v4639_v46 = vcombine.high %v4637_v20, %v4637_v20  ;;  %v4945_v35 = vadd.f32 %v9669_v7, %v4638_v51  ;;  %v4946_v8 = vadd.f32 %v9674_v39, %v4637_v20  ;;  %v3397_v26 = vpop.f32.mrf.mxu1 }
 0x203   : > { %v5195_v25 = vcombine.low %v5187_v12, %v5194_v4  ;;  %v5196_v22 = vcombine.low %v4943_v11, %v4944_v28  ;;  %v4654_v47 = vrot.slane %v4640_v5, %v9607_v24  ;;  %v4655_v49 = vcombine.high %v4647_v33, %v4647_v33  ;;  %v9805_v56 = vpop.f32.mrf.mxu0 }
 0x204   : > { %v4947_v32 = vadd.f32 %v9664_v16, %v4639_v46  ;;  %v5197_v54 = vcombine.low %v4945_v35, %v4946_v8  ;;  %v3438_v53 = vadd.f32 %v3397_v26, %v9550_v21  ;;  %v7254_v17 = vpop.f32.mrf.mxu1  ;;  %v4948_v43 = vadd.f32 %v9637_v3, %v4647_v33 }
 0x205   : > { %5417 = vst [vmem:[%s9714_s15 + $0x5f] sm:$0xfe] %v5195_v25  ;;  %v4656_v30 = vcombine.high %v4654_v47, %v4654_v47  ;;  %v4949_v20 = vadd.f32 %v9662_v58, %v4655_v49  ;;  %v7214_v12 = vpop.f32.mrf.mxu0  ;;  %v5204_v11 = vrot.slane %v5196_v22, %v9607_v24  ;;  %v4950_v21 = vadd.f32 %v9669_v7, %v4654_v47 }
 0x206   : > { %v5211_v51 = vrot.slane %v5197_v54, %v9607_v24  ;;  %6719 = vst.sshfl [vmem:[%s9714_s15 + $0x6f] sm:$0x1 pattern:$0x76325410] %v4947_v32  ;;  %v4657_v61 = vcombine.high %v3438_v53, %v3438_v53  ;;  %v4664_v4 = vrot.slane %v3438_v53, %v9607_v24  ;;  %v3400_v28 = vpop.f32.mrf.mxu1 }
 0x207   : > { %v4951_v5 = vadd.f32 %v9674_v39, %v4656_v30  ;;  %v5220_v62 = vcombine.low %v4948_v43, %v4949_v20  ;;  %v3439_v33 = vadd.f32 %v3400_v28, %v9557_v19  ;;  %v9819_v46 = vpop.f32.mrf.mxu0 }
 0x208   : > { %v5212_v35 = vcombine.low %v5204_v11, %v5211_v51  ;;  %v4671_v8 = vrot.slane %v4657_v61, %v9607_v24  ;;  %v4672_v26 = vcombine.high %v4664_v4, %v4664_v4  ;;  %v7255_v25 = vpop.f32.mrf.mxu1  ;;  %v4952_v49 = vadd.f32 %v9690_v0, %v4664_v4 }
 0x209   : > { %v5221_v22 = vcombine.low %v4950_v21, %v4951_v5  ;;  %v4674_v32 = vcombine.high %v3439_v33, %v3439_v33  ;;  %v4681_v54 = vrot.slane %v3439_v33, %v9607_v24  ;;  %v7215_v53 = vpop.f32.mrf.mxu0  ;;  %v5228_v47 = vrot.slane %v5220_v62, %v9607_v24 }
 0x20a   : > { %5418 = vst [vmem:[%s9714_s15 + $0x67] sm:$0xff] %v5212_v35  ;;  %v4673_v17 = vcombine.high %v4671_v8, %v4671_v8  ;;  %v4953_v19 = vadd.f32 %v9662_v58, %v4672_v26  ;;  %v4954_v30 = vadd.f32 %v9669_v7, %v4671_v8  ;;  %v3405_v43 = vpop.f32.mrf.mxu1 }
 0x20b   : > { %v5235_v20 = vrot.slane %v5221_v22, %v9607_v24  ;;  %v4688_v12 = vrot.slane %v4674_v32, %v9607_v24  ;;  %v4689_v11 = vcombine.high %v4681_v54, %v4681_v54  ;;  %v4956_v51 = vadd.f32 %v9664_v16, %v4681_v54  ;;  %v3220_v61 = vpop.f32.mrf.mxu0 }
 0x20c   : > { %v4955_v4 = vadd.f32 %v9674_v39, %v4673_v17  ;;  %v5237_v28 = vcombine.low %v4952_v49, %v4953_v19  ;;  %v3440_v21 = vadd.f32 %v3405_v43, %v9568_v59  ;;  %v9834_v5 = vadd.f32 %v3220_v61, %v9595_v45  ;;  %v7258_v62 = vpop.f32.mrf.mxu1 }
 0x20d   : > { %v5236_v33 = vcombine.low %v5228_v47, %v5235_v20  ;;  %v4690_v35 = vcombine.high %v4688_v12, %v4688_v12  ;;  %v4957_v8 = vadd.f32 %v9637_v3, %v4689_v11  ;;  %v4958_v26 = vadd.f32 %v9662_v58, %v4688_v12  ;;  %6720 = vst.sshfl [vmem:[%s9714_s15 + $0x8f] sm:$0x1 pattern:$0x76325410] %v4956_v51  ;;  %v7218_v25 = vpop.f32.mrf.mxu0 }
 0x20e   : > { %v5238_v22 = vcombine.low %v4954_v30, %v4955_v4  ;;  %v4691_v32 = vcombine.high %v3440_v21, %v3440_v21  ;;  %v4698_v54 = vrot.slane %v3440_v21, %v9607_v24  ;;  %v3408_v53 = vpop.f32.mrf.mxu1  ;;  %v5245_v59 = vrot.slane %v5237_v28, %v9607_v24 }
 0x20f   : > { %5420 = vst [vmem:[%s9714_s15 + $0x7f] sm:$0xfe] %v5236_v33  ;;  %v4959_v45 = vadd.f32 %v9669_v7, %v4690_v35  ;;  %v3441_v49 = vadd.f32 %v3408_v53, %v9575_v15  ;;  %v9844_v47 = vpop.f32.mrf.mxu0  ;;  %v5261_v12 = vcombine.low %v4957_v8, %v4958_v26 }
 0x210   : > { %v5252_v17 = vrot.slane %v5238_v22, %v9607_v24  ;;  %v4705_v19 = vrot.slane %v4691_v32, %v9607_v24  ;;  %v4706_v43 = vcombine.high %v4698_v54, %v4698_v54  ;;  %v4960_v30 = vadd.f32 %v9674_v39, %v4698_v54  ;;  %v7259_v20 = vpop.f32.mrf.mxu1 }
 0x211   : > { %v4708_v11 = vcombine.high %v3441_v49, %v3441_v49  ;;  %v4715_v51 = vrot.slane %v3441_v49, %v9607_v24  ;;  %v7219_v61 = vpop.f32.mrf.mxu0  ;;  %v5269_v49 = vrot.slane %v5261_v12, %v9607_v24 }
 0x212   : > { %v5253_v4 = vcombine.low %v5245_v59, %v5252_v17  ;;  %v4707_v28 = vcombine.high %v4705_v19, %v4705_v19  ;;  %v4961_v15 = vadd.f32 %v9690_v0, %v4706_v43  ;;  %v4962_v21 = vadd.f32 %v9662_v58, %v4705_v19  ;;  %v3413_v62 = vpop.f32.mrf.mxu1 }
 0x213   : > { %v5262_v33 = vcombine.low %v4959_v45, %v4960_v30  ;;  %v4722_v35 = vrot.slane %v4708_v11, %v9607_v24  ;;  %v4723_v25 = vcombine.high %v4715_v51, %v4715_v51  ;;  %v4964_v22 = vadd.f32 %v9674_v39, %v4715_v51  ;;  %v3228_v32 = vpop.f32.mrf.mxu0 }
 0x214   : > { %5421 = vst [vmem:[%s9714_s15 + $0x87] sm:$0xff] %v5253_v4  ;;  %v5278_v8 = vcombine.low %v4961_v15, %v4962_v21  ;;  %v4963_v26 = vadd.f32 %v9669_v7, %v4707_v28  ;;  %v3442_v54 = vadd.f32 %v3413_v62, %v9586_v27  ;;  %v9858_v53 = vadd.f32 %v3228_v32, %v9620_v34  ;;  %v7262_v59 = vpop.f32.mrf.mxu1 }
 0x215   : > { %v5276_v45 = vrot.slane %v5262_v33, %v9607_v24  ;;  %v4724_v17 = vcombine.high %v4722_v35, %v4722_v35  ;;  %v4965_v19 = vadd.f32 %v9664_v16, %v4723_v25  ;;  %v7222_v43 = vpop.f32.mrf.mxu0  ;;  %v4966_v27 = vadd.f32 %v9637_v3, %v4722_v35 }
 0x216   : > { %v5279_v30 = vcombine.low %v4963_v26, %v4964_v22  ;;  %v4725_v20 = vcombine.high %v3442_v54, %v3442_v54  ;;  %v4732_v11 = vrot.slane %v3442_v54, %v9607_v24  ;;  %v3416_v51 = vpop.f32.mrf.mxu1  ;;  %v5286_v28 = vrot.slane %v5278_v8, %v9607_v24 }
 0x217   : > { %v5277_v61 = vcombine.low %v5269_v49, %v5276_v45  ;;  %v4967_v34 = vadd.f32 %v9662_v58, %v4724_v17  ;;  %6721 = vst.sshfl [vmem:[%s9714_s15 + $0xaf] sm:$0x1 pattern:$0x76325410] %v4965_v19  ;;  %v3443_v12 = vadd.f32 %v3416_v51, %v9593_v36  ;;  %v9868_v4 = vpop.f32.mrf.mxu0 }
 0x218   : > { %v5293_v15 = vrot.slane %v5279_v30, %v9607_v24  ;;  %v4739_v21 = vrot.slane %v4725_v20, %v9607_v24  ;;  %v4740_v62 = vcombine.high %v4732_v11, %v4732_v11  ;;  %v7263_v33 = vpop.f32.mrf.mxu1  ;;  %v4968_v36 = vadd.f32 %v9669_v7, %v4732_v11 }
 0x219   : > { %5423 = vst [vmem:[%s9714_s15 + $0x9f] sm:$0xfe] %v5277_v61  ;;  %v5302_v25 = vcombine.low %v4966_v27, %v4967_v34  ;;  %v4742_v22 = vcombine.high %v3443_v12, %v3443_v12  ;;  %v4749_v35 = vrot.slane %v3443_v12, %v9607_v24  ;;  %v7223_v32 = vpop.f32.mrf.mxu0 }
 0x21a   : > { %v5294_v26 = vcombine.low %v5286_v28, %v5293_v15  ;;  %v4741_v54 = vcombine.high %v4739_v21, %v4739_v21  ;;  %v4969_v59 = vadd.f32 %v9674_v39, %v4740_v62  ;;  %v3421_v8 = vpop.f32.mrf.mxu1  ;;  %v4970_v45 = vadd.f32 %v9690_v0, %v4739_v21 }
 0x21b   : > { %v5310_v49 = vrot.slane %v5302_v25, %v9607_v24  ;;  %v4756_v17 = vrot.slane %v4742_v22, %v9607_v24  ;;  %v4757_v19 = vcombine.high %v4749_v35, %v4749_v35  ;;  %v3513_v43 = vpop.f32.mrf.mxu0  ;;  %v3444_v51 = vadd.f32 %v3421_v8, %v9610_v50 }
 0x21c   : > { %5424 = vst [vmem:[%s9714_s15 + $0xa7] sm:$0xff] %v5294_v26  ;;  %v4971_v30 = vadd.f32 %v9662_v58, %v4741_v54  ;;  %v5303_v20 = vcombine.low %v4968_v36, %v4969_v59  ;;  %v3584_v11 = vadd.f32 %v3513_v43, %v9630_v42  ;;  %v7266_v61 = vpop.f32.mrf.mxu1  ;;  %v4972_v34 = vadd.f32 %v9669_v7, %v4749_v35 }
 0x21d   : > { %v4758_v27 = vcombine.high %v4756_v17, %v4756_v17  ;;  %v4973_v12 = vadd.f32 %v9674_v39, %v4757_v19  ;;  %v4974_v28 = vadd.f32 %v9664_v16, %v4756_v17  ;;  %v7278_v15 = vpop.f32.mrf.mxu0  ;;  %v4759_v33 = vcombine.high %v3444_v51, %v3444_v51 }
 0x21e   : > { %v5317_v21 = vrot.slane %v5303_v20, %v9607_v24  ;;  %v5319_v62 = vcombine.low %v4970_v45, %v4971_v30  ;;  %v4766_v25 = vrot.slane %v3444_v51, %v9607_v24  ;;  %v3424_v22 = vpop.f32.mrf.mxu1 }
 0x21f   : > { %v5320_v50 = vcombine.low %v4972_v34, %v4973_v12  ;;  %6722 = vst.sshfl [vmem:[%s9714_s15 + $0xcf] sm:$0x1 pattern:$0x76325410] %v4974_v28  ;;  %v4975_v42 = vadd.f32 %v9637_v3, %v4758_v27  ;;  %v3445_v32 = vadd.f32 %v3424_v22, %v9618_v6  ;;  %v3516_v35 = vpop.f32.mrf.mxu0  ;;  %v4773_v36 = vrot.slane %v4759_v33, %v9607_v24 }
 0x220   : > { %v5318_v26 = vcombine.low %v5310_v49, %v5317_v21  ;;  %v5327_v54 = vrot.slane %v5319_v62, %v9607_v24  ;;  %v4774_v59 = vcombine.high %v4766_v25, %v4766_v25  ;;  %v7267_v8 = vpop.f32.mrf.mxu1  ;;  %v4976_v17 = vadd.f32 %v9662_v58, %v4766_v25 }
 0x221   : > { %v5334_v45 = vrot.slane %v5320_v50, %v9607_v24  ;;  %v4776_v19 = vcombine.high %v3445_v32, %v3445_v32  ;;  %v4783_v43 = vrot.slane %v3445_v32, %v9607_v24  ;;  %v7279_v30 = vpop.f32.mrf.mxu0  ;;  %v4775_v20 = vcombine.high %v4773_v36, %v4773_v36 }
 0x222   : > { %5426 = vst [vmem:[%s9714_s15 + $0xbf] sm:$0xfe] %v5318_v26  ;;  %v4977_v6 = vadd.f32 %v9669_v7, %v4774_v59  ;;  %v4978_v49 = vadd.f32 %v9674_v39, %v4773_v36  ;;  %v3585_v51 = vadd.f32 %v3516_v35, %v9640_v29  ;;  %v3994_v61 = vpop.f32.mrf.mxu1  ;;  %v5343_v34 = vcombine.low %v4975_v42, %v4976_v17 }
 0x223   : > { %v5335_v27 = vcombine.low %v5327_v54, %v5334_v45  ;;  %v4790_v12 = vrot.slane %v4776_v19, %v9607_v24  ;;  %v4791_v28 = vcombine.high %v4783_v43, %v4783_v43  ;;  %v3521_v15 = vpop.f32.mrf.mxu0  ;;  %v4979_v62 = vadd.f32 %v9690_v0, %v4775_v20 }
 0x224   : > { %v5344_v21 = vcombine.low %v4977_v6, %v4978_v49  ;;  %v4980_v33 = vadd.f32 %v9662_v58, %v4783_v43  ;;  %v9904_v25 = vadd.f32 %v3994_v61, %v3584_v11  ;;  %v7322_v22 = vpop.f32.mrf.mxu1  ;;  %v5351_v35 = vrot.slane %v5343_v34, %v9607_v24 }
 0x225   : > { %5427 = vst [vmem:[%s9714_s15 + $0xc7] sm:$0xff] %v5335_v27  ;;  %v4792_v50 = vcombine.high %v4790_v12, %v4790_v12  ;;  %v4981_v32 = vadd.f32 %v9669_v7, %v4791_v28  ;;  %v4982_v29 = vadd.f32 %v9674_v39, %v4790_v12  ;;  %v7282_v42 = vpop.f32.mrf.mxu0  ;;  %v3586_v36 = vadd.f32 %v3521_v15, %v9655_v2 }
 0x226   : > { %v5358_v26 = vrot.slane %v5344_v21, %v9607_v24  ;;  %v5360_v54 = vcombine.low %v4979_v62, %v4980_v33  ;;  %v3997_v59 = vpop.f32.mrf.mxu1 }
 0x227   : > { %v4983_v11 = vadd.f32 %v9664_v16, %v4792_v50  ;;  %v5361_v8 = vcombine.low %v4981_v32, %v4982_v29  ;;  %v9913_v45 = vadd.f32 %v3997_v59, %v3585_v51  ;;  %v3524_v17 = vpop.f32.mrf.mxu0  ;;  %v3189_v32 = vadd.f32 %v9734_v31, %v9523_v57 }
 0x228   : > { %v5359_v19 = vcombine.low %v5351_v35, %v5358_v26  ;;  %v3587_v43 = vadd.f32 %v3524_v17, %v9677_v38  ;;  %v7323_v30 = vpop.f32.mrf.mxu1  ;;  %v5368_v20 = vrot.slane %v5360_v54, %v9607_v24  ;;  %v3184_v38 = vadd.f32 %v9720_v63, %v9518_v37 }
 0x229   : > { %v5375_v6 = vrot.slane %v5361_v8, %v9607_v24  ;;  %6723 = vst.sshfl [vmem:[%s9714_s15 + $0xef] sm:$0x1 pattern:$0x76325410] %v4983_v11  ;;  %v7283_v49 = vpop.f32.mrf.mxu0  ;;  %v3192_v37 = vadd.f32 %v9745_v18, %v9536_v10 }
 0x22a   : > { %5429 = vst [vmem:[%s9714_s15 + $0xdf] sm:$0xfe] %v5359_v19  ;;  %v4002_v2 = vpop.f32.mrf.mxu1 }
 0x22b   : > { %v5376_v61 = vcombine.low %v5368_v20, %v5375_v6  ;;  %v9920_v27 = vadd.f32 %v4002_v2, %v3586_v36  ;;  %v3529_v34 = vpop.f32.mrf.mxu0  ;;  %v3200_v6 = vadd.f32 %v9769_v13, %v9554_v1  ;;  %v3208_v1 = vadd.f32 %v9794_v55, %v9572_v60 }
 0x22c   : > { %v3588_v51 = vadd.f32 %v3529_v34, %v9701_v52  ;;  %v7326_v12 = vpop.f32.mrf.mxu1  ;;  %v3216_v60 = vadd.f32 %v9819_v46, %v9590_v44 }
 0x22d   : > { %5430 = vst [vmem:[%s9714_s15 + $0xe7] sm:$0xff] %v5376_v61  ;;  %v7286_v28 = vpop.f32.mrf.mxu0 }
 0x22e   : > { %v4005_v15 = vpop.f32.mrf.mxu1 }
 0x22f   : > { %v9926_v21 = vadd.f32 %v4005_v15, %v3587_v43  ;;  %v3532_v62 = vpop.f32.mrf.mxu0 }
 0x230   : > { %v3589_v33 = vadd.f32 %v3532_v62, %v3184_v38  ;;  %v7327_v22 = vpop.f32.mrf.mxu1 }
 0x231   : > { %v7287_v50 = vpop.f32.mrf.mxu0 }
 0x232   : > { %v4010_v29 = vpop.f32.mrf.mxu1 }
 0x233   : > { %v9930_v42 = vadd.f32 %v4010_v29, %v3588_v51  ;;  %v3537_v52 = vpop.f32.mrf.mxu0  ;;  %v3205_v51 = vadd.f32 %v9780_v41, %v9559_v9  ;;  %v3213_v9 = vadd.f32 %v9805_v56, %v9577_v14 }
 0x234   : > { %v3590_v35 = vadd.f32 %v3537_v52, %v3189_v32  ;;  %v7330_v26 = vpop.f32.mrf.mxu1 }
 0x235   : > { %v7290_v54 = vpop.f32.mrf.mxu0 }
 0x236   : > { %v4013_v63 = vpop.f32.mrf.mxu1 }
 0x237   : > { %v9934_v36 = vadd.f32 %v4013_v63, %v3589_v33  ;;  %v3540_v59 = vpop.f32.mrf.mxu0 }
 0x238   : > { %v3591_v11 = vadd.f32 %v3540_v59, %v3192_v37  ;;  %v7331_v8 = vpop.f32.mrf.mxu1 }
 0x239   : > { %v7291_v17 = vpop.f32.mrf.mxu0 }
 0x23a   : > { %v4018_v19 = vpop.f32.mrf.mxu1 }
 0x23b   : > { %v9936_v43 = vadd.f32 %v4018_v19, %v3590_v35  ;;  %v3545_v57 = vpop.f32.mrf.mxu0 }
 0x23c   : > { %v3592_v31 = vadd.f32 %v3545_v57, %v9760_v40  ;;  %v7334_v30 = vpop.f32.mrf.mxu1 }
 0x23d   : > { %v7294_v20 = vpop.f32.mrf.mxu0 }
 0x23e   : > { %v4021_v49 = vpop.f32.mrf.mxu1  ;;  %v3224_v20 = vadd.f32 %v9844_v47, %v9614_v48 }
 0x23f   : > { %v9941_v10 = vadd.f32 %v4021_v49, %v3591_v11  ;;  %v3548_v18 = vpop.f32.mrf.mxu0 }
 0x240   : > { %v3593_v2 = vadd.f32 %v3548_v18, %v3200_v6  ;;  %v7335_v61 = vpop.f32.mrf.mxu1 }
 0x241   : > { %v7295_v34 = vpop.f32.mrf.mxu0 }
 0x242   : > { %v4026_v12 = vpop.f32.mrf.mxu1 }
 0x243   : > { %v9945_v28 = vadd.f32 %v4026_v12, %v3592_v31  ;;  %v3553_v38 = vpop.f32.mrf.mxu0 }
 0x244   : > { %v3594_v40 = vadd.f32 %v3553_v38, %v3205_v51  ;;  %v7338_v15 = vpop.f32.mrf.mxu1 }
 0x245   : > { %v7298_v62 = vpop.f32.mrf.mxu0 }
 0x246   : > { %v4029_v13 = vpop.f32.mrf.mxu1 }
 0x247   : > { %v9949_v33 = vadd.f32 %v4029_v13, %v3593_v2  ;;  %v3556_v22 = vpop.f32.mrf.mxu0 }
 0x248   : > { %v3595_v50 = vadd.f32 %v3556_v22, %v3208_v1  ;;  %v7339_v32 = vpop.f32.mrf.mxu1 }
 0x249   : > { %v7299_v29 = vpop.f32.mrf.mxu0 }
 0x24a   : > { %v4034_v41 = vpop.f32.mrf.mxu1 }
 0x24b   : > { %v9953_v52 = vadd.f32 %v4034_v41, %v3594_v40  ;;  %v3561_v35 = vpop.f32.mrf.mxu0  ;;  %v3232_v40 = vadd.f32 %v9868_v4, %v9635_v23 }
 0x24c   : > { %v3596_v26 = vadd.f32 %v3561_v35, %v3213_v9  ;;  %v7342_v54 = vpop.f32.mrf.mxu1 }
 0x24d   : > { %v7302_v37 = vpop.f32.mrf.mxu0 }
 0x24e   : > { %v4037_v55 = vpop.f32.mrf.mxu1 }
 0x24f   : > { %v9957_v63 = vadd.f32 %v4037_v55, %v3595_v50  ;;  %v3564_v59 = vpop.f32.mrf.mxu0 }
 0x250   : > { %v3597_v11 = vadd.f32 %v3564_v59, %v3216_v60  ;;  %v7343_v8 = vpop.f32.mrf.mxu1 }
 0x251   : > { %v7303_v17 = vpop.f32.mrf.mxu0 }
 0x252   : > { %v4042_v19 = vpop.f32.mrf.mxu1 }
 0x253   : > { %v9959_v57 = vadd.f32 %v4042_v19, %v3596_v26  ;;  %v3569_v14 = vpop.f32.mrf.mxu0 }
 0x254   : > { %v3598_v56 = vadd.f32 %v3569_v14, %v9834_v5  ;;  %v7346_v31 = vpop.f32.mrf.mxu1 }
 0x255   : > { %v7306_v30 = vpop.f32.mrf.mxu0 }
 0x256   : > { %v4045_v6 = vpop.f32.mrf.mxu1 }
 0x257   : > { %v9964_v44 = vadd.f32 %v4045_v6, %v3597_v11  ;;  %v3572_v46 = vpop.f32.mrf.mxu0 }
 0x258   : > { %v3599_v49 = vadd.f32 %v3572_v46, %v3224_v20  ;;  %v7347_v18 = vpop.f32.mrf.mxu1 }
 0x259   : > { %v7307_v2 = vpop.f32.mrf.mxu0 }
 0x25a   : > { %v4050_v61 = vpop.f32.mrf.mxu1 }
 0x25b   : > { %v9966_v34 = vadd.f32 %v4050_v61, %v3598_v56  ;;  %v3577_v51 = vpop.f32.mrf.mxu0 }
 0x25c   : > { %v3600_v12 = vadd.f32 %v3577_v51, %v9858_v53  ;;  %v7350_v38 = vpop.f32.mrf.mxu1 }
 0x25d   : > { %v7310_v5 = vpop.f32.mrf.mxu0 }
 0x25e   : > { %v4053_v15 = vpop.f32.mrf.mxu1 }
 0x25f   : > { %v9971_v48 = vadd.f32 %v4053_v15, %v3599_v49  ;;  %v3580_v47 = vpop.f32.mrf.mxu0 }
 0x260   : > { %v3601_v62 = vadd.f32 %v3580_v47, %v3232_v40  ;;  %v7351_v1 = vpop.f32.mrf.mxu1 }
 0x261   : > { %v7311_v13 = vpop.f32.mrf.mxu0 }
 0x262   : > { %v4058_v22 = vpop.f32.mrf.mxu1 }
 0x263   : > { %v9973_v50 = vadd.f32 %v4058_v22, %v3600_v12  ;;  %v4168_v32 = vpop.f32.mrf.mxu0 }
 0x264   : > { %v7354_v29 = vpop.f32.mrf.mxu1  ;;  %v4239_v23 = vadd.f32 %v4168_v32, %v9904_v25 }
 0x265   : > { %v7366_v9 = vpop.f32.mrf.mxu0 }
 0x266   : > { %v4061_v41 = vpop.f32.mrf.mxu1 }
 0x267   : > { %v9975_v53 = vadd.f32 %v4061_v41, %v3601_v62  ;;  %v4171_v35 = vpop.f32.mrf.mxu0 }
 0x268   : > { %v7355_v26 = vpop.f32.mrf.mxu1  ;;  %v4240_v59 = vadd.f32 %v4171_v35, %v9913_v45 }
 0x269   : > { %v7367_v4 = vpop.f32.mrf.mxu0 }
 0x26a   : > { %v4379_v54 = vpop.f32.mrf.mxu1 }
 0x26b   : > { %v4450_v37 = vadd.f32 %v4379_v54, %v4239_v23  ;;  %v4176_v60 = vpop.f32.mrf.mxu0 }
 0x26c   : > { %v7410_v55 = vpop.f32.mrf.mxu1  ;;  %v4241_v20 = vadd.f32 %v4176_v60, %v9920_v27 }
 0x26d   : > { %v5450_v11 = vcombine.high %v4450_v37, %v4450_v37  ;;  %v5457_v8 = vrot.slane %v4450_v37, %v9607_v24  ;;  %v7370_v17 = vpop.f32.mrf.mxu0 }
 0x26e   : > { %v4382_v19 = vpop.f32.mrf.mxu1 }
 0x26f   : > { %v5464_v14 = vrot.slane %v5450_v11, %v9607_v24  ;;  %v5465_v56 = vcombine.high %v5457_v8, %v5457_v8  ;;  %v4451_v31 = vadd.f32 %v4382_v19, %v4240_v59  ;;  %v4179_v30 = vpop.f32.mrf.mxu0  ;;  %v5828_v46 = vadd.f32 %v5457_v8, %v9637_v3 }
 0x270   : > { %v7411_v25 = vpop.f32.mrf.mxu1  ;;  %v4242_v47 = vadd.f32 %v4179_v30, %v9926_v21 }
 0x271   : > { %v5466_v6 = vcombine.high %v5464_v14, %v5464_v14  ;;  %v5829_v49 = vadd.f32 %v5465_v56, %v9662_v58  ;;  %v5467_v18 = vcombine.high %v4451_v31, %v4451_v31  ;;  %v7371_v45 = vpop.f32.mrf.mxu0  ;;  %v5830_v2 = vadd.f32 %v5464_v14, %v9669_v7 }
 0x272   : > { %v5474_v61 = vrot.slane %v4451_v31, %v9607_v24  ;;  %v4387_v51 = vpop.f32.mrf.mxu1 }
 0x273   : > { %v5831_v12 = vadd.f32 %v5466_v6, %v9674_v39  ;;  %v5972_v38 = vcombine.low %v5828_v46, %v5829_v49  ;;  %v5481_v5 = vrot.slane %v5467_v18, %v9607_v24  ;;  %v4452_v40 = vadd.f32 %v4387_v51, %v4241_v20  ;;  %v4184_v27 = vpop.f32.mrf.mxu0 }
 0x274   : > { %v5482_v15 = vcombine.high %v5474_v61, %v5474_v61  ;;  %v7414_v62 = vpop.f32.mrf.mxu1  ;;  %v5832_v22 = vadd.f32 %v5474_v61, %v9690_v0  ;;  %v4243_v32 = vadd.f32 %v4184_v27, %v9930_v42 }
 0x275   : > { %v5973_v1 = vcombine.low %v5830_v2, %v5831_v12  ;;  %v5483_v13 = vcombine.high %v5481_v5, %v5481_v5  ;;  %v7374_v29 = vpop.f32.mrf.mxu0  ;;  %v5980_v9 = vrot.slane %v5972_v38, %v9607_v24  ;;  %v5484_v35 = vcombine.high %v4452_v40, %v4452_v40 }
 0x276   : > { %v5833_v41 = vadd.f32 %v5482_v15, %v9662_v58  ;;  %v5491_v26 = vrot.slane %v4452_v40, %v9607_v24  ;;  %v4390_v23 = vpop.f32.mrf.mxu1  ;;  %v5834_v21 = vadd.f32 %v5481_v5, %v9669_v7 }
 0x277   : > { %v5987_v4 = vrot.slane %v5973_v1, %v9607_v24  ;;  %v5835_v54 = vadd.f32 %v5483_v13, %v9674_v39  ;;  %v4453_v37 = vadd.f32 %v4390_v23, %v4242_v47  ;;  %v4187_v60 = vpop.f32.mrf.mxu0  ;;  %v5498_v42 = vrot.slane %v5484_v35, %v9607_v24 }
 0x278   : > { %v5989_v55 = vcombine.low %v5832_v22, %v5833_v41  ;;  %v5499_v59 = vcombine.high %v5491_v26, %v5491_v26  ;;  %v5836_v11 = vadd.f32 %v5491_v26, %v9664_v16  ;;  %v7415_v8 = vpop.f32.mrf.mxu1  ;;  %v4244_v38 = vadd.f32 %v4187_v60, %v9934_v36 }
 0x279   : > { %v5988_v17 = vcombine.low %v5980_v9, %v5987_v4  ;;  %v5990_v19 = vcombine.low %v5834_v21, %v5835_v54  ;;  %v5501_v14 = vcombine.high %v4453_v37, %v4453_v37  ;;  %v5508_v56 = vrot.slane %v4453_v37, %v9607_v24  ;;  %v7375_v31 = vpop.f32.mrf.mxu0 }
 0x27a   : > { %v5997_v30 = vrot.slane %v5989_v55, %v9607_v24  ;;  %v5500_v20 = vcombine.high %v5498_v42, %v5498_v42  ;;  %v5837_v25 = vadd.f32 %v5499_v59, %v9637_v3  ;;  %v5838_v6 = vadd.f32 %v5498_v42, %v9662_v58  ;;  %6752 = vst.sshfl [vmem:[%s9714_s15 + $0x1f] sm:$0x1 pattern:$0x76325410] %v5836_v11  ;;  %v4395_v46 = vpop.f32.mrf.mxu1 }
 0x27b   : > { %6724 = vst [vmem:[%s9714_s15 + $0xf] sm:$0xfe] %v5988_v17  ;;  %v6004_v49 = vrot.slane %v5990_v19, %v9607_v24  ;;  %v5515_v18 = vrot.slane %v5501_v14, %v9607_v24  ;;  %v5516_v45 = vcombine.high %v5508_v56, %v5508_v56  ;;  %v5840_v2 = vadd.f32 %v5508_v56, %v9674_v39  ;;  %v4192_v61 = vpop.f32.mrf.mxu0 }
 0x27c   : > { %v6013_v51 = vcombine.low %v5837_v25, %v5838_v6  ;;  %v5839_v12 = vadd.f32 %v5500_v20, %v9669_v7  ;;  %v4454_v5 = vadd.f32 %v4395_v46, %v4243_v32  ;;  %v7418_v40 = vpop.f32.mrf.mxu1  ;;  %v4245_v17 = vadd.f32 %v4192_v61, %v9936_v43 }
 0x27d   : > { %v6005_v27 = vcombine.low %v5997_v30, %v6004_v49  ;;  %v5517_v15 = vcombine.high %v5515_v18, %v5515_v18  ;;  %v5841_v47 = vadd.f32 %v5516_v45, %v9690_v0  ;;  %v5842_v62 = vadd.f32 %v5515_v18, %v9662_v58  ;;  %v7378_v1 = vpop.f32.mrf.mxu0 }
 0x27e   : > { %v6014_v13 = vcombine.low %v5839_v12, %v5840_v2  ;;  %v5518_v22 = vcombine.high %v4454_v5, %v4454_v5  ;;  %v5525_v29 = vrot.slane %v4454_v5, %v9607_v24  ;;  %v4398_v9 = vpop.f32.mrf.mxu1  ;;  %v6021_v41 = vrot.slane %v6013_v51, %v9607_v24 }
 0x27f   : > { %6725 = vst [vmem:[%s9714_s15 + $0x17] sm:$0xff] %v6005_v27  ;;  %v6030_v35 = vcombine.low %v5841_v47, %v5842_v62  ;;  %v5843_v36 = vadd.f32 %v5517_v15, %v9669_v7  ;;  %v4455_v32 = vadd.f32 %v4398_v9, %v4244_v38  ;;  %v4195_v26 = vpop.f32.mrf.mxu0 }
 0x280   : > { %v6028_v23 = vrot.slane %v6014_v13, %v9607_v24  ;;  %v5532_v4 = vrot.slane %v5518_v22, %v9607_v24  ;;  %v5533_v21 = vcombine.high %v5525_v29, %v5525_v29  ;;  %v5844_v54 = vadd.f32 %v5525_v29, %v9674_v39  ;;  %v7419_v37 = vpop.f32.mrf.mxu1 }
 0x281   : > { %v5535_v60 = vcombine.high %v4455_v32, %v4455_v32  ;;  %v5542_v55 = vrot.slane %v4455_v32, %v9607_v24  ;;  %v7379_v42 = vpop.f32.mrf.mxu0  ;;  %v6038_v14 = vrot.slane %v6030_v35, %v9607_v24  ;;  %v4246_v46 = vadd.f32 %v4195_v26, %v9941_v10 }
 0x282   : > { %v6029_v59 = vcombine.low %v6021_v41, %v6028_v23  ;;  %v5534_v11 = vcombine.high %v5532_v4, %v5532_v4  ;;  %v5845_v8 = vadd.f32 %v5533_v21, %v9664_v16  ;;  %v4403_v19 = vpop.f32.mrf.mxu1  ;;  %v6031_v56 = vcombine.low %v5843_v36, %v5844_v54 }
 0x283   : > { %v5549_v31 = vrot.slane %v5535_v60, %v9607_v24  ;;  %v5550_v30 = vcombine.high %v5542_v55, %v5542_v55  ;;  %v4200_v20 = vpop.f32.mrf.mxu0  ;;  %v5846_v25 = vadd.f32 %v5532_v4, %v9637_v3  ;;  %v4456_v49 = vadd.f32 %v4403_v19, %v4245_v17 }
 0x284   : > { %6727 = vst [vmem:[%s9714_s15 + $0x2f] sm:$0xfe] %v6029_v59  ;;  %v5847_v6 = vadd.f32 %v5534_v11, %v9662_v58  ;;  %6753 = vst.sshfl [vmem:[%s9714_s15 + $0x3f] sm:$0x1 pattern:$0x76325410] %v5845_v8  ;;  %v7422_v18 = vpop.f32.mrf.mxu1  ;;  %v6045_v43 = vrot.slane %v6031_v56, %v9607_v24  ;;  %v5848_v2 = vadd.f32 %v5542_v55, %v9669_v7 }
 0x285   : > { %v5551_v45 = vcombine.high %v5549_v31, %v5549_v31  ;;  %v5849_v61 = vadd.f32 %v5550_v30, %v9674_v39  ;;  %v7382_v51 = vpop.f32.mrf.mxu0  ;;  %v5850_v38 = vadd.f32 %v5549_v31, %v9690_v0  ;;  %v5552_v5 = vcombine.high %v4456_v49, %v4456_v49 }
 0x286   : > { %v6054_v12 = vcombine.low %v5846_v25, %v5847_v6  ;;  %v5559_v40 = vrot.slane %v4456_v49, %v9607_v24  ;;  %v4406_v27 = vpop.f32.mrf.mxu1  ;;  %v6046_v15 = vcombine.low %v6038_v14, %v6045_v43  ;;  %v4247_v9 = vadd.f32 %v4200_v20, %v9945_v28 }
 0x287   : > { %v5851_v10 = vadd.f32 %v5551_v45, %v9662_v58  ;;  %v6055_v47 = vcombine.low %v5848_v2, %v5849_v61  ;;  %v4457_v62 = vadd.f32 %v4406_v27, %v4246_v46  ;;  %v4203_v1 = vpop.f32.mrf.mxu0  ;;  %v5566_v22 = vrot.slane %v5552_v5, %v9607_v24 }
 0x288   : > { %v6062_v13 = vrot.slane %v6054_v12, %v9607_v24  ;;  %v5567_v29 = vcombine.high %v5559_v40, %v5559_v40  ;;  %v7423_v41 = vpop.f32.mrf.mxu1  ;;  %6728 = vst [vmem:[%s9714_s15 + $0x37] sm:$0xff] %v6046_v15  ;;  %v5852_v21 = vadd.f32 %v5559_v40, %v9669_v7  ;;  %v4248_v59 = vadd.f32 %v4203_v1, %v9949_v33 }
 0x289   : > { %v6069_v35 = vrot.slane %v6055_v47, %v9607_v24  ;;  %v6071_v36 = vcombine.low %v5850_v38, %v5851_v10  ;;  %v5569_v32 = vcombine.high %v4457_v62, %v4457_v62  ;;  %v5576_v26 = vrot.slane %v4457_v62, %v9607_v24  ;;  %v7383_v23 = vpop.f32.mrf.mxu0 }
 0x28a   : > { %v5568_v4 = vcombine.high %v5566_v22, %v5566_v22  ;;  %v5853_v54 = vadd.f32 %v5567_v29, %v9674_v39  ;;  %v5854_v37 = vadd.f32 %v5566_v22, %v9664_v16  ;;  %v4411_v60 = vpop.f32.mrf.mxu1 }
 0x28b   : > { %v6070_v28 = vcombine.low %v6062_v13, %v6069_v35  ;;  %v5583_v55 = vrot.slane %v5569_v32, %v9607_v24  ;;  %v5584_v42 = vcombine.high %v5576_v26, %v5576_v26  ;;  %v4208_v11 = vpop.f32.mrf.mxu0  ;;  %v5856_v19 = vadd.f32 %v5576_v26, %v9662_v58 }
 0x28c   : > { %v6072_v8 = vcombine.low %v5852_v21, %v5853_v54  ;;  %6754 = vst.sshfl [vmem:[%s9714_s15 + $0x5f] sm:$0x1 pattern:$0x76325410] %v5854_v37  ;;  %v5855_v17 = vadd.f32 %v5568_v4, %v9637_v3  ;;  %v4458_v14 = vadd.f32 %v4411_v60, %v4247_v9  ;;  %v7426_v56 = vpop.f32.mrf.mxu1  ;;  %v6079_v31 = vrot.slane %v6071_v36, %v9607_v24 }
 0x28d   : > { %6730 = vst [vmem:[%s9714_s15 + $0x4f] sm:$0xfe] %v6070_v28  ;;  %v5585_v30 = vcombine.high %v5583_v55, %v5583_v55  ;;  %v5857_v20 = vadd.f32 %v5584_v42, %v9669_v7  ;;  %v5858_v25 = vadd.f32 %v5583_v55, %v9674_v39  ;;  %v7386_v6 = vpop.f32.mrf.mxu0  ;;  %v4249_v9 = vadd.f32 %v4208_v11, %v9953_v52 }
 0x28e   : > { %v6086_v33 = vrot.slane %v6072_v8, %v9607_v24  ;;  %v6095_v46 = vcombine.low %v5855_v17, %v5856_v19  ;;  %v5586_v49 = vcombine.high %v4458_v14, %v4458_v14  ;;  %v5593_v18 = vrot.slane %v4458_v14, %v9607_v24  ;;  %v4414_v43 = vpop.f32.mrf.mxu1 }
 0x28f   : > { %v6096_v45 = vcombine.low %v5857_v20, %v5858_v25  ;;  %v5859_v2 = vadd.f32 %v5585_v30, %v9690_v0  ;;  %v4459_v61 = vadd.f32 %v4414_v43, %v4248_v59  ;;  %v4211_v51 = vpop.f32.mrf.mxu0 }
 0x290   : > { %v6087_v12 = vcombine.low %v6079_v31, %v6086_v33  ;;  %v6103_v38 = vrot.slane %v6095_v46, %v9607_v24  ;;  %v5600_v5 = vrot.slane %v5586_v49, %v9607_v24  ;;  %v5601_v40 = vcombine.high %v5593_v18, %v5593_v18  ;;  %v7427_v27 = vpop.f32.mrf.mxu1 }
 0x291   : > { %v6110_v15 = vrot.slane %v6096_v45, %v9607_v24  ;;  %v5860_v10 = vadd.f32 %v5593_v18, %v9662_v58  ;;  %v5603_v47 = vcombine.high %v4459_v61, %v4459_v61  ;;  %v5610_v62 = vrot.slane %v4459_v61, %v9607_v24  ;;  %v7387_v1 = vpop.f32.mrf.mxu0 }
 0x292   : > { %6731 = vst [vmem:[%s9714_s15 + $0x57] sm:$0xff] %v6087_v12  ;;  %v5602_v13 = vcombine.high %v5600_v5, %v5600_v5  ;;  %v5861_v22 = vadd.f32 %v5601_v40, %v9669_v7  ;;  %v5862_v29 = vadd.f32 %v5600_v5, %v9674_v39  ;;  %v4419_v41 = vpop.f32.mrf.mxu1  ;;  %v4250_v52 = vadd.f32 %v4211_v51, %v9957_v63 }
 0x293   : > { %v6111_v35 = vcombine.low %v6103_v38, %v6110_v15  ;;  %v6112_v36 = vcombine.low %v5859_v2, %v5860_v10  ;;  %v5617_v32 = vrot.slane %v5603_v47, %v9607_v24  ;;  %v5618_v26 = vcombine.high %v5610_v62, %v5610_v62  ;;  %v4216_v23 = vpop.f32.mrf.mxu0 }
 0x294   : > { %v5863_v4 = vadd.f32 %v5602_v13, %v9664_v16  ;;  %v6113_v21 = vcombine.low %v5861_v22, %v5862_v29  ;;  %v4460_v54 = vadd.f32 %v4419_v41, %v4249_v9  ;;  %v7430_v37 = vpop.f32.mrf.mxu1  ;;  %v5864_v28 = vadd.f32 %v5610_v62, %v9637_v3 }
 0x295   : > { %6733 = vst [vmem:[%s9714_s15 + $0x6f] sm:$0xfe] %v6111_v35  ;;  %v5619_v60 = vcombine.high %v5617_v32, %v5617_v32  ;;  %v5865_v55 = vadd.f32 %v5618_v26, %v9662_v58  ;;  %v7390_v42 = vpop.f32.mrf.mxu0  ;;  %v6120_v59 = vrot.slane %v6112_v36, %v9607_v24  ;;  %v5866_v14 = vadd.f32 %v5617_v32, %v9669_v7 }
 0x296   : > { %v6127_v11 = vrot.slane %v6113_v21, %v9607_v24  ;;  %6755 = vst.sshfl [vmem:[%s9714_s15 + $0x7f] sm:$0x1 pattern:$0x76325410] %v5863_v4  ;;  %v5620_v8 = vcombine.high %v4460_v54, %v4460_v54  ;;  %v5627_v17 = vrot.slane %v4460_v54, %v9607_v24  ;;  %v4422_v19 = vpop.f32.mrf.mxu1  ;;  %v4251_v33 = vadd.f32 %v4216_v23, %v9959_v57 }
 0x297   : > { %v5867_v56 = vadd.f32 %v5619_v60, %v9674_v39  ;;  %v6136_v31 = vcombine.low %v5864_v28, %v5865_v55  ;;  %v4461_v30 = vadd.f32 %v4422_v19, %v4250_v52  ;;  %v4219_v20 = vpop.f32.mrf.mxu0 }
 0x298   : > { %v6128_v25 = vcombine.low %v6120_v59, %v6127_v11  ;;  %v5634_v63 = vrot.slane %v5620_v8, %v9607_v24  ;;  %v5635_v6 = vcombine.high %v5627_v17, %v5627_v17  ;;  %v7431_v46 = vpop.f32.mrf.mxu1  ;;  %v5868_v18 = vadd.f32 %v5627_v17, %v9690_v0 }
 0x299   : > { %v6137_v49 = vcombine.low %v5866_v14, %v5867_v56  ;;  %v5637_v43 = vcombine.high %v4461_v30, %v4461_v30  ;;  %v5644_v45 = vrot.slane %v4461_v30, %v9607_v24  ;;  %v7391_v2 = vpop.f32.mrf.mxu0  ;;  %v6144_v61 = vrot.slane %v6136_v31, %v9607_v24 }
 0x29a   : > { %6734 = vst [vmem:[%s9714_s15 + $0x77] sm:$0xff] %v6128_v25  ;;  %v5636_v51 = vcombine.high %v5634_v63, %v5634_v63  ;;  %v5869_v12 = vadd.f32 %v5635_v6, %v9662_v58  ;;  %v5870_v38 = vadd.f32 %v5634_v63, %v9669_v7  ;;  %v4427_v5 = vpop.f32.mrf.mxu1  ;;  %v4252_v1 = vadd.f32 %v4219_v20, %v9964_v44 }
 0x29b   : > { %v6151_v57 = vrot.slane %v6137_v49, %v9607_v24  ;;  %v5651_v40 = vrot.slane %v5637_v43, %v9607_v24  ;;  %v5652_v27 = vcombine.high %v5644_v45, %v5644_v45  ;;  %v5872_v15 = vadd.f32 %v5644_v45, %v9664_v16  ;;  %v4224_v10 = vpop.f32.mrf.mxu0 }
 0x29c   : > { %v5871_v47 = vadd.f32 %v5636_v51, %v9674_v39  ;;  %v6153_v62 = vcombine.low %v5868_v18, %v5869_v12  ;;  %v4462_v13 = vadd.f32 %v4427_v5, %v4251_v33  ;;  %v7434_v22 = vpop.f32.mrf.mxu1  ;;  %v4253_v11 = vadd.f32 %v4224_v10, %v9966_v34 }
 0x29d   : > { %v6152_v29 = vcombine.low %v6144_v61, %v6151_v57  ;;  %v5653_v9 = vcombine.high %v5651_v40, %v5651_v40  ;;  %v5873_v41 = vadd.f32 %v5652_v27, %v9637_v3  ;;  %v5874_v35 = vadd.f32 %v5651_v40, %v9662_v58  ;;  %6756 = vst.sshfl [vmem:[%s9714_s15 + $0x9f] sm:$0x1 pattern:$0x76325410] %v5872_v15  ;;  %v7394_v36 = vpop.f32.mrf.mxu0 }
 0x29e   : > { %v6154_v32 = vcombine.low %v5870_v38, %v5871_v47  ;;  %v5654_v26 = vcombine.high %v4462_v13, %v4462_v13  ;;  %v5661_v23 = vrot.slane %v4462_v13, %v9607_v24  ;;  %v4430_v4 = vpop.f32.mrf.mxu1  ;;  %v6161_v21 = vrot.slane %v6153_v62, %v9607_v24 }
 0x29f   : > { %6736 = vst [vmem:[%s9714_s15 + $0x8f] sm:$0xfe] %v6152_v29  ;;  %v6177_v54 = vcombine.low %v5873_v41, %v5874_v35  ;;  %v5875_v44 = vadd.f32 %v5653_v9, %v9669_v7  ;;  %v4463_v37 = vadd.f32 %v4430_v4, %v4252_v1  ;;  %v4227_v60 = vpop.f32.mrf.mxu0 }
 0x2a0   : > { %v6168_v28 = vrot.slane %v6154_v32, %v9607_v24  ;;  %v5668_v55 = vrot.slane %v5654_v26, %v9607_v24  ;;  %v5669_v52 = vcombine.high %v5661_v23, %v5661_v23  ;;  %v5876_v42 = vadd.f32 %v5661_v23, %v9674_v39  ;;  %v7435_v59 = vpop.f32.mrf.mxu1 }
 0x2a1   : > { %v5671_v8 = vcombine.high %v4463_v37, %v4463_v37  ;;  %v5678_v17 = vrot.slane %v4463_v37, %v9607_v24  ;;  %v7395_v19 = vpop.f32.mrf.mxu0  ;;  %v6185_v34 = vrot.slane %v6177_v54, %v9607_v24  ;;  %v4254_v12 = vadd.f32 %v4227_v60, %v9971_v48 }
 0x2a2   : > { %v6169_v14 = vcombine.low %v6161_v21, %v6168_v28  ;;  %v5670_v56 = vcombine.high %v5668_v55, %v5668_v55  ;;  %v5877_v31 = vadd.f32 %v5669_v52, %v9690_v0  ;;  %v5878_v30 = vadd.f32 %v5668_v55, %v9662_v58  ;;  %v4435_v20 = vpop.f32.mrf.mxu1 }
 0x2a3   : > { %v6178_v25 = vcombine.low %v5875_v44, %v5876_v42  ;;  %v5685_v63 = vrot.slane %v5671_v8, %v9607_v24  ;;  %v5686_v6 = vcombine.high %v5678_v17, %v5678_v17  ;;  %v5880_v33 = vadd.f32 %v5678_v17, %v9674_v39  ;;  %v4232_v46 = vpop.f32.mrf.mxu0 }
 0x2a4   : > { %6737 = vst [vmem:[%s9714_s15 + $0x97] sm:$0xff] %v6169_v14  ;;  %v6194_v49 = vcombine.low %v5877_v31, %v5878_v30  ;;  %v5879_v18 = vadd.f32 %v5670_v56, %v9669_v7  ;;  %v4464_v43 = vadd.f32 %v4435_v20, %v4253_v11  ;;  %v7438_v45 = vpop.f32.mrf.mxu1  ;;  %v4255_v35 = vadd.f32 %v4232_v46, %v9973_v50 }
 0x2a5   : > { %v6192_v2 = vrot.slane %v6178_v25, %v9607_v24  ;;  %v5687_v61 = vcombine.high %v5685_v63, %v5685_v63  ;;  %v5881_v51 = vadd.f32 %v5686_v6, %v9664_v16  ;;  %v7398_v38 = vpop.f32.mrf.mxu0  ;;  %v5882_v10 = vadd.f32 %v5685_v63, %v9637_v3 }
 0x2a6   : > { %v6195_v5 = vcombine.low %v5879_v18, %v5880_v33  ;;  %v5688_v57 = vcombine.high %v4464_v43, %v4464_v43  ;;  %v5695_v40 = vrot.slane %v4464_v43, %v9607_v24  ;;  %v4438_v27 = vpop.f32.mrf.mxu1  ;;  %v6202_v13 = vrot.slane %v6194_v49, %v9607_v24 }
 0x2a7   : > { %v6193_v15 = vcombine.low %v6185_v34, %v6192_v2  ;;  %v5883_v47 = vadd.f32 %v5687_v61, %v9662_v58  ;;  %6757 = vst.sshfl [vmem:[%s9714_s15 + $0xbf] sm:$0x1 pattern:$0x76325410] %v5881_v51  ;;  %v4465_v62 = vadd.f32 %v4438_v27, %v4254_v12  ;;  %v4235_v1 = vpop.f32.mrf.mxu0 }
 0x2a8   : > { %v6209_v22 = vrot.slane %v6195_v5, %v9607_v24  ;;  %v5702_v48 = vrot.slane %v5688_v57, %v9607_v24  ;;  %v5703_v29 = vcombine.high %v5695_v40, %v5695_v40  ;;  %v7439_v9 = vpop.f32.mrf.mxu1  ;;  %v5884_v21 = vadd.f32 %v5695_v40, %v9669_v7 }
 0x2a9   : > { %6739 = vst [vmem:[%s9714_s15 + $0xaf] sm:$0xfe] %v6193_v15  ;;  %v6218_v41 = vcombine.low %v5882_v10, %v5883_v47  ;;  %v5705_v36 = vcombine.high %v4465_v62, %v4465_v62  ;;  %v5712_v32 = vrot.slane %v4465_v62, %v9607_v24  ;;  %v7399_v26 = vpop.f32.mrf.mxu0  ;;  %v4256_v55 = vadd.f32 %v4235_v1, %v9975_v53 }
 0x2aa   : > { %v6210_v23 = vcombine.low %v6202_v13, %v6209_v22  ;;  %v5704_v4 = vcombine.high %v5702_v48, %v5702_v48  ;;  %v5885_v54 = vadd.f32 %v5703_v29, %v9674_v39  ;;  %v5886_v37 = vadd.f32 %v5702_v48, %v9690_v0 }
 0x2ab   : > { %v4443_v44 = vpop.f32.mrf.mxu1  ;;  %v5719_v60 = vrot.slane %v5705_v36, %v9607_v24  ;;  %v5720_v28 = vcombine.high %v5712_v32, %v5712_v32  ;;  %v6226_v50 = vrot.slane %v6218_v41, %v9607_v24  ;;  %v5888_v17 = vadd.f32 %v5712_v32, %v9669_v7 }
 0x2ac   : > { %6740 = vst [vmem:[%s9714_s15 + $0xb7] sm:$0xff] %v6210_v23  ;;  %v5887_v52 = vadd.f32 %v5704_v4, %v9662_v58  ;;  %v6219_v42 = vcombine.low %v5884_v21, %v5885_v54  ;;  %v4466_v59 = vadd.f32 %v4443_v44, %v4255_v35 }
 0x2ad   : > { %v7442_v11 = vpop.f32.mrf.mxu1  ;;  %v5721_v8 = vcombine.high %v5719_v60, %v5719_v60  ;;  %v5889_v19 = vadd.f32 %v5720_v28, %v9674_v39  ;;  %v5890_v14 = vadd.f32 %v5719_v60, %v9664_v16 }
 0x2ae   : > { %v6233_v56 = vrot.slane %v6219_v42, %v9607_v24  ;;  %v6235_v31 = vcombine.low %v5886_v37, %v5887_v52  ;;  %v5722_v53 = vcombine.high %v4466_v59, %v4466_v59  ;;  %v5729_v30 = vrot.slane %v4466_v59, %v9607_v24 }
 0x2af   : > { %v4446_v20 = vpop.f32.mrf.mxu1  ;;  %v6236_v25 = vcombine.low %v5888_v17, %v5889_v19  ;;  %6758 = vst.sshfl [vmem:[%s9714_s15 + $0xdf] sm:$0x1 pattern:$0x76325410] %v5890_v14  ;;  %v5891_v63 = vadd.f32 %v5721_v8, %v9637_v3 }
 0x2b0   : > { %v4467_v6 = vadd.f32 %v4446_v20, %v4256_v55  ;;  %v6234_v33 = vcombine.low %v6226_v50, %v6233_v56  ;;  %v6243_v46 = vrot.slane %v6235_v31, %v9607_v24  ;;  %v5736_v34 = vrot.slane %v5722_v53, %v9607_v24 }
 0x2b1   : > { %v5737_v49 = vcombine.high %v5729_v30, %v5729_v30  ;;  %v7443_v18 = vpop.f32.mrf.mxu1  ;;  %v6250_v43 = vrot.slane %v6236_v25, %v9607_v24  ;;  %v5892_v45 = vadd.f32 %v5729_v30, %v9662_v58 }
 0x2b2   : > { %v5739_v2 = vcombine.high %v4467_v6, %v4467_v6  ;;  %v5746_v61 = vrot.slane %v4467_v6, %v9607_v24  ;;  %6742 = vst [vmem:[%s9714_s15 + $0xcf] sm:$0xfe] %v6234_v33  ;;  %v5738_v51 = vcombine.high %v5736_v34, %v5736_v34  ;;  %v5894_v12 = vadd.f32 %v5736_v34, %v9674_v39 }
 0x2b3   : > { %v5893_v3 = vadd.f32 %v5737_v49, %v9669_v7  ;;  %v6251_v38 = vcombine.low %v6243_v46, %v6250_v43  ;;  %v6259_v5 = vcombine.low %v5891_v63, %v5892_v45 }
 0x2b4   : > { %v5753_v57 = vrot.slane %v5739_v2, %v9607_v24  ;;  %v5754_v40 = vcombine.high %v5746_v61, %v5746_v61  ;;  %v5895_v15 = vadd.f32 %v5738_v51, %v9690_v0  ;;  %v5896_v10 = vadd.f32 %v5746_v61, %v9662_v58 }
 0x2b5   : > { %v6260_v27 = vcombine.low %v5893_v3, %v5894_v12  ;;  %6743 = vst [vmem:[%s9714_s15 + $0xd7] sm:$0xff] %v6251_v38  ;;  %v6267_v13 = vrot.slane %v6259_v5, %v9607_v24 }
 0x2b6   : > { %v5755_v47 = vcombine.high %v5753_v57, %v5753_v57  ;;  %v5897_v62 = vadd.f32 %v5754_v40, %v9669_v7  ;;  %v5898_v1 = vadd.f32 %v5753_v57, %v9674_v39  ;;  %v6276_v48 = vcombine.low %v5895_v15, %v5896_v10 }
 0x2b7   : > { %v6274_v22 = vrot.slane %v6260_v27, %v9607_v24 }
 0x2b8   : > { %v5899_v29 = vadd.f32 %v5755_v47, %v9664_v16  ;;  %v6277_v9 = vcombine.low %v5897_v62, %v5898_v1  ;;  %v6284_v0 = vrot.slane %v6276_v48, %v9607_v24 }
 0x2b9   : > { %v6275_v41 = vcombine.low %v6267_v13, %v6274_v22 }
 0x2ba   : > { %v6291_v58 = vrot.slane %v6277_v9, %v9607_v24  ;;  %6759 = vst.sshfl [vmem:[%s9714_s15 + $0xff] sm:$0x1 pattern:$0x76325410] %v5899_v29 }
 0x2bb   : > { %6745 = vst [vmem:[%s9714_s15 + $0xef] sm:$0xfe] %v6275_v41 }
 0x2bc   : > { %v6292_v35 = vcombine.low %v6284_v0, %v6291_v58 }
 0x2be   : > { %6746 = vst [vmem:[%s9714_s15 + $0xf7] sm:$0xff] %v6292_v35 }
 0x2bf PF: > { %s14_s19 = sadd.s32 1, %s7574_s19   ;;  %s10336_s15 = smov %s7566_s17 }
 0x2c0   : > { %p11_p11 = scmp.ge.s32.totalorder %s14_s19, 6   ;;  %s10337_s16 = smov %s7570_s18 }
 0x2c1   : > { %s10338_s17 = smov %s10341_s20  ;;  %s10339_s18 = smov %s10345_s21 }
 0x2c2   :  { %13 = sbr.rel (!%p11_p11) target bundleno = 3 (0x3), region = 80 }

</bundles_post_ra>
